<compile_context>
chip_gen: v7x
topology: tpu7x:2x2x1
jax: 0.10.0
libtpu: 0.0.40
codegen_flags: <defaults>
</compile_context>

<pallas_src>
import functools

import jax
import jax.numpy as jnp
from jax import lax
from jax.experimental import pallas as pl
from jax.experimental.pallas import tpu as pltpu


NUM_COEF = 5  # [sqrt_ac, sqrt_1m_ac, sqrt_recip_ac, sqrt_recipm1_ac, t_norm] per frame


# ----------------------------- diffusion buffers -----------------------------
def make_buffers(timesteps: int):
    # linear_beta_schedule (as in the PyTorch module's _build_buffer)
    scale = 1000.0 / timesteps
    beta_start = scale * 1e-4
    beta_end = scale * 2e-2
    betas = jnp.linspace(beta_start, beta_end, timesteps, dtype=jnp.float32)
    alphas = 1.0 - betas
    alphas_cumprod = jnp.cumprod(alphas)
    return {
        "sqrt_alphas_cumprod": jnp.sqrt(alphas_cumprod),
        "sqrt_one_minus_alphas_cumprod": jnp.sqrt(1.0 - alphas_cumprod),
        "sqrt_recip_alphas_cumprod": jnp.sqrt(1.0 / alphas_cumprod),
        "sqrt_recipm1_alphas_cumprod": jnp.sqrt(1.0 / alphas_cumprod - 1.0),
    }


# --------------------------------- kernel ------------------------------------
def _diffusion_kernel(coef_ref,                  # SMEM (F*NUM_COEF,) per-frame scalars
                      x_ref, z_ref, noise_ref,   # VMEM (FB, C, HW), (FB, Cz, HW), (FB, C, HW)
                      wA_ref, wB_ref,            # VMEM packed weights (resident)
                      xs_ref, loss_ref,          # VMEM outputs (FB, C, HW) each
                      *, clip_noise, C, Cz, hidden, frames_per_block):
    # Packed weights, hoisted once (tiny value slices, outside the frame loop).
    wA = wA_ref[...]                             # (hidden, C+Cz+2) = [w1x | w1z | b1 | tw]
    w1x = wA[:, 0:C]
    w1z = wA[:, C:C + Cz]
    b1 = wA[:, C + Cz:C + Cz + 1]                # (hidden, 1)
    tw = wA[:, C + Cz + 1:C + Cz + 2]            # (hidden, 1)
    wB = wB_ref[...]                             # (C, hidden+1) = [w2 | b2]
    w2 = wB[:, 0:hidden]
    b2 = wB[:, hidden:hidden + 1]                # (C, 1)

    block0 = pl.program_id(0) * frames_per_block

    def body(f, carry):
        base = (block0 + f) * NUM_COEF
        sqrt_ac = coef_ref[base + 0]
        sqrt_1m_ac = coef_ref[base + 1]
        sqrt_recip = coef_ref[base + 2]
        sqrt_recipm1 = coef_ref[base + 3]
        t_norm = coef_ref[base + 4]

        xf = x_ref[f]                                          # (C, HW)
        nf = jnp.clip(noise_ref[f], -clip_noise, clip_noise)   # (C, HW)
        zf = z_ref[f]                                          # (Cz, HW)

        # q_sample
        noised_x = sqrt_ac * xf + sqrt_1m_ac * nf              # (C, HW)

        # stand-in backbone: per-pixel (1x1-conv) 2-layer MLP over channels,
        # conditioned on z and the normalized noise level; bias/time are exact
        # post-dot f32 adds (not MXU columns).
        # TODO(synk): the real Unet3D / VDT backbones are external modules not
        # defined here; replaced with a deterministic small MLP backbone.
        h = (jnp.dot(w1x, noised_x, preferred_element_type=jnp.float32)
             + jnp.dot(w1z, zf, preferred_element_type=jnp.float32)
             + b1 + tw * t_norm)                               # (hidden, HW)
        h = jnp.maximum(h, 0.0)
        model_out = jnp.dot(w2, h, preferred_element_type=jnp.float32) + b2  # (C, HW)

        # objective == 'pred_noise'
        pred_noise = jnp.clip(model_out, -clip_noise, clip_noise)
        xs_ref[f] = sqrt_recip * noised_x - sqrt_recipm1 * pred_noise
        loss_ref[f] = (model_out - nf) ** 2
        return carry

    lax.fori_loop(0, frames_per_block, body, 0, unroll=True)


# -------------------------------- wrapper ------------------------------------
def diffusion_forward(x, z, noise, t, buffers, params, *, timesteps, clip_noise,
                      frames_per_block=None):
    """x, noise: (B,T,C,H,W); z: (B,T,Cz,H,W); t: (B,T) int32.  Returns (x_pred, loss)."""
    B, T, C, H, W = x.shape
    Cz = z.shape[2]
    hidden = params["w1x"].shape[0]
    HW = H * W
    F = B * T

    # Single block (1 grid step) by default: optimal on 1-TC v5e/v6e where extra
    # grid steps are pure overhead; on v7x use frames_per_block=F//2 plus a
    # core-parallel grid axis to engage both TensorCores.
    if frames_per_block is None:
        frames_per_block = F
    assert F % frames_per_block == 0
    num_blocks = F // frames_per_block

    # ---- free reshapes only (no transposes / broadcasts / concats of big tensors)
    x_r = x.reshape(F, C, HW)
    z_r = z.reshape(F, Cz, HW)
    noise_r = noise.reshape(F, C, HW)

    # ---- tiny per-frame scalar table -> SMEM (F * NUM_COEF floats)
    tf = t.reshape(F)
    coef = jnp.stack(
        [buffers["sqrt_alphas_cumprod"][tf],
         buffers["sqrt_one_minus_alphas_cumprod"][tf],
         buffers["sqrt_recip_alphas_cumprod"][tf],
         buffers["sqrt_recipm1_alphas_cumprod"][tf],
         tf.astype(jnp.float32) / float(timesteps)],
        axis=1).reshape(F * NUM_COEF)

    # ---- packed (tiny) weight slabs -> 2 weight DMAs instead of 6
    wA = jnp.concatenate([params["w1x"], params["w1z"], params["b1"], params["tw"]],
                         axis=1)                              # (hidden, C+Cz+2)
    wB = jnp.concatenate([params["w2"], params["b2"]], axis=1)  # (C, hidden+1)

    kernel = functools.partial(_diffusion_kernel, clip_noise=clip_noise,
                               C=C, Cz=Cz, hidden=hidden,
                               frames_per_block=frames_per_block)

    frame_spec = lambda ch: pl.BlockSpec((frames_per_block, ch, HW),
                                         lambda i: (i, 0, 0))
    weight_spec = lambda shape: pl.BlockSpec(shape, lambda i: (0, 0))

    xs, loss = pl.pallas_call(
        kernel,
        out_shape=(jax.ShapeDtypeStruct((F, C, HW), jnp.float32),
                   jax.ShapeDtypeStruct((F, C, HW), jnp.float32)),
        grid_spec=pltpu.PrefetchScalarGridSpec(
            num_scalar_prefetch=0,
            grid=(num_blocks,),
            in_specs=[
                pl.BlockSpec(memory_space=pltpu.MemorySpace.SMEM),  # coef table
                frame_spec(C),                                      # x
                frame_spec(Cz),                                     # z
                frame_spec(C),                                      # noise
                weight_spec((hidden, C + Cz + 2)),                  # wA = [w1x|w1z|b1|tw]
                weight_spec((C, hidden + 1)),                       # wB = [w2|b2]
            ],
            out_specs=[frame_spec(C), frame_spec(C)],
        ),
        compiler_params=pltpu.CompilerParams(
            dimension_semantics=("parallel",)),
    )(coef, x_r, z_r, noise_r, wA, wB)

    # free reshapes back to (B, T, C, H, W)
    return xs.reshape(B, T, C, H, W), loss.reshape(B, T, C, H, W)


# ------------------------- pure-JAX reference (check) -------------------------
def reference_forward(x, z, noise, t, buffers, params, *, timesteps, clip_noise):
    B, T, C, H, W = x.shape
    Cz = z.shape[2]
    HW = H * W
    xf = x.reshape(B, T, C, HW)
    zf = z.reshape(B, T, Cz, HW)
    nf = noise.reshape(B, T, C, HW)

    def gather(name):
        return buffers[name][t][..., None, None]  # (B, T, 1, 1)

    noise_c = jnp.clip(nf, -clip_noise, clip_noise)
    noised_x = (gather("sqrt_alphas_cumprod") * xf
                + gather("sqrt_one_minus_alphas_cumprod") * noise_c)
    t_norm = (t.astype(jnp.float32) / float(timesteps))[..., None, None]
    h = (jnp.einsum("hc,btcp->bthp", params["w1x"], noised_x)
         + jnp.einsum("hc,btcp->bthp", params["w1z"], zf)
         + params["b1"][None, None] + params["tw"][None, None] * t_norm)
    h = jnp.maximum(h, 0.0)
    model_out = jnp.einsum("oh,bthp->btop", params["w2"], h) + params["b2"][None, None]
    pred_noise = jnp.clip(model_out, -clip_noise, clip_noise)
    x_start = (gather("sqrt_recip_alphas_cumprod") * noised_x
               - gather("sqrt_recipm1_alphas_cumprod") * pred_noise)
    loss = (model_out - noise_c) ** 2
    return (x_start.reshape(B, T, C, H, W), loss.reshape(B, T, C, H, W))


# ----------------------------------- main -------------------------------------
if __name__ == "__main__":
    B, T, C, Cz, H, W = 2, 8, 4, 4, 16, 16
    hidden = 32
    timesteps = 100
    clip_noise = 20.0

    key = jax.random.PRNGKey(0)
    ks = jax.random.split(key, 10)

    # inputs (x_shape = (C, H, W), z_shape = (Cz, H, W); sequences of length T)
    x = jax.random.normal(ks[0], (B, T, C, H, W), jnp.float32)
    z = jax.random.normal(ks[1], (B, T, Cz, H, W), jnp.float32)
    noise = jax.random.normal(ks[2], (B, T, C, H, W), jnp.float32)          # randn_like(x)
    t = jax.random.randint(ks[3], (B, T), 0, timesteps, dtype=jnp.int32)    # noise levels

    # deterministic synthetic backbone parameters
    params = {
        "w1x": 0.1 * jax.random.normal(ks[4], (hidden, C), jnp.float32),
        "w1z": 0.1 * jax.random.normal(ks[5], (hidden, Cz), jnp.float32),
        "b1": 0.1 * jax.random.normal(ks[6], (hidden, 1), jnp.float32),
        "tw": 0.1 * jax.random.normal(ks[7], (hidden, 1), jnp.float32),
        "w2": 0.1 * jax.random.normal(ks[8], (C, hidden), jnp.float32),
        "b2": 0.1 * jax.random.normal(ks[9], (C, 1), jnp.float32),
    }

    buffers = make_buffers(timesteps)

    fwd = jax.jit(functools.partial(diffusion_forward,
                                    timesteps=timesteps, clip_noise=clip_noise))
    x_pred, loss = fwd(x, z, noise, t, buffers, params)
    jax.block_until_ready((x_pred, loss))

    x_pred_ref, loss_ref = reference_forward(x, z, noise, t, buffers, params,
                                             timesteps=timesteps, clip_noise=clip_noise)
    # tolerance covers MXU default-precision accumulation-order differences between
    # the in-kernel per-frame dots and the reference's batched einsums
    assert jnp.allclose(x_pred, x_pred_ref, atol=2e-3, rtol=2e-3)
    assert jnp.allclose(loss, loss_ref, atol=2e-3, rtol=2e-3)

    print("KERNEL_OK")
</pallas_src>

<mosaic_0001>
module attributes {stable_mosaic.version = 11 : i64} {
  func.func @_diffusion_kernel(%arg0: i32, %arg1: memref<80xf32, #tpu.memory_space<smem>>, %arg2: memref<16x4x256xf32, #tpu.memory_space<vmem>>, %arg3: memref<16x4x256xf32, #tpu.memory_space<vmem>>, %arg4: memref<16x4x256xf32, #tpu.memory_space<vmem>>, %arg5: memref<32x10xf32, #tpu.memory_space<vmem>>, %arg6: memref<4x33xf32, #tpu.memory_space<vmem>>, %arg7: memref<16x4x256xf32, #tpu.memory_space<vmem>>, %arg8: memref<16x4x256xf32, #tpu.memory_space<vmem>>) attributes {dimension_semantics = [#tpu.dimension_semantics<parallel>], iteration_bounds = array<i64: 1>, scalar_prefetch = 0 : i64, scratch_operands = 0 : i64, tpu.core_type = #tpu.core_type<tc>, window_params = [{transform_indices = @transform_0, window_bounds = array<i64: 80>}, {transform_indices = @transform_1, window_bounds = array<i64: 16, 4, 256>}, {transform_indices = @transform_2, window_bounds = array<i64: 16, 4, 256>}, {transform_indices = @transform_3, window_bounds = array<i64: 16, 4, 256>}, {pipeline_mode = #tpu.pipeline_mode<synchronous>, transform_indices = @transform_4, window_bounds = array<i64: 32, 10>}, {pipeline_mode = #tpu.pipeline_mode<synchronous>, transform_indices = @transform_5, window_bounds = array<i64: 4, 33>}, {transform_indices = @transform_6, window_bounds = array<i64: 16, 4, 256>}, {transform_indices = @transform_7, window_bounds = array<i64: 16, 4, 256>}]} {
    %c0 = arith.constant 0 : index
    %c0_0 = arith.constant 0 : index
    %0 = vector.load %arg5[%c0, %c0_0] : memref<32x10xf32, #tpu.memory_space<vmem>>, vector<32x10xf32>
    %1 = vector.extract_strided_slice %0 {offsets = [0, 0], sizes = [32, 4], strides = [1, 1]} : vector<32x10xf32> to vector<32x4xf32>
    %2 = vector.extract_strided_slice %0 {offsets = [0, 4], sizes = [32, 4], strides = [1, 1]} : vector<32x10xf32> to vector<32x4xf32>
    %3 = vector.extract_strided_slice %0 {offsets = [0, 8], sizes = [32, 1], strides = [1, 1]} : vector<32x10xf32> to vector<32x1xf32>
    %4 = vector.extract_strided_slice %0 {offsets = [0, 9], sizes = [32, 1], strides = [1, 1]} : vector<32x10xf32> to vector<32x1xf32>
    %c0_1 = arith.constant 0 : index
    %c0_2 = arith.constant 0 : index
    %5 = vector.load %arg6[%c0_1, %c0_2] : memref<4x33xf32, #tpu.memory_space<vmem>>, vector<4x33xf32>
    %6 = vector.extract_strided_slice %5 {offsets = [0, 0], sizes = [4, 32], strides = [1, 1]} : vector<4x33xf32> to vector<4x32xf32>
    %7 = vector.extract_strided_slice %5 {offsets = [0, 32], sizes = [4, 1], strides = [1, 1]} : vector<4x33xf32> to vector<4x1xf32>
    %c16_i32 = arith.constant 16 : i32
    %8 = arith.muli %arg0, %c16_i32 : i32
    %c0_i32 = arith.constant 0 : i32
    %9 = arith.addi %8, %c0_i32 : i32
    %c5_i32 = arith.constant 5 : i32
    %10 = arith.muli %9, %c5_i32 : i32
    %c0_i32_3 = arith.constant 0 : i32
    %11 = arith.addi %10, %c0_i32_3 : i32
    %12 = arith.index_cast %11 : i32 to index
    %13 = memref.load %arg1[%12] : memref<80xf32, #tpu.memory_space<smem>>
    %c1_i32 = arith.constant 1 : i32
    %14 = arith.addi %10, %c1_i32 : i32
    %15 = arith.index_cast %14 : i32 to index
    %16 = memref.load %arg1[%15] : memref<80xf32, #tpu.memory_space<smem>>
    %c2_i32 = arith.constant 2 : i32
    %17 = arith.addi %10, %c2_i32 : i32
    %18 = arith.index_cast %17 : i32 to index
    %19 = memref.load %arg1[%18] : memref<80xf32, #tpu.memory_space<smem>>
    %c3_i32 = arith.constant 3 : i32
    %20 = arith.addi %10, %c3_i32 : i32
    %21 = arith.index_cast %20 : i32 to index
    %22 = memref.load %arg1[%21] : memref<80xf32, #tpu.memory_space<smem>>
    %c4_i32 = arith.constant 4 : i32
    %23 = arith.addi %10, %c4_i32 : i32
    %24 = arith.index_cast %23 : i32 to index
    %25 = memref.load %arg1[%24] : memref<80xf32, #tpu.memory_space<smem>>
    %26 = arith.index_cast %c0_i32 : i32 to index
    %c0_4 = arith.constant 0 : index
    %c0_5 = arith.constant 0 : index
    %27 = vector.load %arg2[%26, %c0_4, %c0_5] : memref<16x4x256xf32, #tpu.memory_space<vmem>>, vector<1x4x256xf32>
    %28 = vector.shape_cast %27 : vector<1x4x256xf32> to vector<4x256xf32>
    %29 = arith.index_cast %c0_i32 : i32 to index
    %c0_6 = arith.constant 0 : index
    %c0_7 = arith.constant 0 : index
    %30 = vector.load %arg4[%29, %c0_6, %c0_7] : memref<16x4x256xf32, #tpu.memory_space<vmem>>, vector<1x4x256xf32>
    %31 = vector.shape_cast %30 : vector<1x4x256xf32> to vector<4x256xf32>
    %cst = arith.constant -2.000000e+01 : f32
    %cst_8 = arith.constant 2.000000e+01 : f32
    %32 = vector.broadcast %cst : f32 to vector<4x256xf32>
    %33 = arith.maximumf %32, %31 : vector<4x256xf32>
    %34 = vector.broadcast %cst_8 : f32 to vector<4x256xf32>
    %35 = arith.minimumf %34, %33 : vector<4x256xf32>
    %36 = arith.index_cast %c0_i32 : i32 to index
    %c0_9 = arith.constant 0 : index
    %c0_10 = arith.constant 0 : index
    %37 = vector.load %arg3[%36, %c0_9, %c0_10] : memref<16x4x256xf32, #tpu.memory_space<vmem>>, vector<1x4x256xf32>
    %38 = vector.shape_cast %37 : vector<1x4x256xf32> to vector<4x256xf32>
    %39 = vector.broadcast %13 : f32 to vector<4x256xf32>
    %40 = arith.mulf %39, %28 : vector<4x256xf32>
    %41 = vector.broadcast %16 : f32 to vector<4x256xf32>
    %42 = arith.mulf %41, %35 : vector<4x256xf32>
    %43 = arith.addf %40, %42 : vector<4x256xf32>
    %cst_11 = arith.constant dense<0.000000e+00> : vector<32x256xf32>
    %44 = tpu.matmul %1, %43, %cst_11 {dimension_numbers = #tpu.dot_dimension_numbers<[1], [0], [0], [1], [0, 0, 1, 1], [], []>} : vector<32x4xf32>, vector<4x256xf32>, vector<32x256xf32> -> vector<32x256xf32>
    %cst_12 = arith.constant dense<0.000000e+00> : vector<32x256xf32>
    %45 = tpu.matmul %2, %38, %cst_12 {dimension_numbers = #tpu.dot_dimension_numbers<[1], [0], [0], [1], [0, 0, 1, 1], [], []>} : vector<32x4xf32>, vector<4x256xf32>, vector<32x256xf32> -> vector<32x256xf32>
    %46 = arith.addf %44, %45 : vector<32x256xf32>
    %47 = vector.broadcast %3 : vector<32x1xf32> to vector<32x256xf32>
    %48 = arith.addf %46, %47 : vector<32x256xf32>
    %49 = vector.broadcast %25 : f32 to vector<32x1xf32>
    %50 = arith.mulf %4, %49 : vector<32x1xf32>
    %51 = vector.broadcast %50 : vector<32x1xf32> to vector<32x256xf32>
    %52 = arith.addf %48, %51 : vector<32x256xf32>
    %cst_13 = arith.constant 0.000000e+00 : f32
    %53 = vector.broadcast %cst_13 : f32 to vector<32x256xf32>
    %54 = arith.maximumf %52, %53 : vector<32x256xf32>
    %cst_14 = arith.constant dense<0.000000e+00> : vector<4x256xf32>
    %55 = tpu.matmul %6, %54, %cst_14 {dimension_numbers = #tpu.dot_dimension_numbers<[1], [0], [0], [1], [0, 0, 1, 1], [], []>} : vector<4x32xf32>, vector<32x256xf32>, vector<4x256xf32> -> vector<4x256xf32>
    %56 = vector.broadcast %7 : vector<4x1xf32> to vector<4x256xf32>
    %57 = arith.addf %55, %56 : vector<4x256xf32>
    %cst_15 = arith.constant -2.000000e+01 : f32
    %cst_16 = arith.constant 2.000000e+01 : f32
    %58 = vector.broadcast %cst_15 : f32 to vector<4x256xf32>
    %59 = arith.maximumf %58, %57 : vector<4x256xf32>
    %60 = vector.broadcast %cst_16 : f32 to vector<4x256xf32>
    %61 = arith.minimumf %60, %59 : vector<4x256xf32>
    %62 = vector.broadcast %19 : f32 to vector<4x256xf32>
    %63 = arith.mulf %62, %43 : vector<4x256xf32>
    %64 = vector.broadcast %22 : f32 to vector<4x256xf32>
    %65 = arith.mulf %64, %61 : vector<4x256xf32>
    %66 = arith.subf %63, %65 : vector<4x256xf32>
    %67 = arith.index_cast %c0_i32 : i32 to index
    %c0_17 = arith.constant 0 : index
    %c0_18 = arith.constant 0 : index
    %68 = vector.load %arg7[%67, %c0_17, %c0_18] : memref<16x4x256xf32, #tpu.memory_space<vmem>>, vector<1x4x256xf32>
    %69 = vector.shape_cast %68 : vector<1x4x256xf32> to vector<4x256xf32>
    %70 = vector.shape_cast %66 : vector<4x256xf32> to vector<1x4x256xf32>
    tpu.vector_store %arg7[%67, %c0_17, %c0_18], %70 {strides = array<i32>} : memref<16x4x256xf32, #tpu.memory_space<vmem>>, vector<1x4x256xf32>,
    %71 = arith.subf %57, %35 : vector<4x256xf32>
    %72 = arith.mulf %71, %71 : vector<4x256xf32>
    %73 = arith.index_cast %c0_i32 : i32 to index
    %c0_19 = arith.constant 0 : index
    %c0_20 = arith.constant 0 : index
    %74 = vector.load %arg8[%73, %c0_19, %c0_20] : memref<16x4x256xf32, #tpu.memory_space<vmem>>, vector<1x4x256xf32>
    %75 = vector.shape_cast %74 : vector<1x4x256xf32> to vector<4x256xf32>
    %76 = vector.shape_cast %72 : vector<4x256xf32> to vector<1x4x256xf32>
    tpu.vector_store %arg8[%73, %c0_19, %c0_20], %76 {strides = array<i32>} : memref<16x4x256xf32, #tpu.memory_space<vmem>>, vector<1x4x256xf32>,
    %c1_i32_21 = arith.constant 1 : i32
    %77 = arith.addi %8, %c1_i32_21 : i32
    %c5_i32_22 = arith.constant 5 : i32
    %78 = arith.muli %77, %c5_i32_22 : i32
    %c0_i32_23 = arith.constant 0 : i32
    %79 = arith.addi %78, %c0_i32_23 : i32
    %80 = arith.index_cast %79 : i32 to index
    %81 = memref.load %arg1[%80] : memref<80xf32, #tpu.memory_space<smem>>
    %c1_i32_24 = arith.constant 1 : i32
    %82 = arith.addi %78, %c1_i32_24 : i32
    %83 = arith.index_cast %82 : i32 to index
    %84 = memref.load %arg1[%83] : memref<80xf32, #tpu.memory_space<smem>>
    %c2_i32_25 = arith.constant 2 : i32
    %85 = arith.addi %78, %c2_i32_25 : i32
    %86 = arith.index_cast %85 : i32 to index
    %87 = memref.load %arg1[%86] : memref<80xf32, #tpu.memory_space<smem>>
    %c3_i32_26 = arith.constant 3 : i32
    %88 = arith.addi %78, %c3_i32_26 : i32
    %89 = arith.index_cast %88 : i32 to index
    %90 = memref.load %arg1[%89] : memref<80xf32, #tpu.memory_space<smem>>
    %c4_i32_27 = arith.constant 4 : i32
    %91 = arith.addi %78, %c4_i32_27 : i32
    %92 = arith.index_cast %91 : i32 to index
    %93 = memref.load %arg1[%92] : memref<80xf32, #tpu.memory_space<smem>>
    %94 = arith.index_cast %c1_i32_21 : i32 to index
    %c0_28 = arith.constant 0 : index
    %c0_29 = arith.constant 0 : index
    %95 = vector.load %arg2[%94, %c0_28, %c0_29] : memref<16x4x256xf32, #tpu.memory_space<vmem>>, vector<1x4x256xf32>
    %96 = vector.shape_cast %95 : vector<1x4x256xf32> to vector<4x256xf32>
    %97 = arith.index_cast %c1_i32_21 : i32 to index
    %c0_30 = arith.constant 0 : index
    %c0_31 = arith.constant 0 : index
    %98 = vector.load %arg4[%97, %c0_30, %c0_31] : memref<16x4x256xf32, #tpu.memory_space<vmem>>, vector<1x4x256xf32>
    %99 = vector.shape_cast %98 : vector<1x4x256xf32> to vector<4x256xf32>
    %cst_32 = arith.constant -2.000000e+01 : f32
    %cst_33 = arith.constant 2.000000e+01 : f32
    %100 = vector.broadcast %cst_32 : f32 to vector<4x256xf32>
    %101 = arith.maximumf %100, %99 : vector<4x256xf32>
    %102 = vector.broadcast %cst_33 : f32 to vector<4x256xf32>
    %103 = arith.minimumf %102, %101 : vector<4x256xf32>
    %104 = arith.index_cast %c1_i32_21 : i32 to index
    %c0_34 = arith.constant 0 : index
    %c0_35 = arith.constant 0 : index
    %105 = vector.load %arg3[%104, %c0_34, %c0_35] : memref<16x4x256xf32, #tpu.memory_space<vmem>>, vector<1x4x256xf32>
    %106 = vector.shape_cast %105 : vector<1x4x256xf32> to vector<4x256xf32>
    %107 = vector.broadcast %81 : f32 to vector<4x256xf32>
    %108 = arith.mulf %107, %96 : vector<4x256xf32>
    %109 = vector.broadcast %84 : f32 to vector<4x256xf32>
    %110 = arith.mulf %109, %103 : vector<4x256xf32>
    %111 = arith.addf %108, %110 : vector<4x256xf32>
    %cst_36 = arith.constant dense<0.000000e+00> : vector<32x256xf32>
    %112 = tpu.matmul %1, %111, %cst_36 {dimension_numbers = #tpu.dot_dimension_numbers<[1], [0], [0], [1], [0, 0, 1, 1], [], []>} : vector<32x4xf32>, vector<4x256xf32>, vector<32x256xf32> -> vector<32x256xf32>
    %cst_37 = arith.constant dense<0.000000e+00> : vector<32x256xf32>
    %113 = tpu.matmul %2, %106, %cst_37 {dimension_numbers = #tpu.dot_dimension_numbers<[1], [0], [0], [1], [0, 0, 1, 1], [], []>} : vector<32x4xf32>, vector<4x256xf32>, vector<32x256xf32> -> vector<32x256xf32>
    %114 = arith.addf %112, %113 : vector<32x256xf32>
    %115 = vector.broadcast %3 : vector<32x1xf32> to vector<32x256xf32>
    %116 = arith.addf %114, %115 : vector<32x256xf32>
    %117 = vector.broadcast %93 : f32 to vector<32x1xf32>
    %118 = arith.mulf %4, %117 : vector<32x1xf32>
    %119 = vector.broadcast %118 : vector<32x1xf32> to vector<32x256xf32>
    %120 = arith.addf %116, %119 : vector<32x256xf32>
    %cst_38 = arith.constant 0.000000e+00 : f32
    %121 = vector.broadcast %cst_38 : f32 to vector<32x256xf32>
    %122 = arith.maximumf %120, %121 : vector<32x256xf32>
    %cst_39 = arith.constant dense<0.000000e+00> : vector<4x256xf32>
    %123 = tpu.matmul %6, %122, %cst_39 {dimension_numbers = #tpu.dot_dimension_numbers<[1], [0], [0], [1], [0, 0, 1, 1], [], []>} : vector<4x32xf32>, vector<32x256xf32>, vector<4x256xf32> -> vector<4x256xf32>
    %124 = vector.broadcast %7 : vector<4x1xf32> to vector<4x256xf32>
    %125 = arith.addf %123, %124 : vector<4x256xf32>
    %cst_40 = arith.constant -2.000000e+01 : f32
    %cst_41 = arith.constant 2.000000e+01 : f32
    %126 = vector.broadcast %cst_40 : f32 to vector<4x256xf32>
    %127 = arith.maximumf %126, %125 : vector<4x256xf32>
    %128 = vector.broadcast %cst_41 : f32 to vector<4x256xf32>
    %129 = arith.minimumf %128, %127 : vector<4x256xf32>
    %130 = vector.broadcast %87 : f32 to vector<4x256xf32>
    %131 = arith.mulf %130, %111 : vector<4x256xf32>
    %132 = vector.broadcast %90 : f32 to vector<4x256xf32>
    %133 = arith.mulf %132, %129 : vector<4x256xf32>
    %134 = arith.subf %131, %133 : vector<4x256xf32>
    %135 = arith.index_cast %c1_i32_21 : i32 to index
    %c0_42 = arith.constant 0 : index
    %c0_43 = arith.constant 0 : index
    %136 = vector.load %arg7[%135, %c0_42, %c0_43] : memref<16x4x256xf32, #tpu.memory_space<vmem>>, vector<1x4x256xf32>
    %137 = vector.shape_cast %136 : vector<1x4x256xf32> to vector<4x256xf32>
    %138 = vector.shape_cast %134 : vector<4x256xf32> to vector<1x4x256xf32>
    tpu.vector_store %arg7[%135, %c0_42, %c0_43], %138 {strides = array<i32>} : memref<16x4x256xf32, #tpu.memory_space<vmem>>, vector<1x4x256xf32>,
    %139 = arith.subf %125, %103 : vector<4x256xf32>
    %140 = arith.mulf %139, %139 : vector<4x256xf32>
    %141 = arith.index_cast %c1_i32_21 : i32 to index
    %c0_44 = arith.constant 0 : index
    %c0_45 = arith.constant 0 : index
    %142 = vector.load %arg8[%141, %c0_44, %c0_45] : memref<16x4x256xf32, #tpu.memory_space<vmem>>, vector<1x4x256xf32>
    %143 = vector.shape_cast %142 : vector<1x4x256xf32> to vector<4x256xf32>
    %144 = vector.shape_cast %140 : vector<4x256xf32> to vector<1x4x256xf32>
    tpu.vector_store %arg8[%141, %c0_44, %c0_45], %144 {strides = array<i32>} : memref<16x4x256xf32, #tpu.memory_space<vmem>>, vector<1x4x256xf32>,
    %c2_i32_46 = arith.constant 2 : i32
    %145 = arith.addi %8, %c2_i32_46 : i32
    %c5_i32_47 = arith.constant 5 : i32
    %146 = arith.muli %145, %c5_i32_47 : i32
    %c0_i32_48 = arith.constant 0 : i32
    %147 = arith.addi %146, %c0_i32_48 : i32
    %148 = arith.index_cast %147 : i32 to index
    %149 = memref.load %arg1[%148] : memref<80xf32, #tpu.memory_space<smem>>
    %c1_i32_49 = arith.constant 1 : i32
    %150 = arith.addi %146, %c1_i32_49 : i32
    %151 = arith.index_cast %150 : i32 to index
    %152 = memref.load %arg1[%151] : memref<80xf32, #tpu.memory_space<smem>>
    %c2_i32_50 = arith.constant 2 : i32
    %153 = arith.addi %146, %c2_i32_50 : i32
    %154 = arith.index_cast %153 : i32 to index
    %155 = memref.load %arg1[%154] : memref<80xf32, #tpu.memory_space<smem>>
    %c3_i32_51 = arith.constant 3 : i32
    %156 = arith.addi %146, %c3_i32_51 : i32
    %157 = arith.index_cast %156 : i32 to index
    %158 = memref.load %arg1[%157] : memref<80xf32, #tpu.memory_space<smem>>
    %c4_i32_52 = arith.constant 4 : i32
    %159 = arith.addi %146, %c4_i32_52 : i32
    %160 = arith.index_cast %159 : i32 to index
    %161 = memref.load %arg1[%160] : memref<80xf32, #tpu.memory_space<smem>>
    %162 = arith.index_cast %c2_i32_46 : i32 to index
    %c0_53 = arith.constant 0 : index
    %c0_54 = arith.constant 0 : index
    %163 = vector.load %arg2[%162, %c0_53, %c0_54] : memref<16x4x256xf32, #tpu.memory_space<vmem>>, vector<1x4x256xf32>
    %164 = vector.shape_cast %163 : vector<1x4x256xf32> to vector<4x256xf32>
    %165 = arith.index_cast %c2_i32_46 : i32 to index
    %c0_55 = arith.constant 0 : index
    %c0_56 = arith.constant 0 : index
    %166 = vector.load %arg4[%165, %c0_55, %c0_56] : memref<16x4x256xf32, #tpu.memory_space<vmem>>, vector<1x4x256xf32>
    %167 = vector.shape_cast %166 : vector<1x4x256xf32> to vector<4x256xf32>
    %cst_57 = arith.constant -2.000000e+01 : f32
    %cst_58 = arith.constant 2.000000e+01 : f32
    %168 = vector.broadcast %cst_57 : f32 to vector<4x256xf32>
    %169 = arith.maximumf %168, %167 : vector<4x256xf32>
    %170 = vector.broadcast %cst_58 : f32 to vector<4x256xf32>
    %171 = arith.minimumf %170, %169 : vector<4x256xf32>
    %172 = arith.index_cast %c2_i32_46 : i32 to index
    %c0_59 = arith.constant 0 : index
    %c0_60 = arith.constant 0 : index
    %173 = vector.load %arg3[%172, %c0_59, %c0_60] : memref<16x4x256xf32, #tpu.memory_space<vmem>>, vector<1x4x256xf32>
    %174 = vector.shape_cast %173 : vector<1x4x256xf32> to vector<4x256xf32>
    %175 = vector.broadcast %149 : f32 to vector<4x256xf32>
    %176 = arith.mulf %175, %164 : vector<4x256xf32>
    %177 = vector.broadcast %152 : f32 to vector<4x256xf32>
    %178 = arith.mulf %177, %171 : vector<4x256xf32>
    %179 = arith.addf %176, %178 : vector<4x256xf32>
    %cst_61 = arith.constant dense<0.000000e+00> : vector<32x256xf32>
    %180 = tpu.matmul %1, %179, %cst_61 {dimension_numbers = #tpu.dot_dimension_numbers<[1], [0], [0], [1], [0, 0, 1, 1], [], []>} : vector<32x4xf32>, vector<4x256xf32>, vector<32x256xf32> -> vector<32x256xf32>
    %cst_62 = arith.constant dense<0.000000e+00> : vector<32x256xf32>
    %181 = tpu.matmul %2, %174, %cst_62 {dimension_numbers = #tpu.dot_dimension_numbers<[1], [0], [0], [1], [0, 0, 1, 1], [], []>} : vector<32x4xf32>, vector<4x256xf32>, vector<32x256xf32> -> vector<32x256xf32>
    %182 = arith.addf %180, %181 : vector<32x256xf32>
    %183 = vector.broadcast %3 : vector<32x1xf32> to vector<32x256xf32>
    %184 = arith.addf %182, %183 : vector<32x256xf32>
    %185 = vector.broadcast %161 : f32 to vector<32x1xf32>
    %186 = arith.mulf %4, %185 : vector<32x1xf32>
    %187 = vector.broadcast %186 : vector<32x1xf32> to vector<32x256xf32>
    %188 = arith.addf %184, %187 : vector<32x256xf32>
    %cst_63 = arith.constant 0.000000e+00 : f32
    %189 = vector.broadcast %cst_63 : f32 to vector<32x256xf32>
    %190 = arith.maximumf %188, %189 : vector<32x256xf32>
    %cst_64 = arith.constant dense<0.000000e+00> : vector<4x256xf32>
    %191 = tpu.matmul %6, %190, %cst_64 {dimension_numbers = #tpu.dot_dimension_numbers<[1], [0], [0], [1], [0, 0, 1, 1], [], []>} : vector<4x32xf32>, vector<32x256xf32>, vector<4x256xf32> -> vector<4x256xf32>
    %192 = vector.broadcast %7 : vector<4x1xf32> to vector<4x256xf32>
    %193 = arith.addf %191, %192 : vector<4x256xf32>
    %cst_65 = arith.constant -2.000000e+01 : f32
    %cst_66 = arith.constant 2.000000e+01 : f32
    %194 = vector.broadcast %cst_65 : f32 to vector<4x256xf32>
    %195 = arith.maximumf %194, %193 : vector<4x256xf32>
    %196 = vector.broadcast %cst_66 : f32 to vector<4x256xf32>
    %197 = arith.minimumf %196, %195 : vector<4x256xf32>
    %198 = vector.broadcast %155 : f32 to vector<4x256xf32>
    %199 = arith.mulf %198, %179 : vector<4x256xf32>
    %200 = vector.broadcast %158 : f32 to vector<4x256xf32>
    %201 = arith.mulf %200, %197 : vector<4x256xf32>
    %202 = arith.subf %199, %201 : vector<4x256xf32>
    %203 = arith.index_cast %c2_i32_46 : i32 to index
    %c0_67 = arith.constant 0 : index
    %c0_68 = arith.constant 0 : index
    %204 = vector.load %arg7[%203, %c0_67, %c0_68] : memref<16x4x256xf32, #tpu.memory_space<vmem>>, vector<1x4x256xf32>
    %205 = vector.shape_cast %204 : vector<1x4x256xf32> to vector<4x256xf32>
    %206 = vector.shape_cast %202 : vector<4x256xf32> to vector<1x4x256xf32>
    tpu.vector_store %arg7[%203, %c0_67, %c0_68], %206 {strides = array<i32>} : memref<16x4x256xf32, #tpu.memory_space<vmem>>, vector<1x4x256xf32>,
    %207 = arith.subf %193, %171 : vector<4x256xf32>
    %208 = arith.mulf %207, %207 : vector<4x256xf32>
    %209 = arith.index_cast %c2_i32_46 : i32 to index
    %c0_69 = arith.constant 0 : index
    %c0_70 = arith.constant 0 : index
    %210 = vector.load %arg8[%209, %c0_69, %c0_70] : memref<16x4x256xf32, #tpu.memory_space<vmem>>, vector<1x4x256xf32>
    %211 = vector.shape_cast %210 : vector<1x4x256xf32> to vector<4x256xf32>
    %212 = vector.shape_cast %208 : vector<4x256xf32> to vector<1x4x256xf32>
    tpu.vector_store %arg8[%209, %c0_69, %c0_70], %212 {strides = array<i32>} : memref<16x4x256xf32, #tpu.memory_space<vmem>>, vector<1x4x256xf32>,
    %c3_i32_71 = arith.constant 3 : i32
    %213 = arith.addi %8, %c3_i32_71 : i32
    %c5_i32_72 = arith.constant 5 : i32
    %214 = arith.muli %213, %c5_i32_72 : i32
    %c0_i32_73 = arith.constant 0 : i32
    %215 = arith.addi %214, %c0_i32_73 : i32
    %216 = arith.index_cast %215 : i32 to index
    %217 = memref.load %arg1[%216] : memref<80xf32, #tpu.memory_space<smem>>
    %c1_i32_74 = arith.constant 1 : i32
    %218 = arith.addi %214, %c1_i32_74 : i32
    %219 = arith.index_cast %218 : i32 to index
    %220 = memref.load %arg1[%219] : memref<80xf32, #tpu.memory_space<smem>>
    %c2_i32_75 = arith.constant 2 : i32
    %221 = arith.addi %214, %c2_i32_75 : i32
    %222 = arith.index_cast %221 : i32 to index
    %223 = memref.load %arg1[%222] : memref<80xf32, #tpu.memory_space<smem>>
    %c3_i32_76 = arith.constant 3 : i32
    %224 = arith.addi %214, %c3_i32_76 : i32
    %225 = arith.index_cast %224 : i32 to index
    %226 = memref.load %arg1[%225] : memref<80xf32, #tpu.memory_space<smem>>
    %c4_i32_77 = arith.constant 4 : i32
    %227 = arith.addi %214, %c4_i32_77 : i32
    %228 = arith.index_cast %227 : i32 to index
    %229 = memref.load %arg1[%228] : memref<80xf32, #tpu.memory_space<smem>>
    %230 = arith.index_cast %c3_i32_71 : i32 to index
    %c0_78 = arith.constant 0 : index
    %c0_79 = arith.constant 0 : index
    %231 = vector.load %arg2[%230, %c0_78, %c0_79] : memref<16x4x256xf32, #tpu.memory_space<vmem>>, vector<1x4x256xf32>
    %232 = vector.shape_cast %231 : vector<1x4x256xf32> to vector<4x256xf32>
    %233 = arith.index_cast %c3_i32_71 : i32 to index
    %c0_80 = arith.constant 0 : index
    %c0_81 = arith.constant 0 : index
    %234 = vector.load %arg4[%233, %c0_80, %c0_81] : memref<16x4x256xf32, #tpu.memory_space<vmem>>, vector<1x4x256xf32>
    %235 = vector.shape_cast %234 : vector<1x4x256xf32> to vector<4x256xf32>
    %cst_82 = arith.constant -2.000000e+01 : f32
    %cst_83 = arith.constant 2.000000e+01 : f32
    %236 = vector.broadcast %cst_82 : f32 to vector<4x256xf32>
    %237 = arith.maximumf %236, %235 : vector<4x256xf32>
    %238 = vector.broadcast %cst_83 : f32 to vector<4x256xf32>
    %239 = arith.minimumf %238, %237 : vector<4x256xf32>
    %240 = arith.index_cast %c3_i32_71 : i32 to index
    %c0_84 = arith.constant 0 : index
    %c0_85 = arith.constant 0 : index
    %241 = vector.load %arg3[%240, %c0_84, %c0_85] : memref<16x4x256xf32, #tpu.memory_space<vmem>>, vector<1x4x256xf32>
    %242 = vector.shape_cast %241 : vector<1x4x256xf32> to vector<4x256xf32>
    %243 = vector.broadcast %217 : f32 to vector<4x256xf32>
    %244 = arith.mulf %243, %232 : vector<4x256xf32>
    %245 = vector.broadcast %220 : f32 to vector<4x256xf32>
    %246 = arith.mulf %245, %239 : vector<4x256xf32>
    %247 = arith.addf %244, %246 : vector<4x256xf32>
    %cst_86 = arith.constant dense<0.000000e+00> : vector<32x256xf32>
    %248 = tpu.matmul %1, %247, %cst_86 {dimension_numbers = #tpu.dot_dimension_numbers<[1], [0], [0], [1], [0, 0, 1, 1], [], []>} : vector<32x4xf32>, vector<4x256xf32>, vector<32x256xf32> -> vector<32x256xf32>
    %cst_87 = arith.constant dense<0.000000e+00> : vector<32x256xf32>
    %249 = tpu.matmul %2, %242, %cst_87 {dimension_numbers = #tpu.dot_dimension_numbers<[1], [0], [0], [1], [0, 0, 1, 1], [], []>} : vector<32x4xf32>, vector<4x256xf32>, vector<32x256xf32> -> vector<32x256xf32>
    %250 = arith.addf %248, %249 : vector<32x256xf32>
    %251 = vector.broadcast %3 : vector<32x1xf32> to vector<32x256xf32>
    %252 = arith.addf %250, %251 : vector<32x256xf32>
    %253 = vector.broadcast %229 : f32 to vector<32x1xf32>
    %254 = arith.mulf %4, %253 : vector<32x1xf32>
    %255 = vector.broadcast %254 : vector<32x1xf32> to vector<32x256xf32>
    %256 = arith.addf %252, %255 : vector<32x256xf32>
    %cst_88 = arith.constant 0.000000e+00 : f32
    %257 = vector.broadcast %cst_88 : f32 to vector<32x256xf32>
    %258 = arith.maximumf %256, %257 : vector<32x256xf32>
    %cst_89 = arith.constant dense<0.000000e+00> : vector<4x256xf32>
    %259 = tpu.matmul %6, %258, %cst_89 {dimension_numbers = #tpu.dot_dimension_numbers<[1], [0], [0], [1], [0, 0, 1, 1], [], []>} : vector<4x32xf32>, vector<32x256xf32>, vector<4x256xf32> -> vector<4x256xf32>
    %260 = vector.broadcast %7 : vector<4x1xf32> to vector<4x256xf32>
    %261 = arith.addf %259, %260 : vector<4x256xf32>
    %cst_90 = arith.constant -2.000000e+01 : f32
    %cst_91 = arith.constant 2.000000e+01 : f32
    %262 = vector.broadcast %cst_90 : f32 to vector<4x256xf32>
    %263 = arith.maximumf %262, %261 : vector<4x256xf32>
    %264 = vector.broadcast %cst_91 : f32 to vector<4x256xf32>
    %265 = arith.minimumf %264, %263 : vector<4x256xf32>
    %266 = vector.broadcast %223 : f32 to vector<4x256xf32>
    %267 = arith.mulf %266, %247 : vector<4x256xf32>
    %268 = vector.broadcast %226 : f32 to vector<4x256xf32>
    %269 = arith.mulf %268, %265 : vector<4x256xf32>
    %270 = arith.subf %267, %269 : vector<4x256xf32>
    %271 = arith.index_cast %c3_i32_71 : i32 to index
    %c0_92 = arith.constant 0 : index
    %c0_93 = arith.constant 0 : index
    %272 = vector.load %arg7[%271, %c0_92, %c0_93] : memref<16x4x256xf32, #tpu.memory_space<vmem>>, vector<1x4x256xf32>
    %273 = vector.shape_cast %272 : vector<1x4x256xf32> to vector<4x256xf32>
    %274 = vector.shape_cast %270 : vector<4x256xf32> to vector<1x4x256xf32>
    tpu.vector_store %arg7[%271, %c0_92, %c0_93], %274 {strides = array<i32>} : memref<16x4x256xf32, #tpu.memory_space<vmem>>, vector<1x4x256xf32>,
    %275 = arith.subf %261, %239 : vector<4x256xf32>
    %276 = arith.mulf %275, %275 : vector<4x256xf32>
    %277 = arith.index_cast %c3_i32_71 : i32 to index
    %c0_94 = arith.constant 0 : index
    %c0_95 = arith.constant 0 : index
    %278 = vector.load %arg8[%277, %c0_94, %c0_95] : memref<16x4x256xf32, #tpu.memory_space<vmem>>, vector<1x4x256xf32>
    %279 = vector.shape_cast %278 : vector<1x4x256xf32> to vector<4x256xf32>
    %280 = vector.shape_cast %276 : vector<4x256xf32> to vector<1x4x256xf32>
    tpu.vector_store %arg8[%277, %c0_94, %c0_95], %280 {strides = array<i32>} : memref<16x4x256xf32, #tpu.memory_space<vmem>>, vector<1x4x256xf32>,
    %c4_i32_96 = arith.constant 4 : i32
    %281 = arith.addi %8, %c4_i32_96 : i32
    %c5_i32_97 = arith.constant 5 : i32
    %282 = arith.muli %281, %c5_i32_97 : i32
    %c0_i32_98 = arith.constant 0 : i32
    %283 = arith.addi %282, %c0_i32_98 : i32
    %284 = arith.index_cast %283 : i32 to index
    %285 = memref.load %arg1[%284] : memref<80xf32, #tpu.memory_space<smem>>
    %c1_i32_99 = arith.constant 1 : i32
    %286 = arith.addi %282, %c1_i32_99 : i32
    %287 = arith.index_cast %286 : i32 to index
    %288 = memref.load %arg1[%287] : memref<80xf32, #tpu.memory_space<smem>>
    %c2_i32_100 = arith.constant 2 : i32
    %289 = arith.addi %282, %c2_i32_100 : i32
    %290 = arith.index_cast %289 : i32 to index
    %291 = memref.load %arg1[%290] : memref<80xf32, #tpu.memory_space<smem>>
    %c3_i32_101 = arith.constant 3 : i32
    %292 = arith.addi %282, %c3_i32_101 : i32
    %293 = arith.index_cast %292 : i32 to index
    %294 = memref.load %arg1[%293] : memref<80xf32, #tpu.memory_space<smem>>
    %c4_i32_102 = arith.constant 4 : i32
    %295 = arith.addi %282, %c4_i32_102 : i32
    %296 = arith.index_cast %295 : i32 to index
    %297 = memref.load %arg1[%296] : memref<80xf32, #tpu.memory_space<smem>>
    %298 = arith.index_cast %c4_i32_96 : i32 to index
    %c0_103 = arith.constant 0 : index
    %c0_104 = arith.constant 0 : index
    %299 = vector.load %arg2[%298, %c0_103, %c0_104] : memref<16x4x256xf32, #tpu.memory_space<vmem>>, vector<1x4x256xf32>
    %300 = vector.shape_cast %299 : vector<1x4x256xf32> to vector<4x256xf32>
    %301 = arith.index_cast %c4_i32_96 : i32 to index
    %c0_105 = arith.constant 0 : index
    %c0_106 = arith.constant 0 : index
    %302 = vector.load %arg4[%301, %c0_105, %c0_106] : memref<16x4x256xf32, #tpu.memory_space<vmem>>, vector<1x4x256xf32>
    %303 = vector.shape_cast %302 : vector<1x4x256xf32> to vector<4x256xf32>
    %cst_107 = arith.constant -2.000000e+01 : f32
    %cst_108 = arith.constant 2.000000e+01 : f32
    %304 = vector.broadcast %cst_107 : f32 to vector<4x256xf32>
    %305 = arith.maximumf %304, %303 : vector<4x256xf32>
    %306 = vector.broadcast %cst_108 : f32 to vector<4x256xf32>
    %307 = arith.minimumf %306, %305 : vector<4x256xf32>
    %308 = arith.index_cast %c4_i32_96 : i32 to index
    %c0_109 = arith.constant 0 : index
    %c0_110 = arith.constant 0 : index
    %309 = vector.load %arg3[%308, %c0_109, %c0_110] : memref<16x4x256xf32, #tpu.memory_space<vmem>>, vector<1x4x256xf32>
    %310 = vector.shape_cast %309 : vector<1x4x256xf32> to vector<4x256xf32>
    %311 = vector.broadcast %285 : f32 to vector<4x256xf32>
    %312 = arith.mulf %311, %300 : vector<4x256xf32>
    %313 = vector.broadcast %288 : f32 to vector<4x256xf32>
    %314 = arith.mulf %313, %307 : vector<4x256xf32>
    %315 = arith.addf %312, %314 : vector<4x256xf32>
    %cst_111 = arith.constant dense<0.000000e+00> : vector<32x256xf32>
    %316 = tpu.matmul %1, %315, %cst_111 {dimension_numbers = #tpu.dot_dimension_numbers<[1], [0], [0], [1], [0, 0, 1, 1], [], []>} : vector<32x4xf32>, vector<4x256xf32>, vector<32x256xf32> -> vector<32x256xf32>
    %cst_112 = arith.constant dense<0.000000e+00> : vector<32x256xf32>
    %317 = tpu.matmul %2, %310, %cst_112 {dimension_numbers = #tpu.dot_dimension_numbers<[1], [0], [0], [1], [0, 0, 1, 1], [], []>} : vector<32x4xf32>, vector<4x256xf32>, vector<32x256xf32> -> vector<32x256xf32>
    %318 = arith.addf %316, %317 : vector<32x256xf32>
    %319 = vector.broadcast %3 : vector<32x1xf32> to vector<32x256xf32>
    %320 = arith.addf %318, %319 : vector<32x256xf32>
    %321 = vector.broadcast %297 : f32 to vector<32x1xf32>
    %322 = arith.mulf %4, %321 : vector<32x1xf32>
    %323 = vector.broadcast %322 : vector<32x1xf32> to vector<32x256xf32>
    %324 = arith.addf %320, %323 : vector<32x256xf32>
    %cst_113 = arith.constant 0.000000e+00 : f32
    %325 = vector.broadcast %cst_113 : f32 to vector<32x256xf32>
    %326 = arith.maximumf %324, %325 : vector<32x256xf32>
    %cst_114 = arith.constant dense<0.000000e+00> : vector<4x256xf32>
    %327 = tpu.matmul %6, %326, %cst_114 {dimension_numbers = #tpu.dot_dimension_numbers<[1], [0], [0], [1], [0, 0, 1, 1], [], []>} : vector<4x32xf32>, vector<32x256xf32>, vector<4x256xf32> -> vector<4x256xf32>
    %328 = vector.broadcast %7 : vector<4x1xf32> to vector<4x256xf32>
    %329 = arith.addf %327, %328 : vector<4x256xf32>
    %cst_115 = arith.constant -2.000000e+01 : f32
    %cst_116 = arith.constant 2.000000e+01 : f32
    %330 = vector.broadcast %cst_115 : f32 to vector<4x256xf32>
    %331 = arith.maximumf %330, %329 : vector<4x256xf32>
    %332 = vector.broadcast %cst_116 : f32 to vector<4x256xf32>
    %333 = arith.minimumf %332, %331 : vector<4x256xf32>
    %334 = vector.broadcast %291 : f32 to vector<4x256xf32>
    %335 = arith.mulf %334, %315 : vector<4x256xf32>
    %336 = vector.broadcast %294 : f32 to vector<4x256xf32>
    %337 = arith.mulf %336, %333 : vector<4x256xf32>
    %338 = arith.subf %335, %337 : vector<4x256xf32>
    %339 = arith.index_cast %c4_i32_96 : i32 to index
    %c0_117 = arith.constant 0 : index
    %c0_118 = arith.constant 0 : index
    %340 = vector.load %arg7[%339, %c0_117, %c0_118] : memref<16x4x256xf32, #tpu.memory_space<vmem>>, vector<1x4x256xf32>
    %341 = vector.shape_cast %340 : vector<1x4x256xf32> to vector<4x256xf32>
    %342 = vector.shape_cast %338 : vector<4x256xf32> to vector<1x4x256xf32>
    tpu.vector_store %arg7[%339, %c0_117, %c0_118], %342 {strides = array<i32>} : memref<16x4x256xf32, #tpu.memory_space<vmem>>, vector<1x4x256xf32>,
    %343 = arith.subf %329, %307 : vector<4x256xf32>
    %344 = arith.mulf %343, %343 : vector<4x256xf32>
    %345 = arith.index_cast %c4_i32_96 : i32 to index
    %c0_119 = arith.constant 0 : index
    %c0_120 = arith.constant 0 : index
    %346 = vector.load %arg8[%345, %c0_119, %c0_120] : memref<16x4x256xf32, #tpu.memory_space<vmem>>, vector<1x4x256xf32>
    %347 = vector.shape_cast %346 : vector<1x4x256xf32> to vector<4x256xf32>
    %348 = vector.shape_cast %344 : vector<4x256xf32> to vector<1x4x256xf32>
    tpu.vector_store %arg8[%345, %c0_119, %c0_120], %348 {strides = array<i32>} : memref<16x4x256xf32, #tpu.memory_space<vmem>>, vector<1x4x256xf32>,
    %c5_i32_121 = arith.constant 5 : i32
    %349 = arith.addi %8, %c5_i32_121 : i32
    %c5_i32_122 = arith.constant 5 : i32
    %350 = arith.muli %349, %c5_i32_122 : i32
    %c0_i32_123 = arith.constant 0 : i32
    %351 = arith.addi %350, %c0_i32_123 : i32
    %352 = arith.index_cast %351 : i32 to index
    %353 = memref.load %arg1[%352] : memref<80xf32, #tpu.memory_space<smem>>
    %c1_i32_124 = arith.constant 1 : i32
    %354 = arith.addi %350, %c1_i32_124 : i32
    %355 = arith.index_cast %354 : i32 to index
    %356 = memref.load %arg1[%355] : memref<80xf32, #tpu.memory_space<smem>>
    %c2_i32_125 = arith.constant 2 : i32
    %357 = arith.addi %350, %c2_i32_125 : i32
    %358 = arith.index_cast %357 : i32 to index
    %359 = memref.load %arg1[%358] : memref<80xf32, #tpu.memory_space<smem>>
    %c3_i32_126 = arith.constant 3 : i32
    %360 = arith.addi %350, %c3_i32_126 : i32
    %361 = arith.index_cast %360 : i32 to index
    %362 = memref.load %arg1[%361] : memref<80xf32, #tpu.memory_space<smem>>
    %c4_i32_127 = arith.constant 4 : i32
    %363 = arith.addi %350, %c4_i32_127 : i32
    %364 = arith.index_cast %363 : i32 to index
    %365 = memref.load %arg1[%364] : memref<80xf32, #tpu.memory_space<smem>>
    %366 = arith.index_cast %c5_i32_121 : i32 to index
    %c0_128 = arith.constant 0 : index
    %c0_129 = arith.constant 0 : index
    %367 = vector.load %arg2[%366, %c0_128, %c0_129] : memref<16x4x256xf32, #tpu.memory_space<vmem>>, vector<1x4x256xf32>
    %368 = vector.shape_cast %367 : vector<1x4x256xf32> to vector<4x256xf32>
    %369 = arith.index_cast %c5_i32_121 : i32 to index
    %c0_130 = arith.constant 0 : index
    %c0_131 = arith.constant 0 : index
    %370 = vector.load %arg4[%369, %c0_130, %c0_131] : memref<16x4x256xf32, #tpu.memory_space<vmem>>, vector<1x4x256xf32>
    %371 = vector.shape_cast %370 : vector<1x4x256xf32> to vector<4x256xf32>
    %cst_132 = arith.constant -2.000000e+01 : f32
    %cst_133 = arith.constant 2.000000e+01 : f32
    %372 = vector.broadcast %cst_132 : f32 to vector<4x256xf32>
    %373 = arith.maximumf %372, %371 : vector<4x256xf32>
    %374 = vector.broadcast %cst_133 : f32 to vector<4x256xf32>
    %375 = arith.minimumf %374, %373 : vector<4x256xf32>
    %376 = arith.index_cast %c5_i32_121 : i32 to index
    %c0_134 = arith.constant 0 : index
    %c0_135 = arith.constant 0 : index
    %377 = vector.load %arg3[%376, %c0_134, %c0_135] : memref<16x4x256xf32, #tpu.memory_space<vmem>>, vector<1x4x256xf32>
    %378 = vector.shape_cast %377 : vector<1x4x256xf32> to vector<4x256xf32>
    %379 = vector.broadcast %353 : f32 to vector<4x256xf32>
    %380 = arith.mulf %379, %368 : vector<4x256xf32>
    %381 = vector.broadcast %356 : f32 to vector<4x256xf32>
    %382 = arith.mulf %381, %375 : vector<4x256xf32>
    %383 = arith.addf %380, %382 : vector<4x256xf32>
    %cst_136 = arith.constant dense<0.000000e+00> : vector<32x256xf32>
    %384 = tpu.matmul %1, %383, %cst_136 {dimension_numbers = #tpu.dot_dimension_numbers<[1], [0], [0], [1], [0, 0, 1, 1], [], []>} : vector<32x4xf32>, vector<4x256xf32>, vector<32x256xf32> -> vector<32x256xf32>
    %cst_137 = arith.constant dense<0.000000e+00> : vector<32x256xf32>
    %385 = tpu.matmul %2, %378, %cst_137 {dimension_numbers = #tpu.dot_dimension_numbers<[1], [0], [0], [1], [0, 0, 1, 1], [], []>} : vector<32x4xf32>, vector<4x256xf32>, vector<32x256xf32> -> vector<32x256xf32>
    %386 = arith.addf %384, %385 : vector<32x256xf32>
    %387 = vector.broadcast %3 : vector<32x1xf32> to vector<32x256xf32>
    %388 = arith.addf %386, %387 : vector<32x256xf32>
    %389 = vector.broadcast %365 : f32 to vector<32x1xf32>
    %390 = arith.mulf %4, %389 : vector<32x1xf32>
    %391 = vector.broadcast %390 : vector<32x1xf32> to vector<32x256xf32>
    %392 = arith.addf %388, %391 : vector<32x256xf32>
    %cst_138 = arith.constant 0.000000e+00 : f32
    %393 = vector.broadcast %cst_138 : f32 to vector<32x256xf32>
    %394 = arith.maximumf %392, %393 : vector<32x256xf32>
    %cst_139 = arith.constant dense<0.000000e+00> : vector<4x256xf32>
    %395 = tpu.matmul %6, %394, %cst_139 {dimension_numbers = #tpu.dot_dimension_numbers<[1], [0], [0], [1], [0, 0, 1, 1], [], []>} : vector<4x32xf32>, vector<32x256xf32>, vector<4x256xf32> -> vector<4x256xf32>
    %396 = vector.broadcast %7 : vector<4x1xf32> to vector<4x256xf32>
    %397 = arith.addf %395, %396 : vector<4x256xf32>
    %cst_140 = arith.constant -2.000000e+01 : f32
    %cst_141 = arith.constant 2.000000e+01 : f32
    %398 = vector.broadcast %cst_140 : f32 to vector<4x256xf32>
    %399 = arith.maximumf %398, %397 : vector<4x256xf32>
    %400 = vector.broadcast %cst_141 : f32 to vector<4x256xf32>
    %401 = arith.minimumf %400, %399 : vector<4x256xf32>
    %402 = vector.broadcast %359 : f32 to vector<4x256xf32>
    %403 = arith.mulf %402, %383 : vector<4x256xf32>
    %404 = vector.broadcast %362 : f32 to vector<4x256xf32>
    %405 = arith.mulf %404, %401 : vector<4x256xf32>
    %406 = arith.subf %403, %405 : vector<4x256xf32>
    %407 = arith.index_cast %c5_i32_121 : i32 to index
    %c0_142 = arith.constant 0 : index
    %c0_143 = arith.constant 0 : index
    %408 = vector.load %arg7[%407, %c0_142, %c0_143] : memref<16x4x256xf32, #tpu.memory_space<vmem>>, vector<1x4x256xf32>
    %409 = vector.shape_cast %408 : vector<1x4x256xf32> to vector<4x256xf32>
    %410 = vector.shape_cast %406 : vector<4x256xf32> to vector<1x4x256xf32>
    tpu.vector_store %arg7[%407, %c0_142, %c0_143], %410 {strides = array<i32>} : memref<16x4x256xf32, #tpu.memory_space<vmem>>, vector<1x4x256xf32>,
    %411 = arith.subf %397, %375 : vector<4x256xf32>
    %412 = arith.mulf %411, %411 : vector<4x256xf32>
    %413 = arith.index_cast %c5_i32_121 : i32 to index
    %c0_144 = arith.constant 0 : index
    %c0_145 = arith.constant 0 : index
    %414 = vector.load %arg8[%413, %c0_144, %c0_145] : memref<16x4x256xf32, #tpu.memory_space<vmem>>, vector<1x4x256xf32>
    %415 = vector.shape_cast %414 : vector<1x4x256xf32> to vector<4x256xf32>
    %416 = vector.shape_cast %412 : vector<4x256xf32> to vector<1x4x256xf32>
    tpu.vector_store %arg8[%413, %c0_144, %c0_145], %416 {strides = array<i32>} : memref<16x4x256xf32, #tpu.memory_space<vmem>>, vector<1x4x256xf32>,
    %c6_i32 = arith.constant 6 : i32
    %417 = arith.addi %8, %c6_i32 : i32
    %c5_i32_146 = arith.constant 5 : i32
    %418 = arith.muli %417, %c5_i32_146 : i32
    %c0_i32_147 = arith.constant 0 : i32
    %419 = arith.addi %418, %c0_i32_147 : i32
    %420 = arith.index_cast %419 : i32 to index
    %421 = memref.load %arg1[%420] : memref<80xf32, #tpu.memory_space<smem>>
    %c1_i32_148 = arith.constant 1 : i32
    %422 = arith.addi %418, %c1_i32_148 : i32
    %423 = arith.index_cast %422 : i32 to index
    %424 = memref.load %arg1[%423] : memref<80xf32, #tpu.memory_space<smem>>
    %c2_i32_149 = arith.constant 2 : i32
    %425 = arith.addi %418, %c2_i32_149 : i32
    %426 = arith.index_cast %425 : i32 to index
    %427 = memref.load %arg1[%426] : memref<80xf32, #tpu.memory_space<smem>>
    %c3_i32_150 = arith.constant 3 : i32
    %428 = arith.addi %418, %c3_i32_150 : i32
    %429 = arith.index_cast %428 : i32 to index
    %430 = memref.load %arg1[%429] : memref<80xf32, #tpu.memory_space<smem>>
    %c4_i32_151 = arith.constant 4 : i32
    %431 = arith.addi %418, %c4_i32_151 : i32
    %432 = arith.index_cast %431 : i32 to index
    %433 = memref.load %arg1[%432] : memref<80xf32, #tpu.memory_space<smem>>
    %434 = arith.index_cast %c6_i32 : i32 to index
    %c0_152 = arith.constant 0 : index
    %c0_153 = arith.constant 0 : index
    %435 = vector.load %arg2[%434, %c0_152, %c0_153] : memref<16x4x256xf32, #tpu.memory_space<vmem>>, vector<1x4x256xf32>
    %436 = vector.shape_cast %435 : vector<1x4x256xf32> to vector<4x256xf32>
    %437 = arith.index_cast %c6_i32 : i32 to index
    %c0_154 = arith.constant 0 : index
    %c0_155 = arith.constant 0 : index
    %438 = vector.load %arg4[%437, %c0_154, %c0_155] : memref<16x4x256xf32, #tpu.memory_space<vmem>>, vector<1x4x256xf32>
    %439 = vector.shape_cast %438 : vector<1x4x256xf32> to vector<4x256xf32>
    %cst_156 = arith.constant -2.000000e+01 : f32
    %cst_157 = arith.constant 2.000000e+01 : f32
    %440 = vector.broadcast %cst_156 : f32 to vector<4x256xf32>
    %441 = arith.maximumf %440, %439 : vector<4x256xf32>
    %442 = vector.broadcast %cst_157 : f32 to vector<4x256xf32>
    %443 = arith.minimumf %442, %441 : vector<4x256xf32>
    %444 = arith.index_cast %c6_i32 : i32 to index
    %c0_158 = arith.constant 0 : index
    %c0_159 = arith.constant 0 : index
    %445 = vector.load %arg3[%444, %c0_158, %c0_159] : memref<16x4x256xf32, #tpu.memory_space<vmem>>, vector<1x4x256xf32>
    %446 = vector.shape_cast %445 : vector<1x4x256xf32> to vector<4x256xf32>
    %447 = vector.broadcast %421 : f32 to vector<4x256xf32>
    %448 = arith.mulf %447, %436 : vector<4x256xf32>
    %449 = vector.broadcast %424 : f32 to vector<4x256xf32>
    %450 = arith.mulf %449, %443 : vector<4x256xf32>
    %451 = arith.addf %448, %450 : vector<4x256xf32>
    %cst_160 = arith.constant dense<0.000000e+00> : vector<32x256xf32>
    %452 = tpu.matmul %1, %451, %cst_160 {dimension_numbers = #tpu.dot_dimension_numbers<[1], [0], [0], [1], [0, 0, 1, 1], [], []>} : vector<32x4xf32>, vector<4x256xf32>, vector<32x256xf32> -> vector<32x256xf32>
    %cst_161 = arith.constant dense<0.000000e+00> : vector<32x256xf32>
    %453 = tpu.matmul %2, %446, %cst_161 {dimension_numbers = #tpu.dot_dimension_numbers<[1], [0], [0], [1], [0, 0, 1, 1], [], []>} : vector<32x4xf32>, vector<4x256xf32>, vector<32x256xf32> -> vector<32x256xf32>
    %454 = arith.addf %452, %453 : vector<32x256xf32>
    %455 = vector.broadcast %3 : vector<32x1xf32> to vector<32x256xf32>
    %456 = arith.addf %454, %455 : vector<32x256xf32>
    %457 = vector.broadcast %433 : f32 to vector<32x1xf32>
    %458 = arith.mulf %4, %457 : vector<32x1xf32>
    %459 = vector.broadcast %458 : vector<32x1xf32> to vector<32x256xf32>
    %460 = arith.addf %456, %459 : vector<32x256xf32>
    %cst_162 = arith.constant 0.000000e+00 : f32
    %461 = vector.broadcast %cst_162 : f32 to vector<32x256xf32>
    %462 = arith.maximumf %460, %461 : vector<32x256xf32>
    %cst_163 = arith.constant dense<0.000000e+00> : vector<4x256xf32>
    %463 = tpu.matmul %6, %462, %cst_163 {dimension_numbers = #tpu.dot_dimension_numbers<[1], [0], [0], [1], [0, 0, 1, 1], [], []>} : vector<4x32xf32>, vector<32x256xf32>, vector<4x256xf32> -> vector<4x256xf32>
    %464 = vector.broadcast %7 : vector<4x1xf32> to vector<4x256xf32>
    %465 = arith.addf %463, %464 : vector<4x256xf32>
    %cst_164 = arith.constant -2.000000e+01 : f32
    %cst_165 = arith.constant 2.000000e+01 : f32
    %466 = vector.broadcast %cst_164 : f32 to vector<4x256xf32>
    %467 = arith.maximumf %466, %465 : vector<4x256xf32>
    %468 = vector.broadcast %cst_165 : f32 to vector<4x256xf32>
    %469 = arith.minimumf %468, %467 : vector<4x256xf32>
    %470 = vector.broadcast %427 : f32 to vector<4x256xf32>
    %471 = arith.mulf %470, %451 : vector<4x256xf32>
    %472 = vector.broadcast %430 : f32 to vector<4x256xf32>
    %473 = arith.mulf %472, %469 : vector<4x256xf32>
    %474 = arith.subf %471, %473 : vector<4x256xf32>
    %475 = arith.index_cast %c6_i32 : i32 to index
    %c0_166 = arith.constant 0 : index
    %c0_167 = arith.constant 0 : index
    %476 = vector.load %arg7[%475, %c0_166, %c0_167] : memref<16x4x256xf32, #tpu.memory_space<vmem>>, vector<1x4x256xf32>
    %477 = vector.shape_cast %476 : vector<1x4x256xf32> to vector<4x256xf32>
    %478 = vector.shape_cast %474 : vector<4x256xf32> to vector<1x4x256xf32>
    tpu.vector_store %arg7[%475, %c0_166, %c0_167], %478 {strides = array<i32>} : memref<16x4x256xf32, #tpu.memory_space<vmem>>, vector<1x4x256xf32>,
    %479 = arith.subf %465, %443 : vector<4x256xf32>
    %480 = arith.mulf %479, %479 : vector<4x256xf32>
    %481 = arith.index_cast %c6_i32 : i32 to index
    %c0_168 = arith.constant 0 : index
    %c0_169 = arith.constant 0 : index
    %482 = vector.load %arg8[%481, %c0_168, %c0_169] : memref<16x4x256xf32, #tpu.memory_space<vmem>>, vector<1x4x256xf32>
    %483 = vector.shape_cast %482 : vector<1x4x256xf32> to vector<4x256xf32>
    %484 = vector.shape_cast %480 : vector<4x256xf32> to vector<1x4x256xf32>
    tpu.vector_store %arg8[%481, %c0_168, %c0_169], %484 {strides = array<i32>} : memref<16x4x256xf32, #tpu.memory_space<vmem>>, vector<1x4x256xf32>,
    %c7_i32 = arith.constant 7 : i32
    %485 = arith.addi %8, %c7_i32 : i32
    %c5_i32_170 = arith.constant 5 : i32
    %486 = arith.muli %485, %c5_i32_170 : i32
    %c0_i32_171 = arith.constant 0 : i32
    %487 = arith.addi %486, %c0_i32_171 : i32
    %488 = arith.index_cast %487 : i32 to index
    %489 = memref.load %arg1[%488] : memref<80xf32, #tpu.memory_space<smem>>
    %c1_i32_172 = arith.constant 1 : i32
    %490 = arith.addi %486, %c1_i32_172 : i32
    %491 = arith.index_cast %490 : i32 to index
    %492 = memref.load %arg1[%491] : memref<80xf32, #tpu.memory_space<smem>>
    %c2_i32_173 = arith.constant 2 : i32
    %493 = arith.addi %486, %c2_i32_173 : i32
    %494 = arith.index_cast %493 : i32 to index
    %495 = memref.load %arg1[%494] : memref<80xf32, #tpu.memory_space<smem>>
    %c3_i32_174 = arith.constant 3 : i32
    %496 = arith.addi %486, %c3_i32_174 : i32
    %497 = arith.index_cast %496 : i32 to index
    %498 = memref.load %arg1[%497] : memref<80xf32, #tpu.memory_space<smem>>
    %c4_i32_175 = arith.constant 4 : i32
    %499 = arith.addi %486, %c4_i32_175 : i32
    %500 = arith.index_cast %499 : i32 to index
    %501 = memref.load %arg1[%500] : memref<80xf32, #tpu.memory_space<smem>>
    %502 = arith.index_cast %c7_i32 : i32 to index
    %c0_176 = arith.constant 0 : index
    %c0_177 = arith.constant 0 : index
    %503 = vector.load %arg2[%502, %c0_176, %c0_177] : memref<16x4x256xf32, #tpu.memory_space<vmem>>, vector<1x4x256xf32>
    %504 = vector.shape_cast %503 : vector<1x4x256xf32> to vector<4x256xf32>
    %505 = arith.index_cast %c7_i32 : i32 to index
    %c0_178 = arith.constant 0 : index
    %c0_179 = arith.constant 0 : index
    %506 = vector.load %arg4[%505, %c0_178, %c0_179] : memref<16x4x256xf32, #tpu.memory_space<vmem>>, vector<1x4x256xf32>
    %507 = vector.shape_cast %506 : vector<1x4x256xf32> to vector<4x256xf32>
    %cst_180 = arith.constant -2.000000e+01 : f32
    %cst_181 = arith.constant 2.000000e+01 : f32
    %508 = vector.broadcast %cst_180 : f32 to vector<4x256xf32>
    %509 = arith.maximumf %508, %507 : vector<4x256xf32>
    %510 = vector.broadcast %cst_181 : f32 to vector<4x256xf32>
    %511 = arith.minimumf %510, %509 : vector<4x256xf32>
    %512 = arith.index_cast %c7_i32 : i32 to index
    %c0_182 = arith.constant 0 : index
    %c0_183 = arith.constant 0 : index
    %513 = vector.load %arg3[%512, %c0_182, %c0_183] : memref<16x4x256xf32, #tpu.memory_space<vmem>>, vector<1x4x256xf32>
    %514 = vector.shape_cast %513 : vector<1x4x256xf32> to vector<4x256xf32>
    %515 = vector.broadcast %489 : f32 to vector<4x256xf32>
    %516 = arith.mulf %515, %504 : vector<4x256xf32>
    %517 = vector.broadcast %492 : f32 to vector<4x256xf32>
    %518 = arith.mulf %517, %511 : vector<4x256xf32>
    %519 = arith.addf %516, %518 : vector<4x256xf32>
    %cst_184 = arith.constant dense<0.000000e+00> : vector<32x256xf32>
    %520 = tpu.matmul %1, %519, %cst_184 {dimension_numbers = #tpu.dot_dimension_numbers<[1], [0], [0], [1], [0, 0, 1, 1], [], []>} : vector<32x4xf32>, vector<4x256xf32>, vector<32x256xf32> -> vector<32x256xf32>
    %cst_185 = arith.constant dense<0.000000e+00> : vector<32x256xf32>
    %521 = tpu.matmul %2, %514, %cst_185 {dimension_numbers = #tpu.dot_dimension_numbers<[1], [0], [0], [1], [0, 0, 1, 1], [], []>} : vector<32x4xf32>, vector<4x256xf32>, vector<32x256xf32> -> vector<32x256xf32>
    %522 = arith.addf %520, %521 : vector<32x256xf32>
    %523 = vector.broadcast %3 : vector<32x1xf32> to vector<32x256xf32>
    %524 = arith.addf %522, %523 : vector<32x256xf32>
    %525 = vector.broadcast %501 : f32 to vector<32x1xf32>
    %526 = arith.mulf %4, %525 : vector<32x1xf32>
    %527 = vector.broadcast %526 : vector<32x1xf32> to vector<32x256xf32>
    %528 = arith.addf %524, %527 : vector<32x256xf32>
    %cst_186 = arith.constant 0.000000e+00 : f32
    %529 = vector.broadcast %cst_186 : f32 to vector<32x256xf32>
    %530 = arith.maximumf %528, %529 : vector<32x256xf32>
    %cst_187 = arith.constant dense<0.000000e+00> : vector<4x256xf32>
    %531 = tpu.matmul %6, %530, %cst_187 {dimension_numbers = #tpu.dot_dimension_numbers<[1], [0], [0], [1], [0, 0, 1, 1], [], []>} : vector<4x32xf32>, vector<32x256xf32>, vector<4x256xf32> -> vector<4x256xf32>
    %532 = vector.broadcast %7 : vector<4x1xf32> to vector<4x256xf32>
    %533 = arith.addf %531, %532 : vector<4x256xf32>
    %cst_188 = arith.constant -2.000000e+01 : f32
    %cst_189 = arith.constant 2.000000e+01 : f32
    %534 = vector.broadcast %cst_188 : f32 to vector<4x256xf32>
    %535 = arith.maximumf %534, %533 : vector<4x256xf32>
    %536 = vector.broadcast %cst_189 : f32 to vector<4x256xf32>
    %537 = arith.minimumf %536, %535 : vector<4x256xf32>
    %538 = vector.broadcast %495 : f32 to vector<4x256xf32>
    %539 = arith.mulf %538, %519 : vector<4x256xf32>
    %540 = vector.broadcast %498 : f32 to vector<4x256xf32>
    %541 = arith.mulf %540, %537 : vector<4x256xf32>
    %542 = arith.subf %539, %541 : vector<4x256xf32>
    %543 = arith.index_cast %c7_i32 : i32 to index
    %c0_190 = arith.constant 0 : index
    %c0_191 = arith.constant 0 : index
    %544 = vector.load %arg7[%543, %c0_190, %c0_191] : memref<16x4x256xf32, #tpu.memory_space<vmem>>, vector<1x4x256xf32>
    %545 = vector.shape_cast %544 : vector<1x4x256xf32> to vector<4x256xf32>
    %546 = vector.shape_cast %542 : vector<4x256xf32> to vector<1x4x256xf32>
    tpu.vector_store %arg7[%543, %c0_190, %c0_191], %546 {strides = array<i32>} : memref<16x4x256xf32, #tpu.memory_space<vmem>>, vector<1x4x256xf32>,
    %547 = arith.subf %533, %511 : vector<4x256xf32>
    %548 = arith.mulf %547, %547 : vector<4x256xf32>
    %549 = arith.index_cast %c7_i32 : i32 to index
    %c0_192 = arith.constant 0 : index
    %c0_193 = arith.constant 0 : index
    %550 = vector.load %arg8[%549, %c0_192, %c0_193] : memref<16x4x256xf32, #tpu.memory_space<vmem>>, vector<1x4x256xf32>
    %551 = vector.shape_cast %550 : vector<1x4x256xf32> to vector<4x256xf32>
    %552 = vector.shape_cast %548 : vector<4x256xf32> to vector<1x4x256xf32>
    tpu.vector_store %arg8[%549, %c0_192, %c0_193], %552 {strides = array<i32>} : memref<16x4x256xf32, #tpu.memory_space<vmem>>, vector<1x4x256xf32>,
    %c8_i32 = arith.constant 8 : i32
    %553 = arith.addi %8, %c8_i32 : i32
    %c5_i32_194 = arith.constant 5 : i32
    %554 = arith.muli %553, %c5_i32_194 : i32
    %c0_i32_195 = arith.constant 0 : i32
    %555 = arith.addi %554, %c0_i32_195 : i32
    %556 = arith.index_cast %555 : i32 to index
    %557 = memref.load %arg1[%556] : memref<80xf32, #tpu.memory_space<smem>>
    %c1_i32_196 = arith.constant 1 : i32
    %558 = arith.addi %554, %c1_i32_196 : i32
    %559 = arith.index_cast %558 : i32 to index
    %560 = memref.load %arg1[%559] : memref<80xf32, #tpu.memory_space<smem>>
    %c2_i32_197 = arith.constant 2 : i32
    %561 = arith.addi %554, %c2_i32_197 : i32
    %562 = arith.index_cast %561 : i32 to index
    %563 = memref.load %arg1[%562] : memref<80xf32, #tpu.memory_space<smem>>
    %c3_i32_198 = arith.constant 3 : i32
    %564 = arith.addi %554, %c3_i32_198 : i32
    %565 = arith.index_cast %564 : i32 to index
    %566 = memref.load %arg1[%565] : memref<80xf32, #tpu.memory_space<smem>>
    %c4_i32_199 = arith.constant 4 : i32
    %567 = arith.addi %554, %c4_i32_199 : i32
    %568 = arith.index_cast %567 : i32 to index
    %569 = memref.load %arg1[%568] : memref<80xf32, #tpu.memory_space<smem>>
    %570 = arith.index_cast %c8_i32 : i32 to index
    %c0_200 = arith.constant 0 : index
    %c0_201 = arith.constant 0 : index
    %571 = vector.load %arg2[%570, %c0_200, %c0_201] : memref<16x4x256xf32, #tpu.memory_space<vmem>>, vector<1x4x256xf32>
    %572 = vector.shape_cast %571 : vector<1x4x256xf32> to vector<4x256xf32>
    %573 = arith.index_cast %c8_i32 : i32 to index
    %c0_202 = arith.constant 0 : index
    %c0_203 = arith.constant 0 : index
    %574 = vector.load %arg4[%573, %c0_202, %c0_203] : memref<16x4x256xf32, #tpu.memory_space<vmem>>, vector<1x4x256xf32>
    %575 = vector.shape_cast %574 : vector<1x4x256xf32> to vector<4x256xf32>
    %cst_204 = arith.constant -2.000000e+01 : f32
    %cst_205 = arith.constant 2.000000e+01 : f32
    %576 = vector.broadcast %cst_204 : f32 to vector<4x256xf32>
    %577 = arith.maximumf %576, %575 : vector<4x256xf32>
    %578 = vector.broadcast %cst_205 : f32 to vector<4x256xf32>
    %579 = arith.minimumf %578, %577 : vector<4x256xf32>
    %580 = arith.index_cast %c8_i32 : i32 to index
    %c0_206 = arith.constant 0 : index
    %c0_207 = arith.constant 0 : index
    %581 = vector.load %arg3[%580, %c0_206, %c0_207] : memref<16x4x256xf32, #tpu.memory_space<vmem>>, vector<1x4x256xf32>
    %582 = vector.shape_cast %581 : vector<1x4x256xf32> to vector<4x256xf32>
    %583 = vector.broadcast %557 : f32 to vector<4x256xf32>
    %584 = arith.mulf %583, %572 : vector<4x256xf32>
    %585 = vector.broadcast %560 : f32 to vector<4x256xf32>
    %586 = arith.mulf %585, %579 : vector<4x256xf32>
    %587 = arith.addf %584, %586 : vector<4x256xf32>
    %cst_208 = arith.constant dense<0.000000e+00> : vector<32x256xf32>
    %588 = tpu.matmul %1, %587, %cst_208 {dimension_numbers = #tpu.dot_dimension_numbers<[1], [0], [0], [1], [0, 0, 1, 1], [], []>} : vector<32x4xf32>, vector<4x256xf32>, vector<32x256xf32> -> vector<32x256xf32>
    %cst_209 = arith.constant dense<0.000000e+00> : vector<32x256xf32>
    %589 = tpu.matmul %2, %582, %cst_209 {dimension_numbers = #tpu.dot_dimension_numbers<[1], [0], [0], [1], [0, 0, 1, 1], [], []>} : vector<32x4xf32>, vector<4x256xf32>, vector<32x256xf32> -> vector<32x256xf32>
    %590 = arith.addf %588, %589 : vector<32x256xf32>
    %591 = vector.broadcast %3 : vector<32x1xf32> to vector<32x256xf32>
    %592 = arith.addf %590, %591 : vector<32x256xf32>
    %593 = vector.broadcast %569 : f32 to vector<32x1xf32>
    %594 = arith.mulf %4, %593 : vector<32x1xf32>
    %595 = vector.broadcast %594 : vector<32x1xf32> to vector<32x256xf32>
    %596 = arith.addf %592, %595 : vector<32x256xf32>
    %cst_210 = arith.constant 0.000000e+00 : f32
    %597 = vector.broadcast %cst_210 : f32 to vector<32x256xf32>
    %598 = arith.maximumf %596, %597 : vector<32x256xf32>
    %cst_211 = arith.constant dense<0.000000e+00> : vector<4x256xf32>
    %599 = tpu.matmul %6, %598, %cst_211 {dimension_numbers = #tpu.dot_dimension_numbers<[1], [0], [0], [1], [0, 0, 1, 1], [], []>} : vector<4x32xf32>, vector<32x256xf32>, vector<4x256xf32> -> vector<4x256xf32>
    %600 = vector.broadcast %7 : vector<4x1xf32> to vector<4x256xf32>
    %601 = arith.addf %599, %600 : vector<4x256xf32>
    %cst_212 = arith.constant -2.000000e+01 : f32
    %cst_213 = arith.constant 2.000000e+01 : f32
    %602 = vector.broadcast %cst_212 : f32 to vector<4x256xf32>
    %603 = arith.maximumf %602, %601 : vector<4x256xf32>
    %604 = vector.broadcast %cst_213 : f32 to vector<4x256xf32>
    %605 = arith.minimumf %604, %603 : vector<4x256xf32>
    %606 = vector.broadcast %563 : f32 to vector<4x256xf32>
    %607 = arith.mulf %606, %587 : vector<4x256xf32>
    %608 = vector.broadcast %566 : f32 to vector<4x256xf32>
    %609 = arith.mulf %608, %605 : vector<4x256xf32>
    %610 = arith.subf %607, %609 : vector<4x256xf32>
    %611 = arith.index_cast %c8_i32 : i32 to index
    %c0_214 = arith.constant 0 : index
    %c0_215 = arith.constant 0 : index
    %612 = vector.load %arg7[%611, %c0_214, %c0_215] : memref<16x4x256xf32, #tpu.memory_space<vmem>>, vector<1x4x256xf32>
    %613 = vector.shape_cast %612 : vector<1x4x256xf32> to vector<4x256xf32>
    %614 = vector.shape_cast %610 : vector<4x256xf32> to vector<1x4x256xf32>
    tpu.vector_store %arg7[%611, %c0_214, %c0_215], %614 {strides = array<i32>} : memref<16x4x256xf32, #tpu.memory_space<vmem>>, vector<1x4x256xf32>,
    %615 = arith.subf %601, %579 : vector<4x256xf32>
    %616 = arith.mulf %615, %615 : vector<4x256xf32>
    %617 = arith.index_cast %c8_i32 : i32 to index
    %c0_216 = arith.constant 0 : index
    %c0_217 = arith.constant 0 : index
    %618 = vector.load %arg8[%617, %c0_216, %c0_217] : memref<16x4x256xf32, #tpu.memory_space<vmem>>, vector<1x4x256xf32>
    %619 = vector.shape_cast %618 : vector<1x4x256xf32> to vector<4x256xf32>
    %620 = vector.shape_cast %616 : vector<4x256xf32> to vector<1x4x256xf32>
    tpu.vector_store %arg8[%617, %c0_216, %c0_217], %620 {strides = array<i32>} : memref<16x4x256xf32, #tpu.memory_space<vmem>>, vector<1x4x256xf32>,
    %c9_i32 = arith.constant 9 : i32
    %621 = arith.addi %8, %c9_i32 : i32
    %c5_i32_218 = arith.constant 5 : i32
    %622 = arith.muli %621, %c5_i32_218 : i32
    %c0_i32_219 = arith.constant 0 : i32
    %623 = arith.addi %622, %c0_i32_219 : i32
    %624 = arith.index_cast %623 : i32 to index
    %625 = memref.load %arg1[%624] : memref<80xf32, #tpu.memory_space<smem>>
    %c1_i32_220 = arith.constant 1 : i32
    %626 = arith.addi %622, %c1_i32_220 : i32
    %627 = arith.index_cast %626 : i32 to index
    %628 = memref.load %arg1[%627] : memref<80xf32, #tpu.memory_space<smem>>
    %c2_i32_221 = arith.constant 2 : i32
    %629 = arith.addi %622, %c2_i32_221 : i32
    %630 = arith.index_cast %629 : i32 to index
    %631 = memref.load %arg1[%630] : memref<80xf32, #tpu.memory_space<smem>>
    %c3_i32_222 = arith.constant 3 : i32
    %632 = arith.addi %622, %c3_i32_222 : i32
    %633 = arith.index_cast %632 : i32 to index
    %634 = memref.load %arg1[%633] : memref<80xf32, #tpu.memory_space<smem>>
    %c4_i32_223 = arith.constant 4 : i32
    %635 = arith.addi %622, %c4_i32_223 : i32
    %636 = arith.index_cast %635 : i32 to index
    %637 = memref.load %arg1[%636] : memref<80xf32, #tpu.memory_space<smem>>
    %638 = arith.index_cast %c9_i32 : i32 to index
    %c0_224 = arith.constant 0 : index
    %c0_225 = arith.constant 0 : index
    %639 = vector.load %arg2[%638, %c0_224, %c0_225] : memref<16x4x256xf32, #tpu.memory_space<vmem>>, vector<1x4x256xf32>
    %640 = vector.shape_cast %639 : vector<1x4x256xf32> to vector<4x256xf32>
    %641 = arith.index_cast %c9_i32 : i32 to index
    %c0_226 = arith.constant 0 : index
    %c0_227 = arith.constant 0 : index
    %642 = vector.load %arg4[%641, %c0_226, %c0_227] : memref<16x4x256xf32, #tpu.memory_space<vmem>>, vector<1x4x256xf32>
    %643 = vector.shape_cast %642 : vector<1x4x256xf32> to vector<4x256xf32>
    %cst_228 = arith.constant -2.000000e+01 : f32
    %cst_229 = arith.constant 2.000000e+01 : f32
    %644 = vector.broadcast %cst_228 : f32 to vector<4x256xf32>
    %645 = arith.maximumf %644, %643 : vector<4x256xf32>
    %646 = vector.broadcast %cst_229 : f32 to vector<4x256xf32>
    %647 = arith.minimumf %646, %645 : vector<4x256xf32>
    %648 = arith.index_cast %c9_i32 : i32 to index
    %c0_230 = arith.constant 0 : index
    %c0_231 = arith.constant 0 : index
    %649 = vector.load %arg3[%648, %c0_230, %c0_231] : memref<16x4x256xf32, #tpu.memory_space<vmem>>, vector<1x4x256xf32>
    %650 = vector.shape_cast %649 : vector<1x4x256xf32> to vector<4x256xf32>
    %651 = vector.broadcast %625 : f32 to vector<4x256xf32>
    %652 = arith.mulf %651, %640 : vector<4x256xf32>
    %653 = vector.broadcast %628 : f32 to vector<4x256xf32>
    %654 = arith.mulf %653, %647 : vector<4x256xf32>
    %655 = arith.addf %652, %654 : vector<4x256xf32>
    %cst_232 = arith.constant dense<0.000000e+00> : vector<32x256xf32>
    %656 = tpu.matmul %1, %655, %cst_232 {dimension_numbers = #tpu.dot_dimension_numbers<[1], [0], [0], [1], [0, 0, 1, 1], [], []>} : vector<32x4xf32>, vector<4x256xf32>, vector<32x256xf32> -> vector<32x256xf32>
    %cst_233 = arith.constant dense<0.000000e+00> : vector<32x256xf32>
    %657 = tpu.matmul %2, %650, %cst_233 {dimension_numbers = #tpu.dot_dimension_numbers<[1], [0], [0], [1], [0, 0, 1, 1], [], []>} : vector<32x4xf32>, vector<4x256xf32>, vector<32x256xf32> -> vector<32x256xf32>
    %658 = arith.addf %656, %657 : vector<32x256xf32>
    %659 = vector.broadcast %3 : vector<32x1xf32> to vector<32x256xf32>
    %660 = arith.addf %658, %659 : vector<32x256xf32>
    %661 = vector.broadcast %637 : f32 to vector<32x1xf32>
    %662 = arith.mulf %4, %661 : vector<32x1xf32>
    %663 = vector.broadcast %662 : vector<32x1xf32> to vector<32x256xf32>
    %664 = arith.addf %660, %663 : vector<32x256xf32>
    %cst_234 = arith.constant 0.000000e+00 : f32
    %665 = vector.broadcast %cst_234 : f32 to vector<32x256xf32>
    %666 = arith.maximumf %664, %665 : vector<32x256xf32>
    %cst_235 = arith.constant dense<0.000000e+00> : vector<4x256xf32>
    %667 = tpu.matmul %6, %666, %cst_235 {dimension_numbers = #tpu.dot_dimension_numbers<[1], [0], [0], [1], [0, 0, 1, 1], [], []>} : vector<4x32xf32>, vector<32x256xf32>, vector<4x256xf32> -> vector<4x256xf32>
    %668 = vector.broadcast %7 : vector<4x1xf32> to vector<4x256xf32>
    %669 = arith.addf %667, %668 : vector<4x256xf32>
    %cst_236 = arith.constant -2.000000e+01 : f32
    %cst_237 = arith.constant 2.000000e+01 : f32
    %670 = vector.broadcast %cst_236 : f32 to vector<4x256xf32>
    %671 = arith.maximumf %670, %669 : vector<4x256xf32>
    %672 = vector.broadcast %cst_237 : f32 to vector<4x256xf32>
    %673 = arith.minimumf %672, %671 : vector<4x256xf32>
    %674 = vector.broadcast %631 : f32 to vector<4x256xf32>
    %675 = arith.mulf %674, %655 : vector<4x256xf32>
    %676 = vector.broadcast %634 : f32 to vector<4x256xf32>
    %677 = arith.mulf %676, %673 : vector<4x256xf32>
    %678 = arith.subf %675, %677 : vector<4x256xf32>
    %679 = arith.index_cast %c9_i32 : i32 to index
    %c0_238 = arith.constant 0 : index
    %c0_239 = arith.constant 0 : index
    %680 = vector.load %arg7[%679, %c0_238, %c0_239] : memref<16x4x256xf32, #tpu.memory_space<vmem>>, vector<1x4x256xf32>
    %681 = vector.shape_cast %680 : vector<1x4x256xf32> to vector<4x256xf32>
    %682 = vector.shape_cast %678 : vector<4x256xf32> to vector<1x4x256xf32>
    tpu.vector_store %arg7[%679, %c0_238, %c0_239], %682 {strides = array<i32>} : memref<16x4x256xf32, #tpu.memory_space<vmem>>, vector<1x4x256xf32>,
    %683 = arith.subf %669, %647 : vector<4x256xf32>
    %684 = arith.mulf %683, %683 : vector<4x256xf32>
    %685 = arith.index_cast %c9_i32 : i32 to index
    %c0_240 = arith.constant 0 : index
    %c0_241 = arith.constant 0 : index
    %686 = vector.load %arg8[%685, %c0_240, %c0_241] : memref<16x4x256xf32, #tpu.memory_space<vmem>>, vector<1x4x256xf32>
    %687 = vector.shape_cast %686 : vector<1x4x256xf32> to vector<4x256xf32>
    %688 = vector.shape_cast %684 : vector<4x256xf32> to vector<1x4x256xf32>
    tpu.vector_store %arg8[%685, %c0_240, %c0_241], %688 {strides = array<i32>} : memref<16x4x256xf32, #tpu.memory_space<vmem>>, vector<1x4x256xf32>,
    %c10_i32 = arith.constant 10 : i32
    %689 = arith.addi %8, %c10_i32 : i32
    %c5_i32_242 = arith.constant 5 : i32
    %690 = arith.muli %689, %c5_i32_242 : i32
    %c0_i32_243 = arith.constant 0 : i32
    %691 = arith.addi %690, %c0_i32_243 : i32
    %692 = arith.index_cast %691 : i32 to index
    %693 = memref.load %arg1[%692] : memref<80xf32, #tpu.memory_space<smem>>
    %c1_i32_244 = arith.constant 1 : i32
    %694 = arith.addi %690, %c1_i32_244 : i32
    %695 = arith.index_cast %694 : i32 to index
    %696 = memref.load %arg1[%695] : memref<80xf32, #tpu.memory_space<smem>>
    %c2_i32_245 = arith.constant 2 : i32
    %697 = arith.addi %690, %c2_i32_245 : i32
    %698 = arith.index_cast %697 : i32 to index
    %699 = memref.load %arg1[%698] : memref<80xf32, #tpu.memory_space<smem>>
    %c3_i32_246 = arith.constant 3 : i32
    %700 = arith.addi %690, %c3_i32_246 : i32
    %701 = arith.index_cast %700 : i32 to index
    %702 = memref.load %arg1[%701] : memref<80xf32, #tpu.memory_space<smem>>
    %c4_i32_247 = arith.constant 4 : i32
    %703 = arith.addi %690, %c4_i32_247 : i32
    %704 = arith.index_cast %703 : i32 to index
    %705 = memref.load %arg1[%704] : memref<80xf32, #tpu.memory_space<smem>>
    %706 = arith.index_cast %c10_i32 : i32 to index
    %c0_248 = arith.constant 0 : index
    %c0_249 = arith.constant 0 : index
    %707 = vector.load %arg2[%706, %c0_248, %c0_249] : memref<16x4x256xf32, #tpu.memory_space<vmem>>, vector<1x4x256xf32>
    %708 = vector.shape_cast %707 : vector<1x4x256xf32> to vector<4x256xf32>
    %709 = arith.index_cast %c10_i32 : i32 to index
    %c0_250 = arith.constant 0 : index
    %c0_251 = arith.constant 0 : index
    %710 = vector.load %arg4[%709, %c0_250, %c0_251] : memref<16x4x256xf32, #tpu.memory_space<vmem>>, vector<1x4x256xf32>
    %711 = vector.shape_cast %710 : vector<1x4x256xf32> to vector<4x256xf32>
    %cst_252 = arith.constant -2.000000e+01 : f32
    %cst_253 = arith.constant 2.000000e+01 : f32
    %712 = vector.broadcast %cst_252 : f32 to vector<4x256xf32>
    %713 = arith.maximumf %712, %711 : vector<4x256xf32>
    %714 = vector.broadcast %cst_253 : f32 to vector<4x256xf32>
    %715 = arith.minimumf %714, %713 : vector<4x256xf32>
    %716 = arith.index_cast %c10_i32 : i32 to index
    %c0_254 = arith.constant 0 : index
    %c0_255 = arith.constant 0 : index
    %717 = vector.load %arg3[%716, %c0_254, %c0_255] : memref<16x4x256xf32, #tpu.memory_space<vmem>>, vector<1x4x256xf32>
    %718 = vector.shape_cast %717 : vector<1x4x256xf32> to vector<4x256xf32>
    %719 = vector.broadcast %693 : f32 to vector<4x256xf32>
    %720 = arith.mulf %719, %708 : vector<4x256xf32>
    %721 = vector.broadcast %696 : f32 to vector<4x256xf32>
    %722 = arith.mulf %721, %715 : vector<4x256xf32>
    %723 = arith.addf %720, %722 : vector<4x256xf32>
    %cst_256 = arith.constant dense<0.000000e+00> : vector<32x256xf32>
    %724 = tpu.matmul %1, %723, %cst_256 {dimension_numbers = #tpu.dot_dimension_numbers<[1], [0], [0], [1], [0, 0, 1, 1], [], []>} : vector<32x4xf32>, vector<4x256xf32>, vector<32x256xf32> -> vector<32x256xf32>
    %cst_257 = arith.constant dense<0.000000e+00> : vector<32x256xf32>
    %725 = tpu.matmul %2, %718, %cst_257 {dimension_numbers = #tpu.dot_dimension_numbers<[1], [0], [0], [1], [0, 0, 1, 1], [], []>} : vector<32x4xf32>, vector<4x256xf32>, vector<32x256xf32> -> vector<32x256xf32>
    %726 = arith.addf %724, %725 : vector<32x256xf32>
    %727 = vector.broadcast %3 : vector<32x1xf32> to vector<32x256xf32>
    %728 = arith.addf %726, %727 : vector<32x256xf32>
    %729 = vector.broadcast %705 : f32 to vector<32x1xf32>
    %730 = arith.mulf %4, %729 : vector<32x1xf32>
    %731 = vector.broadcast %730 : vector<32x1xf32> to vector<32x256xf32>
    %732 = arith.addf %728, %731 : vector<32x256xf32>
    %cst_258 = arith.constant 0.000000e+00 : f32
    %733 = vector.broadcast %cst_258 : f32 to vector<32x256xf32>
    %734 = arith.maximumf %732, %733 : vector<32x256xf32>
    %cst_259 = arith.constant dense<0.000000e+00> : vector<4x256xf32>
    %735 = tpu.matmul %6, %734, %cst_259 {dimension_numbers = #tpu.dot_dimension_numbers<[1], [0], [0], [1], [0, 0, 1, 1], [], []>} : vector<4x32xf32>, vector<32x256xf32>, vector<4x256xf32> -> vector<4x256xf32>
    %736 = vector.broadcast %7 : vector<4x1xf32> to vector<4x256xf32>
    %737 = arith.addf %735, %736 : vector<4x256xf32>
    %cst_260 = arith.constant -2.000000e+01 : f32
    %cst_261 = arith.constant 2.000000e+01 : f32
    %738 = vector.broadcast %cst_260 : f32 to vector<4x256xf32>
    %739 = arith.maximumf %738, %737 : vector<4x256xf32>
    %740 = vector.broadcast %cst_261 : f32 to vector<4x256xf32>
    %741 = arith.minimumf %740, %739 : vector<4x256xf32>
    %742 = vector.broadcast %699 : f32 to vector<4x256xf32>
    %743 = arith.mulf %742, %723 : vector<4x256xf32>
    %744 = vector.broadcast %702 : f32 to vector<4x256xf32>
    %745 = arith.mulf %744, %741 : vector<4x256xf32>
    %746 = arith.subf %743, %745 : vector<4x256xf32>
    %747 = arith.index_cast %c10_i32 : i32 to index
    %c0_262 = arith.constant 0 : index
    %c0_263 = arith.constant 0 : index
    %748 = vector.load %arg7[%747, %c0_262, %c0_263] : memref<16x4x256xf32, #tpu.memory_space<vmem>>, vector<1x4x256xf32>
    %749 = vector.shape_cast %748 : vector<1x4x256xf32> to vector<4x256xf32>
    %750 = vector.shape_cast %746 : vector<4x256xf32> to vector<1x4x256xf32>
    tpu.vector_store %arg7[%747, %c0_262, %c0_263], %750 {strides = array<i32>} : memref<16x4x256xf32, #tpu.memory_space<vmem>>, vector<1x4x256xf32>,
    %751 = arith.subf %737, %715 : vector<4x256xf32>
    %752 = arith.mulf %751, %751 : vector<4x256xf32>
    %753 = arith.index_cast %c10_i32 : i32 to index
    %c0_264 = arith.constant 0 : index
    %c0_265 = arith.constant 0 : index
    %754 = vector.load %arg8[%753, %c0_264, %c0_265] : memref<16x4x256xf32, #tpu.memory_space<vmem>>, vector<1x4x256xf32>
    %755 = vector.shape_cast %754 : vector<1x4x256xf32> to vector<4x256xf32>
    %756 = vector.shape_cast %752 : vector<4x256xf32> to vector<1x4x256xf32>
    tpu.vector_store %arg8[%753, %c0_264, %c0_265], %756 {strides = array<i32>} : memref<16x4x256xf32, #tpu.memory_space<vmem>>, vector<1x4x256xf32>,
    %c11_i32 = arith.constant 11 : i32
    %757 = arith.addi %8, %c11_i32 : i32
    %c5_i32_266 = arith.constant 5 : i32
    %758 = arith.muli %757, %c5_i32_266 : i32
    %c0_i32_267 = arith.constant 0 : i32
    %759 = arith.addi %758, %c0_i32_267 : i32
    %760 = arith.index_cast %759 : i32 to index
    %761 = memref.load %arg1[%760] : memref<80xf32, #tpu.memory_space<smem>>
    %c1_i32_268 = arith.constant 1 : i32
    %762 = arith.addi %758, %c1_i32_268 : i32
    %763 = arith.index_cast %762 : i32 to index
    %764 = memref.load %arg1[%763] : memref<80xf32, #tpu.memory_space<smem>>
    %c2_i32_269 = arith.constant 2 : i32
    %765 = arith.addi %758, %c2_i32_269 : i32
    %766 = arith.index_cast %765 : i32 to index
    %767 = memref.load %arg1[%766] : memref<80xf32, #tpu.memory_space<smem>>
    %c3_i32_270 = arith.constant 3 : i32
    %768 = arith.addi %758, %c3_i32_270 : i32
    %769 = arith.index_cast %768 : i32 to index
    %770 = memref.load %arg1[%769] : memref<80xf32, #tpu.memory_space<smem>>
    %c4_i32_271 = arith.constant 4 : i32
    %771 = arith.addi %758, %c4_i32_271 : i32
    %772 = arith.index_cast %771 : i32 to index
    %773 = memref.load %arg1[%772] : memref<80xf32, #tpu.memory_space<smem>>
    %774 = arith.index_cast %c11_i32 : i32 to index
    %c0_272 = arith.constant 0 : index
    %c0_273 = arith.constant 0 : index
    %775 = vector.load %arg2[%774, %c0_272, %c0_273] : memref<16x4x256xf32, #tpu.memory_space<vmem>>, vector<1x4x256xf32>
    %776 = vector.shape_cast %775 : vector<1x4x256xf32> to vector<4x256xf32>
    %777 = arith.index_cast %c11_i32 : i32 to index
    %c0_274 = arith.constant 0 : index
    %c0_275 = arith.constant 0 : index
    %778 = vector.load %arg4[%777, %c0_274, %c0_275] : memref<16x4x256xf32, #tpu.memory_space<vmem>>, vector<1x4x256xf32>
    %779 = vector.shape_cast %778 : vector<1x4x256xf32> to vector<4x256xf32>
    %cst_276 = arith.constant -2.000000e+01 : f32
    %cst_277 = arith.constant 2.000000e+01 : f32
    %780 = vector.broadcast %cst_276 : f32 to vector<4x256xf32>
    %781 = arith.maximumf %780, %779 : vector<4x256xf32>
    %782 = vector.broadcast %cst_277 : f32 to vector<4x256xf32>
    %783 = arith.minimumf %782, %781 : vector<4x256xf32>
    %784 = arith.index_cast %c11_i32 : i32 to index
    %c0_278 = arith.constant 0 : index
    %c0_279 = arith.constant 0 : index
    %785 = vector.load %arg3[%784, %c0_278, %c0_279] : memref<16x4x256xf32, #tpu.memory_space<vmem>>, vector<1x4x256xf32>
    %786 = vector.shape_cast %785 : vector<1x4x256xf32> to vector<4x256xf32>
    %787 = vector.broadcast %761 : f32 to vector<4x256xf32>
    %788 = arith.mulf %787, %776 : vector<4x256xf32>
    %789 = vector.broadcast %764 : f32 to vector<4x256xf32>
    %790 = arith.mulf %789, %783 : vector<4x256xf32>
    %791 = arith.addf %788, %790 : vector<4x256xf32>
    %cst_280 = arith.constant dense<0.000000e+00> : vector<32x256xf32>
    %792 = tpu.matmul %1, %791, %cst_280 {dimension_numbers = #tpu.dot_dimension_numbers<[1], [0], [0], [1], [0, 0, 1, 1], [], []>} : vector<32x4xf32>, vector<4x256xf32>, vector<32x256xf32> -> vector<32x256xf32>
    %cst_281 = arith.constant dense<0.000000e+00> : vector<32x256xf32>
    %793 = tpu.matmul %2, %786, %cst_281 {dimension_numbers = #tpu.dot_dimension_numbers<[1], [0], [0], [1], [0, 0, 1, 1], [], []>} : vector<32x4xf32>, vector<4x256xf32>, vector<32x256xf32> -> vector<32x256xf32>
    %794 = arith.addf %792, %793 : vector<32x256xf32>
    %795 = vector.broadcast %3 : vector<32x1xf32> to vector<32x256xf32>
    %796 = arith.addf %794, %795 : vector<32x256xf32>
    %797 = vector.broadcast %773 : f32 to vector<32x1xf32>
    %798 = arith.mulf %4, %797 : vector<32x1xf32>
    %799 = vector.broadcast %798 : vector<32x1xf32> to vector<32x256xf32>
    %800 = arith.addf %796, %799 : vector<32x256xf32>
    %cst_282 = arith.constant 0.000000e+00 : f32
    %801 = vector.broadcast %cst_282 : f32 to vector<32x256xf32>
    %802 = arith.maximumf %800, %801 : vector<32x256xf32>
    %cst_283 = arith.constant dense<0.000000e+00> : vector<4x256xf32>
    %803 = tpu.matmul %6, %802, %cst_283 {dimension_numbers = #tpu.dot_dimension_numbers<[1], [0], [0], [1], [0, 0, 1, 1], [], []>} : vector<4x32xf32>, vector<32x256xf32>, vector<4x256xf32> -> vector<4x256xf32>
    %804 = vector.broadcast %7 : vector<4x1xf32> to vector<4x256xf32>
    %805 = arith.addf %803, %804 : vector<4x256xf32>
    %cst_284 = arith.constant -2.000000e+01 : f32
    %cst_285 = arith.constant 2.000000e+01 : f32
    %806 = vector.broadcast %cst_284 : f32 to vector<4x256xf32>
    %807 = arith.maximumf %806, %805 : vector<4x256xf32>
    %808 = vector.broadcast %cst_285 : f32 to vector<4x256xf32>
    %809 = arith.minimumf %808, %807 : vector<4x256xf32>
    %810 = vector.broadcast %767 : f32 to vector<4x256xf32>
    %811 = arith.mulf %810, %791 : vector<4x256xf32>
    %812 = vector.broadcast %770 : f32 to vector<4x256xf32>
    %813 = arith.mulf %812, %809 : vector<4x256xf32>
    %814 = arith.subf %811, %813 : vector<4x256xf32>
    %815 = arith.index_cast %c11_i32 : i32 to index
    %c0_286 = arith.constant 0 : index
    %c0_287 = arith.constant 0 : index
    %816 = vector.load %arg7[%815, %c0_286, %c0_287] : memref<16x4x256xf32, #tpu.memory_space<vmem>>, vector<1x4x256xf32>
    %817 = vector.shape_cast %816 : vector<1x4x256xf32> to vector<4x256xf32>
    %818 = vector.shape_cast %814 : vector<4x256xf32> to vector<1x4x256xf32>
    tpu.vector_store %arg7[%815, %c0_286, %c0_287], %818 {strides = array<i32>} : memref<16x4x256xf32, #tpu.memory_space<vmem>>, vector<1x4x256xf32>,
    %819 = arith.subf %805, %783 : vector<4x256xf32>
    %820 = arith.mulf %819, %819 : vector<4x256xf32>
    %821 = arith.index_cast %c11_i32 : i32 to index
    %c0_288 = arith.constant 0 : index
    %c0_289 = arith.constant 0 : index
    %822 = vector.load %arg8[%821, %c0_288, %c0_289] : memref<16x4x256xf32, #tpu.memory_space<vmem>>, vector<1x4x256xf32>
    %823 = vector.shape_cast %822 : vector<1x4x256xf32> to vector<4x256xf32>
    %824 = vector.shape_cast %820 : vector<4x256xf32> to vector<1x4x256xf32>
    tpu.vector_store %arg8[%821, %c0_288, %c0_289], %824 {strides = array<i32>} : memref<16x4x256xf32, #tpu.memory_space<vmem>>, vector<1x4x256xf32>,
    %c12_i32 = arith.constant 12 : i32
    %825 = arith.addi %8, %c12_i32 : i32
    %c5_i32_290 = arith.constant 5 : i32
    %826 = arith.muli %825, %c5_i32_290 : i32
    %c0_i32_291 = arith.constant 0 : i32
    %827 = arith.addi %826, %c0_i32_291 : i32
    %828 = arith.index_cast %827 : i32 to index
    %829 = memref.load %arg1[%828] : memref<80xf32, #tpu.memory_space<smem>>
    %c1_i32_292 = arith.constant 1 : i32
    %830 = arith.addi %826, %c1_i32_292 : i32
    %831 = arith.index_cast %830 : i32 to index
    %832 = memref.load %arg1[%831] : memref<80xf32, #tpu.memory_space<smem>>
    %c2_i32_293 = arith.constant 2 : i32
    %833 = arith.addi %826, %c2_i32_293 : i32
    %834 = arith.index_cast %833 : i32 to index
    %835 = memref.load %arg1[%834] : memref<80xf32, #tpu.memory_space<smem>>
    %c3_i32_294 = arith.constant 3 : i32
    %836 = arith.addi %826, %c3_i32_294 : i32
    %837 = arith.index_cast %836 : i32 to index
    %838 = memref.load %arg1[%837] : memref<80xf32, #tpu.memory_space<smem>>
    %c4_i32_295 = arith.constant 4 : i32
    %839 = arith.addi %826, %c4_i32_295 : i32
    %840 = arith.index_cast %839 : i32 to index
    %841 = memref.load %arg1[%840] : memref<80xf32, #tpu.memory_space<smem>>
    %842 = arith.index_cast %c12_i32 : i32 to index
    %c0_296 = arith.constant 0 : index
    %c0_297 = arith.constant 0 : index
    %843 = vector.load %arg2[%842, %c0_296, %c0_297] : memref<16x4x256xf32, #tpu.memory_space<vmem>>, vector<1x4x256xf32>
    %844 = vector.shape_cast %843 : vector<1x4x256xf32> to vector<4x256xf32>
    %845 = arith.index_cast %c12_i32 : i32 to index
    %c0_298 = arith.constant 0 : index
    %c0_299 = arith.constant 0 : index
    %846 = vector.load %arg4[%845, %c0_298, %c0_299] : memref<16x4x256xf32, #tpu.memory_space<vmem>>, vector<1x4x256xf32>
    %847 = vector.shape_cast %846 : vector<1x4x256xf32> to vector<4x256xf32>
    %cst_300 = arith.constant -2.000000e+01 : f32
    %cst_301 = arith.constant 2.000000e+01 : f32
    %848 = vector.broadcast %cst_300 : f32 to vector<4x256xf32>
    %849 = arith.maximumf %848, %847 : vector<4x256xf32>
    %850 = vector.broadcast %cst_301 : f32 to vector<4x256xf32>
    %851 = arith.minimumf %850, %849 : vector<4x256xf32>
    %852 = arith.index_cast %c12_i32 : i32 to index
    %c0_302 = arith.constant 0 : index
    %c0_303 = arith.constant 0 : index
    %853 = vector.load %arg3[%852, %c0_302, %c0_303] : memref<16x4x256xf32, #tpu.memory_space<vmem>>, vector<1x4x256xf32>
    %854 = vector.shape_cast %853 : vector<1x4x256xf32> to vector<4x256xf32>
    %855 = vector.broadcast %829 : f32 to vector<4x256xf32>
    %856 = arith.mulf %855, %844 : vector<4x256xf32>
    %857 = vector.broadcast %832 : f32 to vector<4x256xf32>
    %858 = arith.mulf %857, %851 : vector<4x256xf32>
    %859 = arith.addf %856, %858 : vector<4x256xf32>
    %cst_304 = arith.constant dense<0.000000e+00> : vector<32x256xf32>
    %860 = tpu.matmul %1, %859, %cst_304 {dimension_numbers = #tpu.dot_dimension_numbers<[1], [0], [0], [1], [0, 0, 1, 1], [], []>} : vector<32x4xf32>, vector<4x256xf32>, vector<32x256xf32> -> vector<32x256xf32>
    %cst_305 = arith.constant dense<0.000000e+00> : vector<32x256xf32>
    %861 = tpu.matmul %2, %854, %cst_305 {dimension_numbers = #tpu.dot_dimension_numbers<[1], [0], [0], [1], [0, 0, 1, 1], [], []>} : vector<32x4xf32>, vector<4x256xf32>, vector<32x256xf32> -> vector<32x256xf32>
    %862 = arith.addf %860, %861 : vector<32x256xf32>
    %863 = vector.broadcast %3 : vector<32x1xf32> to vector<32x256xf32>
    %864 = arith.addf %862, %863 : vector<32x256xf32>
    %865 = vector.broadcast %841 : f32 to vector<32x1xf32>
    %866 = arith.mulf %4, %865 : vector<32x1xf32>
    %867 = vector.broadcast %866 : vector<32x1xf32> to vector<32x256xf32>
    %868 = arith.addf %864, %867 : vector<32x256xf32>
    %cst_306 = arith.constant 0.000000e+00 : f32
    %869 = vector.broadcast %cst_306 : f32 to vector<32x256xf32>
    %870 = arith.maximumf %868, %869 : vector<32x256xf32>
    %cst_307 = arith.constant dense<0.000000e+00> : vector<4x256xf32>
    %871 = tpu.matmul %6, %870, %cst_307 {dimension_numbers = #tpu.dot_dimension_numbers<[1], [0], [0], [1], [0, 0, 1, 1], [], []>} : vector<4x32xf32>, vector<32x256xf32>, vector<4x256xf32> -> vector<4x256xf32>
    %872 = vector.broadcast %7 : vector<4x1xf32> to vector<4x256xf32>
    %873 = arith.addf %871, %872 : vector<4x256xf32>
    %cst_308 = arith.constant -2.000000e+01 : f32
    %cst_309 = arith.constant 2.000000e+01 : f32
    %874 = vector.broadcast %cst_308 : f32 to vector<4x256xf32>
    %875 = arith.maximumf %874, %873 : vector<4x256xf32>
    %876 = vector.broadcast %cst_309 : f32 to vector<4x256xf32>
    %877 = arith.minimumf %876, %875 : vector<4x256xf32>
    %878 = vector.broadcast %835 : f32 to vector<4x256xf32>
    %879 = arith.mulf %878, %859 : vector<4x256xf32>
    %880 = vector.broadcast %838 : f32 to vector<4x256xf32>
    %881 = arith.mulf %880, %877 : vector<4x256xf32>
    %882 = arith.subf %879, %881 : vector<4x256xf32>
    %883 = arith.index_cast %c12_i32 : i32 to index
    %c0_310 = arith.constant 0 : index
    %c0_311 = arith.constant 0 : index
    %884 = vector.load %arg7[%883, %c0_310, %c0_311] : memref<16x4x256xf32, #tpu.memory_space<vmem>>, vector<1x4x256xf32>
    %885 = vector.shape_cast %884 : vector<1x4x256xf32> to vector<4x256xf32>
    %886 = vector.shape_cast %882 : vector<4x256xf32> to vector<1x4x256xf32>
    tpu.vector_store %arg7[%883, %c0_310, %c0_311], %886 {strides = array<i32>} : memref<16x4x256xf32, #tpu.memory_space<vmem>>, vector<1x4x256xf32>,
    %887 = arith.subf %873, %851 : vector<4x256xf32>
    %888 = arith.mulf %887, %887 : vector<4x256xf32>
    %889 = arith.index_cast %c12_i32 : i32 to index
    %c0_312 = arith.constant 0 : index
    %c0_313 = arith.constant 0 : index
    %890 = vector.load %arg8[%889, %c0_312, %c0_313] : memref<16x4x256xf32, #tpu.memory_space<vmem>>, vector<1x4x256xf32>
    %891 = vector.shape_cast %890 : vector<1x4x256xf32> to vector<4x256xf32>
    %892 = vector.shape_cast %888 : vector<4x256xf32> to vector<1x4x256xf32>
    tpu.vector_store %arg8[%889, %c0_312, %c0_313], %892 {strides = array<i32>} : memref<16x4x256xf32, #tpu.memory_space<vmem>>, vector<1x4x256xf32>,
    %c13_i32 = arith.constant 13 : i32
    %893 = arith.addi %8, %c13_i32 : i32
    %c5_i32_314 = arith.constant 5 : i32
    %894 = arith.muli %893, %c5_i32_314 : i32
    %c0_i32_315 = arith.constant 0 : i32
    %895 = arith.addi %894, %c0_i32_315 : i32
    %896 = arith.index_cast %895 : i32 to index
    %897 = memref.load %arg1[%896] : memref<80xf32, #tpu.memory_space<smem>>
    %c1_i32_316 = arith.constant 1 : i32
    %898 = arith.addi %894, %c1_i32_316 : i32
    %899 = arith.index_cast %898 : i32 to index
    %900 = memref.load %arg1[%899] : memref<80xf32, #tpu.memory_space<smem>>
    %c2_i32_317 = arith.constant 2 : i32
    %901 = arith.addi %894, %c2_i32_317 : i32
    %902 = arith.index_cast %901 : i32 to index
    %903 = memref.load %arg1[%902] : memref<80xf32, #tpu.memory_space<smem>>
    %c3_i32_318 = arith.constant 3 : i32
    %904 = arith.addi %894, %c3_i32_318 : i32
    %905 = arith.index_cast %904 : i32 to index
    %906 = memref.load %arg1[%905] : memref<80xf32, #tpu.memory_space<smem>>
    %c4_i32_319 = arith.constant 4 : i32
    %907 = arith.addi %894, %c4_i32_319 : i32
    %908 = arith.index_cast %907 : i32 to index
    %909 = memref.load %arg1[%908] : memref<80xf32, #tpu.memory_space<smem>>
    %910 = arith.index_cast %c13_i32 : i32 to index
    %c0_320 = arith.constant 0 : index
    %c0_321 = arith.constant 0 : index
    %911 = vector.load %arg2[%910, %c0_320, %c0_321] : memref<16x4x256xf32, #tpu.memory_space<vmem>>, vector<1x4x256xf32>
    %912 = vector.shape_cast %911 : vector<1x4x256xf32> to vector<4x256xf32>
    %913 = arith.index_cast %c13_i32 : i32 to index
    %c0_322 = arith.constant 0 : index
    %c0_323 = arith.constant 0 : index
    %914 = vector.load %arg4[%913, %c0_322, %c0_323] : memref<16x4x256xf32, #tpu.memory_space<vmem>>, vector<1x4x256xf32>
    %915 = vector.shape_cast %914 : vector<1x4x256xf32> to vector<4x256xf32>
    %cst_324 = arith.constant -2.000000e+01 : f32
    %cst_325 = arith.constant 2.000000e+01 : f32
    %916 = vector.broadcast %cst_324 : f32 to vector<4x256xf32>
    %917 = arith.maximumf %916, %915 : vector<4x256xf32>
    %918 = vector.broadcast %cst_325 : f32 to vector<4x256xf32>
    %919 = arith.minimumf %918, %917 : vector<4x256xf32>
    %920 = arith.index_cast %c13_i32 : i32 to index
    %c0_326 = arith.constant 0 : index
    %c0_327 = arith.constant 0 : index
    %921 = vector.load %arg3[%920, %c0_326, %c0_327] : memref<16x4x256xf32, #tpu.memory_space<vmem>>, vector<1x4x256xf32>
    %922 = vector.shape_cast %921 : vector<1x4x256xf32> to vector<4x256xf32>
    %923 = vector.broadcast %897 : f32 to vector<4x256xf32>
    %924 = arith.mulf %923, %912 : vector<4x256xf32>
    %925 = vector.broadcast %900 : f32 to vector<4x256xf32>
    %926 = arith.mulf %925, %919 : vector<4x256xf32>
    %927 = arith.addf %924, %926 : vector<4x256xf32>
    %cst_328 = arith.constant dense<0.000000e+00> : vector<32x256xf32>
    %928 = tpu.matmul %1, %927, %cst_328 {dimension_numbers = #tpu.dot_dimension_numbers<[1], [0], [0], [1], [0, 0, 1, 1], [], []>} : vector<32x4xf32>, vector<4x256xf32>, vector<32x256xf32> -> vector<32x256xf32>
    %cst_329 = arith.constant dense<0.000000e+00> : vector<32x256xf32>
    %929 = tpu.matmul %2, %922, %cst_329 {dimension_numbers = #tpu.dot_dimension_numbers<[1], [0], [0], [1], [0, 0, 1, 1], [], []>} : vector<32x4xf32>, vector<4x256xf32>, vector<32x256xf32> -> vector<32x256xf32>
    %930 = arith.addf %928, %929 : vector<32x256xf32>
    %931 = vector.broadcast %3 : vector<32x1xf32> to vector<32x256xf32>
    %932 = arith.addf %930, %931 : vector<32x256xf32>
    %933 = vector.broadcast %909 : f32 to vector<32x1xf32>
    %934 = arith.mulf %4, %933 : vector<32x1xf32>
    %935 = vector.broadcast %934 : vector<32x1xf32> to vector<32x256xf32>
    %936 = arith.addf %932, %935 : vector<32x256xf32>
    %cst_330 = arith.constant 0.000000e+00 : f32
    %937 = vector.broadcast %cst_330 : f32 to vector<32x256xf32>
    %938 = arith.maximumf %936, %937 : vector<32x256xf32>
    %cst_331 = arith.constant dense<0.000000e+00> : vector<4x256xf32>
    %939 = tpu.matmul %6, %938, %cst_331 {dimension_numbers = #tpu.dot_dimension_numbers<[1], [0], [0], [1], [0, 0, 1, 1], [], []>} : vector<4x32xf32>, vector<32x256xf32>, vector<4x256xf32> -> vector<4x256xf32>
    %940 = vector.broadcast %7 : vector<4x1xf32> to vector<4x256xf32>
    %941 = arith.addf %939, %940 : vector<4x256xf32>
    %cst_332 = arith.constant -2.000000e+01 : f32
    %cst_333 = arith.constant 2.000000e+01 : f32
    %942 = vector.broadcast %cst_332 : f32 to vector<4x256xf32>
    %943 = arith.maximumf %942, %941 : vector<4x256xf32>
    %944 = vector.broadcast %cst_333 : f32 to vector<4x256xf32>
    %945 = arith.minimumf %944, %943 : vector<4x256xf32>
    %946 = vector.broadcast %903 : f32 to vector<4x256xf32>
    %947 = arith.mulf %946, %927 : vector<4x256xf32>
    %948 = vector.broadcast %906 : f32 to vector<4x256xf32>
    %949 = arith.mulf %948, %945 : vector<4x256xf32>
    %950 = arith.subf %947, %949 : vector<4x256xf32>
    %951 = arith.index_cast %c13_i32 : i32 to index
    %c0_334 = arith.constant 0 : index
    %c0_335 = arith.constant 0 : index
    %952 = vector.load %arg7[%951, %c0_334, %c0_335] : memref<16x4x256xf32, #tpu.memory_space<vmem>>, vector<1x4x256xf32>
    %953 = vector.shape_cast %952 : vector<1x4x256xf32> to vector<4x256xf32>
    %954 = vector.shape_cast %950 : vector<4x256xf32> to vector<1x4x256xf32>
    tpu.vector_store %arg7[%951, %c0_334, %c0_335], %954 {strides = array<i32>} : memref<16x4x256xf32, #tpu.memory_space<vmem>>, vector<1x4x256xf32>,
    %955 = arith.subf %941, %919 : vector<4x256xf32>
    %956 = arith.mulf %955, %955 : vector<4x256xf32>
    %957 = arith.index_cast %c13_i32 : i32 to index
    %c0_336 = arith.constant 0 : index
    %c0_337 = arith.constant 0 : index
    %958 = vector.load %arg8[%957, %c0_336, %c0_337] : memref<16x4x256xf32, #tpu.memory_space<vmem>>, vector<1x4x256xf32>
    %959 = vector.shape_cast %958 : vector<1x4x256xf32> to vector<4x256xf32>
    %960 = vector.shape_cast %956 : vector<4x256xf32> to vector<1x4x256xf32>
    tpu.vector_store %arg8[%957, %c0_336, %c0_337], %960 {strides = array<i32>} : memref<16x4x256xf32, #tpu.memory_space<vmem>>, vector<1x4x256xf32>,
    %c14_i32 = arith.constant 14 : i32
    %961 = arith.addi %8, %c14_i32 : i32
    %c5_i32_338 = arith.constant 5 : i32
    %962 = arith.muli %961, %c5_i32_338 : i32
    %c0_i32_339 = arith.constant 0 : i32
    %963 = arith.addi %962, %c0_i32_339 : i32
    %964 = arith.index_cast %963 : i32 to index
    %965 = memref.load %arg1[%964] : memref<80xf32, #tpu.memory_space<smem>>
    %c1_i32_340 = arith.constant 1 : i32
    %966 = arith.addi %962, %c1_i32_340 : i32
    %967 = arith.index_cast %966 : i32 to index
    %968 = memref.load %arg1[%967] : memref<80xf32, #tpu.memory_space<smem>>
    %c2_i32_341 = arith.constant 2 : i32
    %969 = arith.addi %962, %c2_i32_341 : i32
    %970 = arith.index_cast %969 : i32 to index
    %971 = memref.load %arg1[%970] : memref<80xf32, #tpu.memory_space<smem>>
    %c3_i32_342 = arith.constant 3 : i32
    %972 = arith.addi %962, %c3_i32_342 : i32
    %973 = arith.index_cast %972 : i32 to index
    %974 = memref.load %arg1[%973] : memref<80xf32, #tpu.memory_space<smem>>
    %c4_i32_343 = arith.constant 4 : i32
    %975 = arith.addi %962, %c4_i32_343 : i32
    %976 = arith.index_cast %975 : i32 to index
    %977 = memref.load %arg1[%976] : memref<80xf32, #tpu.memory_space<smem>>
    %978 = arith.index_cast %c14_i32 : i32 to index
    %c0_344 = arith.constant 0 : index
    %c0_345 = arith.constant 0 : index
    %979 = vector.load %arg2[%978, %c0_344, %c0_345] : memref<16x4x256xf32, #tpu.memory_space<vmem>>, vector<1x4x256xf32>
    %980 = vector.shape_cast %979 : vector<1x4x256xf32> to vector<4x256xf32>
    %981 = arith.index_cast %c14_i32 : i32 to index
    %c0_346 = arith.constant 0 : index
    %c0_347 = arith.constant 0 : index
    %982 = vector.load %arg4[%981, %c0_346, %c0_347] : memref<16x4x256xf32, #tpu.memory_space<vmem>>, vector<1x4x256xf32>
    %983 = vector.shape_cast %982 : vector<1x4x256xf32> to vector<4x256xf32>
    %cst_348 = arith.constant -2.000000e+01 : f32
    %cst_349 = arith.constant 2.000000e+01 : f32
    %984 = vector.broadcast %cst_348 : f32 to vector<4x256xf32>
    %985 = arith.maximumf %984, %983 : vector<4x256xf32>
    %986 = vector.broadcast %cst_349 : f32 to vector<4x256xf32>
    %987 = arith.minimumf %986, %985 : vector<4x256xf32>
    %988 = arith.index_cast %c14_i32 : i32 to index
    %c0_350 = arith.constant 0 : index
    %c0_351 = arith.constant 0 : index
    %989 = vector.load %arg3[%988, %c0_350, %c0_351] : memref<16x4x256xf32, #tpu.memory_space<vmem>>, vector<1x4x256xf32>
    %990 = vector.shape_cast %989 : vector<1x4x256xf32> to vector<4x256xf32>
    %991 = vector.broadcast %965 : f32 to vector<4x256xf32>
    %992 = arith.mulf %991, %980 : vector<4x256xf32>
    %993 = vector.broadcast %968 : f32 to vector<4x256xf32>
    %994 = arith.mulf %993, %987 : vector<4x256xf32>
    %995 = arith.addf %992, %994 : vector<4x256xf32>
    %cst_352 = arith.constant dense<0.000000e+00> : vector<32x256xf32>
    %996 = tpu.matmul %1, %995, %cst_352 {dimension_numbers = #tpu.dot_dimension_numbers<[1], [0], [0], [1], [0, 0, 1, 1], [], []>} : vector<32x4xf32>, vector<4x256xf32>, vector<32x256xf32> -> vector<32x256xf32>
    %cst_353 = arith.constant dense<0.000000e+00> : vector<32x256xf32>
    %997 = tpu.matmul %2, %990, %cst_353 {dimension_numbers = #tpu.dot_dimension_numbers<[1], [0], [0], [1], [0, 0, 1, 1], [], []>} : vector<32x4xf32>, vector<4x256xf32>, vector<32x256xf32> -> vector<32x256xf32>
    %998 = arith.addf %996, %997 : vector<32x256xf32>
    %999 = vector.broadcast %3 : vector<32x1xf32> to vector<32x256xf32>
    %1000 = arith.addf %998, %999 : vector<32x256xf32>
    %1001 = vector.broadcast %977 : f32 to vector<32x1xf32>
    %1002 = arith.mulf %4, %1001 : vector<32x1xf32>
    %1003 = vector.broadcast %1002 : vector<32x1xf32> to vector<32x256xf32>
    %1004 = arith.addf %1000, %1003 : vector<32x256xf32>
    %cst_354 = arith.constant 0.000000e+00 : f32
    %1005 = vector.broadcast %cst_354 : f32 to vector<32x256xf32>
    %1006 = arith.maximumf %1004, %1005 : vector<32x256xf32>
    %cst_355 = arith.constant dense<0.000000e+00> : vector<4x256xf32>
    %1007 = tpu.matmul %6, %1006, %cst_355 {dimension_numbers = #tpu.dot_dimension_numbers<[1], [0], [0], [1], [0, 0, 1, 1], [], []>} : vector<4x32xf32>, vector<32x256xf32>, vector<4x256xf32> -> vector<4x256xf32>
    %1008 = vector.broadcast %7 : vector<4x1xf32> to vector<4x256xf32>
    %1009 = arith.addf %1007, %1008 : vector<4x256xf32>
    %cst_356 = arith.constant -2.000000e+01 : f32
    %cst_357 = arith.constant 2.000000e+01 : f32
    %1010 = vector.broadcast %cst_356 : f32 to vector<4x256xf32>
    %1011 = arith.maximumf %1010, %1009 : vector<4x256xf32>
    %1012 = vector.broadcast %cst_357 : f32 to vector<4x256xf32>
    %1013 = arith.minimumf %1012, %1011 : vector<4x256xf32>
    %1014 = vector.broadcast %971 : f32 to vector<4x256xf32>
    %1015 = arith.mulf %1014, %995 : vector<4x256xf32>
    %1016 = vector.broadcast %974 : f32 to vector<4x256xf32>
    %1017 = arith.mulf %1016, %1013 : vector<4x256xf32>
    %1018 = arith.subf %1015, %1017 : vector<4x256xf32>
    %1019 = arith.index_cast %c14_i32 : i32 to index
    %c0_358 = arith.constant 0 : index
    %c0_359 = arith.constant 0 : index
    %1020 = vector.load %arg7[%1019, %c0_358, %c0_359] : memref<16x4x256xf32, #tpu.memory_space<vmem>>, vector<1x4x256xf32>
    %1021 = vector.shape_cast %1020 : vector<1x4x256xf32> to vector<4x256xf32>
    %1022 = vector.shape_cast %1018 : vector<4x256xf32> to vector<1x4x256xf32>
    tpu.vector_store %arg7[%1019, %c0_358, %c0_359], %1022 {strides = array<i32>} : memref<16x4x256xf32, #tpu.memory_space<vmem>>, vector<1x4x256xf32>,
    %1023 = arith.subf %1009, %987 : vector<4x256xf32>
    %1024 = arith.mulf %1023, %1023 : vector<4x256xf32>
    %1025 = arith.index_cast %c14_i32 : i32 to index
    %c0_360 = arith.constant 0 : index
    %c0_361 = arith.constant 0 : index
    %1026 = vector.load %arg8[%1025, %c0_360, %c0_361] : memref<16x4x256xf32, #tpu.memory_space<vmem>>, vector<1x4x256xf32>
    %1027 = vector.shape_cast %1026 : vector<1x4x256xf32> to vector<4x256xf32>
    %1028 = vector.shape_cast %1024 : vector<4x256xf32> to vector<1x4x256xf32>
    tpu.vector_store %arg8[%1025, %c0_360, %c0_361], %1028 {strides = array<i32>} : memref<16x4x256xf32, #tpu.memory_space<vmem>>, vector<1x4x256xf32>,
    %c15_i32 = arith.constant 15 : i32
    %1029 = arith.addi %8, %c15_i32 : i32
    %c5_i32_362 = arith.constant 5 : i32
    %1030 = arith.muli %1029, %c5_i32_362 : i32
    %c0_i32_363 = arith.constant 0 : i32
    %1031 = arith.addi %1030, %c0_i32_363 : i32
    %1032 = arith.index_cast %1031 : i32 to index
    %1033 = memref.load %arg1[%1032] : memref<80xf32, #tpu.memory_space<smem>>
    %c1_i32_364 = arith.constant 1 : i32
    %1034 = arith.addi %1030, %c1_i32_364 : i32
    %1035 = arith.index_cast %1034 : i32 to index
    %1036 = memref.load %arg1[%1035] : memref<80xf32, #tpu.memory_space<smem>>
    %c2_i32_365 = arith.constant 2 : i32
    %1037 = arith.addi %1030, %c2_i32_365 : i32
    %1038 = arith.index_cast %1037 : i32 to index
    %1039 = memref.load %arg1[%1038] : memref<80xf32, #tpu.memory_space<smem>>
    %c3_i32_366 = arith.constant 3 : i32
    %1040 = arith.addi %1030, %c3_i32_366 : i32
    %1041 = arith.index_cast %1040 : i32 to index
    %1042 = memref.load %arg1[%1041] : memref<80xf32, #tpu.memory_space<smem>>
    %c4_i32_367 = arith.constant 4 : i32
    %1043 = arith.addi %1030, %c4_i32_367 : i32
    %1044 = arith.index_cast %1043 : i32 to index
    %1045 = memref.load %arg1[%1044] : memref<80xf32, #tpu.memory_space<smem>>
    %1046 = arith.index_cast %c15_i32 : i32 to index
    %c0_368 = arith.constant 0 : index
    %c0_369 = arith.constant 0 : index
    %1047 = vector.load %arg2[%1046, %c0_368, %c0_369] : memref<16x4x256xf32, #tpu.memory_space<vmem>>, vector<1x4x256xf32>
    %1048 = vector.shape_cast %1047 : vector<1x4x256xf32> to vector<4x256xf32>
    %1049 = arith.index_cast %c15_i32 : i32 to index
    %c0_370 = arith.constant 0 : index
    %c0_371 = arith.constant 0 : index
    %1050 = vector.load %arg4[%1049, %c0_370, %c0_371] : memref<16x4x256xf32, #tpu.memory_space<vmem>>, vector<1x4x256xf32>
    %1051 = vector.shape_cast %1050 : vector<1x4x256xf32> to vector<4x256xf32>
    %cst_372 = arith.constant -2.000000e+01 : f32
    %cst_373 = arith.constant 2.000000e+01 : f32
    %1052 = vector.broadcast %cst_372 : f32 to vector<4x256xf32>
    %1053 = arith.maximumf %1052, %1051 : vector<4x256xf32>
    %1054 = vector.broadcast %cst_373 : f32 to vector<4x256xf32>
    %1055 = arith.minimumf %1054, %1053 : vector<4x256xf32>
    %1056 = arith.index_cast %c15_i32 : i32 to index
    %c0_374 = arith.constant 0 : index
    %c0_375 = arith.constant 0 : index
    %1057 = vector.load %arg3[%1056, %c0_374, %c0_375] : memref<16x4x256xf32, #tpu.memory_space<vmem>>, vector<1x4x256xf32>
    %1058 = vector.shape_cast %1057 : vector<1x4x256xf32> to vector<4x256xf32>
    %1059 = vector.broadcast %1033 : f32 to vector<4x256xf32>
    %1060 = arith.mulf %1059, %1048 : vector<4x256xf32>
    %1061 = vector.broadcast %1036 : f32 to vector<4x256xf32>
    %1062 = arith.mulf %1061, %1055 : vector<4x256xf32>
    %1063 = arith.addf %1060, %1062 : vector<4x256xf32>
    %cst_376 = arith.constant dense<0.000000e+00> : vector<32x256xf32>
    %1064 = tpu.matmul %1, %1063, %cst_376 {dimension_numbers = #tpu.dot_dimension_numbers<[1], [0], [0], [1], [0, 0, 1, 1], [], []>} : vector<32x4xf32>, vector<4x256xf32>, vector<32x256xf32> -> vector<32x256xf32>
    %cst_377 = arith.constant dense<0.000000e+00> : vector<32x256xf32>
    %1065 = tpu.matmul %2, %1058, %cst_377 {dimension_numbers = #tpu.dot_dimension_numbers<[1], [0], [0], [1], [0, 0, 1, 1], [], []>} : vector<32x4xf32>, vector<4x256xf32>, vector<32x256xf32> -> vector<32x256xf32>
    %1066 = arith.addf %1064, %1065 : vector<32x256xf32>
    %1067 = vector.broadcast %3 : vector<32x1xf32> to vector<32x256xf32>
    %1068 = arith.addf %1066, %1067 : vector<32x256xf32>
    %1069 = vector.broadcast %1045 : f32 to vector<32x1xf32>
    %1070 = arith.mulf %4, %1069 : vector<32x1xf32>
    %1071 = vector.broadcast %1070 : vector<32x1xf32> to vector<32x256xf32>
    %1072 = arith.addf %1068, %1071 : vector<32x256xf32>
    %cst_378 = arith.constant 0.000000e+00 : f32
    %1073 = vector.broadcast %cst_378 : f32 to vector<32x256xf32>
    %1074 = arith.maximumf %1072, %1073 : vector<32x256xf32>
    %cst_379 = arith.constant dense<0.000000e+00> : vector<4x256xf32>
    %1075 = tpu.matmul %6, %1074, %cst_379 {dimension_numbers = #tpu.dot_dimension_numbers<[1], [0], [0], [1], [0, 0, 1, 1], [], []>} : vector<4x32xf32>, vector<32x256xf32>, vector<4x256xf32> -> vector<4x256xf32>
    %1076 = vector.broadcast %7 : vector<4x1xf32> to vector<4x256xf32>
    %1077 = arith.addf %1075, %1076 : vector<4x256xf32>
    %cst_380 = arith.constant -2.000000e+01 : f32
    %cst_381 = arith.constant 2.000000e+01 : f32
    %1078 = vector.broadcast %cst_380 : f32 to vector<4x256xf32>
    %1079 = arith.maximumf %1078, %1077 : vector<4x256xf32>
    %1080 = vector.broadcast %cst_381 : f32 to vector<4x256xf32>
    %1081 = arith.minimumf %1080, %1079 : vector<4x256xf32>
    %1082 = vector.broadcast %1039 : f32 to vector<4x256xf32>
    %1083 = arith.mulf %1082, %1063 : vector<4x256xf32>
    %1084 = vector.broadcast %1042 : f32 to vector<4x256xf32>
    %1085 = arith.mulf %1084, %1081 : vector<4x256xf32>
    %1086 = arith.subf %1083, %1085 : vector<4x256xf32>
    %1087 = arith.index_cast %c15_i32 : i32 to index
    %c0_382 = arith.constant 0 : index
    %c0_383 = arith.constant 0 : index
    %1088 = vector.load %arg7[%1087, %c0_382, %c0_383] : memref<16x4x256xf32, #tpu.memory_space<vmem>>, vector<1x4x256xf32>
    %1089 = vector.shape_cast %1088 : vector<1x4x256xf32> to vector<4x256xf32>
    %1090 = vector.shape_cast %1086 : vector<4x256xf32> to vector<1x4x256xf32>
    tpu.vector_store %arg7[%1087, %c0_382, %c0_383], %1090 {strides = array<i32>} : memref<16x4x256xf32, #tpu.memory_space<vmem>>, vector<1x4x256xf32>,
    %1091 = arith.subf %1077, %1055 : vector<4x256xf32>
    %1092 = arith.mulf %1091, %1091 : vector<4x256xf32>
    %1093 = arith.index_cast %c15_i32 : i32 to index
    %c0_384 = arith.constant 0 : index
    %c0_385 = arith.constant 0 : index
    %1094 = vector.load %arg8[%1093, %c0_384, %c0_385] : memref<16x4x256xf32, #tpu.memory_space<vmem>>, vector<1x4x256xf32>
    %1095 = vector.shape_cast %1094 : vector<1x4x256xf32> to vector<4x256xf32>
    %1096 = vector.shape_cast %1092 : vector<4x256xf32> to vector<1x4x256xf32>
    tpu.vector_store %arg8[%1093, %c0_384, %c0_385], %1096 {strides = array<i32>} : memref<16x4x256xf32, #tpu.memory_space<vmem>>, vector<1x4x256xf32>,
    %c16_i32_386 = arith.constant 16 : i32
    return
  }
  func.func @transform_0(%arg0: i32) -> i32 {
    %c0_i32 = arith.constant 0 : i32
    %c0_i32_0 = arith.constant 0 : i32
    return %c0_i32 : i32
  }
  func.func @transform_1(%arg0: i32) -> (i32, i32, i32) {
    %c0_i32 = arith.constant 0 : i32
    %c0_i32_0 = arith.constant 0 : i32
    %c0_i32_1 = arith.constant 0 : i32
    return %arg0, %c0_i32, %c0_i32_0 : i32, i32, i32
  }
  func.func @transform_2(%arg0: i32) -> (i32, i32, i32) {
    %c0_i32 = arith.constant 0 : i32
    %c0_i32_0 = arith.constant 0 : i32
    %c0_i32_1 = arith.constant 0 : i32
    return %arg0, %c0_i32, %c0_i32_0 : i32, i32, i32
  }
  func.func @transform_3(%arg0: i32) -> (i32, i32, i32) {
    %c0_i32 = arith.constant 0 : i32
    %c0_i32_0 = arith.constant 0 : i32
    %c0_i32_1 = arith.constant 0 : i32
    return %arg0, %c0_i32, %c0_i32_0 : i32, i32, i32
  }
  func.func @transform_4(%arg0: i32) -> (i32, i32) {
    %c0_i32 = arith.constant 0 : i32
    %c0_i32_0 = arith.constant 0 : i32
    %c0_i32_1 = arith.constant 0 : i32
    return %c0_i32, %c0_i32_0 : i32, i32
  }
  func.func @transform_5(%arg0: i32) -> (i32, i32) {
    %c0_i32 = arith.constant 0 : i32
    %c0_i32_0 = arith.constant 0 : i32
    %c0_i32_1 = arith.constant 0 : i32
    return %c0_i32, %c0_i32_0 : i32, i32
  }
  func.func @transform_6(%arg0: i32) -> (i32, i32, i32) {
    %c0_i32 = arith.constant 0 : i32
    %c0_i32_0 = arith.constant 0 : i32
    %c0_i32_1 = arith.constant 0 : i32
    return %arg0, %c0_i32, %c0_i32_0 : i32, i32, i32
  }
  func.func @transform_7(%arg0: i32) -> (i32, i32, i32) {
    %c0_i32 = arith.constant 0 : i32
    %c0_i32_0 = arith.constant 0 : i32
    %c0_i32_1 = arith.constant 0 : i32
    return %arg0, %c0_i32, %c0_i32_0 : i32, i32, i32
  }
}

</mosaic_0001>

<bundles_post_ra>
// kernel: diffusion_forward.1
= control target key start
LH: loop header
LB: loop body
LE: loop exit
PB: predicated region body
PF: predicated region fallthrough
CT: control target
= control target key end

     0   :  { %13 = vsyncpa [#allocation3], 0  ;;  %s8158_s0 = inlined_call_operand.vmem [shape: f32[80], index: 0, kind: input, shape index: {}]   ;;  %s8159_s1 = inlined_call_operand.vmem [shape: f32[16,4,256], index: 1, kind: input, shape index: {}]   ;;  %s8160_s2 = inlined_call_operand.vmem [shape: f32[16,4,256], index: 2, kind: input, shape index: {}]   ;;  %s8161_s3 = inlined_call_operand.vmem [shape: f32[16,4,256], index: 3, kind: input, shape index: {}]   ;;  %s8162_s4 = inlined_call_operand.vmem [shape: f32[32,10], index: 4, kind: input, shape index: {}]   ;;  %s8163_s5 = inlined_call_operand.vmem [shape: f32[4,33], index: 5, kind: input, shape index: {}]   ;;  %s8164_s6 = inlined_call_operand.vmem [shape: f32[16,4,256], index: 6, kind: output, shape index: {0}]   ;;  %s8165_s7 = inlined_call_operand.vmem [shape: f32[16,4,256], index: 7, kind: output, shape index: {1}]  }
   0x1   :  { %s20_s26 = sshll.u32 %s8158_s0, 4  ;;  %s21_s26 = int_to_ptr.vmem [resolvable:$true] %s20_s26 }
   0x2   :  { %s6619_s27 = scalar_lea.vmem %s21_s26, 16  ;;  %p6624_p1 = scmp.lt.s32.totalorder %s21_s26, %s21_s26 }
   0x3   :  { %p6620_p0 = scmp.ne.s32.totalorder %s21_s26, %s6619_s27  ;;  %p6625_p2 = scmp.lt.s32.totalorder %s6619_s27, %s6619_s27 }
   0x5   :  { %p6626_p3 = por %p6625_p2, %p6624_p1 }
   0x7   :  { %p6627_p4 = pnand %p6626_p3, %p6620_p0 }
   0x9   :  { %6630 = shalt.err (!%p6627_p4)
}
   0xa   :  { %s6633_s28 = smov [#allocation2]  }
   0xb   :  { %23 = dma.vmem_to_smem %s21_s26, 16, %s6633_s28, [#allocation3]  }
   0xc   :  { %6631 = dma.done.wait [#allocation3], 16  }
   0xd   :  { %6632 = vsyncadd [#allocation3], 4294967280 }
   0xe   :  { %37 = sfence }
   0xf   :  { %v6685_v0 = vld [vmem:[%s8162_s4] sm:$0xff]  ;;  %v6690_v1 = vld [vmem:[%s8162_s4 + $0x10] sm:$0xff]  ;;  %s6634_s9 = smov 124   ;;  %s5912_s10 = sld [smem:[#allocation2 + $0x4]]  ;;  %v6700_v3 = vld [vmem:[%s8162_s4 + $0x8] sm:$0xff]  ;;  %v6635_v5 = vmov 8  }
  0x10   :  { %68 = vrot.lane.b32.xlu0 %v6685_v0, %s6634_s9  ;;  %72 = vrot.lane.b32.xlu1 %v6690_v1, %s6634_s9  ;;  %v58_v2 = vld [vmem:[%s8160_s2] sm:$0xff]  ;;  %v6705_v4 = vld [vmem:[%s8162_s4 + $0x18] sm:$0xff]  ;;  %vm87_vm0 = vcmask 1043456   ;;  %v8166_v7 = vmov 0.0   ;;  %s45_s17 = sld [smem:[#allocation2]]  ;;  %s5909_s18 = sld [smem:[#allocation2 + $0x1]] }
  0x11   :  { %6582 = vset.pattern.permute.xlu1 %v6635_v5  ;;  %6581 = vset.pattern.permute.xlu0 %v6635_v5  ;;  %v77_v6 = vcombine.high %v58_v2, %v58_v2  ;;  %v55_v8 = vld [vmem:[%s8161_s3] sm:$0xff]  ;;  %s5933_s21 = sld [smem:[#allocation2 + $0x9]]  ;;  %v6637_v18 = vmov 9   ;;  %s5959_s24 = sld [smem:[#allocation2 + $0xe]]  ;;  %vm78_vm1 = vcmask 31744   ;;  %vm354_vm2 = vcmask 261120  }
  0x12   :  { %156 = vmatprep.mubr.f32.mxu0 %v8166_v7  ;;  %421 = vmatprep.mubr.f32.mxu1 %v8166_v7  ;;  %v6716_v10 = vclamps-f32 %v55_v8, 20.0  ;;  %v54_v11 = vld [vmem:[%s8159_s1] sm:$0xff]  ;;  %s5985_s25 = sld [smem:[#allocation2 + $0x13]]  ;;  %s6011_s26 = sld [smem:[#allocation2 + $0x18]] }
  0x13   :  { %5914 = vmatprep.subr.msk.mxu0 %vm87_vm0, %v77_v6  ;;  %s6037_s27 = sld [smem:[#allocation2 + $0x1d]]  ;;  %s6063_s28 = sld [smem:[#allocation2 + $0x22]] }
  0x14   :  { %70 = vrot.lane.b32.xlu0 %v6700_v3, %s6634_s9  ;;  %74 = vrot.lane.b32.xlu1 %v6705_v4, %s6634_s9  ;;  %s6089_s29 = sld [smem:[#allocation2 + $0x27]]  ;;  %s6115_s30 = sld [smem:[#allocation2 + $0x2c]] }
  0x15   :  { %5915 = vmatpush1.msk.msra.mxu0 %vm87_vm0, %v58_v2  ;;  %v308_v9 = vstv %s5912_s10  ;;  %s6141_s8 = sld [smem:[#allocation2 + $0x31]]  ;;  %s6167_s0 = sld [smem:[#allocation2 + $0x36]] }
  0x16   :  { %v309_v12 = vmul.f32 %v308_v9, %v6685_v0  ;;  %v310_v13 = vmul.f32 %v308_v9, %v6700_v3  ;;  %v59_v14 = vstv %s45_s17  ;;  %v61_v15 = vstv %s5909_s18  ;;  %s6193_s9 = sld [smem:[#allocation2 + $0x3b]]  ;;  %s6219_s10 = sld [smem:[#allocation2 + $0x40]] }
  0x17   :  { %v60_v16 = vmul.f32 %v59_v14, %v54_v11  ;;  %v62_v17 = vmul.f32 %v6716_v10, %v61_v15  ;;  %v311_v20 = vmul.f32 %v308_v9, %v6690_v1  ;;  %v677_v21 = vstv %s5933_s21  ;;  %s6245_s11 = sld [smem:[#allocation2 + $0x45]]  ;;  %s6271_s12 = sld [smem:[#allocation2 + $0x4a]] }
  0x18   :  { %289 = vperm.xlu1 %6582, %v6700_v3   ;;  %285 = vperm.xlu0 %6581, %v6685_v0   ;;  %v678_v23 = vmul.f32 %v677_v21, %v6685_v0  ;;  %v680_v24 = vmul.f32 %v677_v21, %v6690_v1  ;;  %v1040_v25 = vstv %s5959_s24  ;;  %v312_v26 = vmul.f32 %v308_v9, %v6705_v4  ;;  %s6297_s13 = sld [smem:[#allocation2 + $0x4f]]  ;;  %s6848_s16 = sld [smem:[#allocation2 + $0x5]] }
  0x19   :  { %v6728_v19 = vadd.f32 %v62_v17, %v60_v16  ;;  %v1041_v27 = vmul.f32 %v1040_v25, %v6685_v0  ;;  %v679_v28 = vmul.f32 %v677_v21, %v6700_v3  ;;  %v1043_v29 = vmul.f32 %v1040_v25, %v6690_v1  ;;  %s6850_s17 = sld [smem:[#allocation2 + $0x6]]  ;;  %s5911_s24 = sld [smem:[#allocation2 + $0x3]] }
  0x1a   :  { %v1403_v30 = vstv %s5985_s25  ;;  %v681_v31 = vmul.f32 %v677_v21, %v6705_v4  ;;  %v1042_v33 = vmul.f32 %v1040_v25, %v6700_v3  ;;  %v1766_v35 = vstv %s6011_s26  ;;  %s5910_s25 = sld [smem:[#allocation2 + $0x2]]  ;;  %s5932_s14 = sld [smem:[#allocation2 + $0x8]] }
  0x1b   :  { %v182_v22 = vcombine.high %v6728_v19, %v6728_v19  ;;  %v1404_v32 = vmul.f32 %v1403_v30, %v6685_v0  ;;  %v1406_v34 = vmul.f32 %v1403_v30, %v6690_v1  ;;  %v1044_v36 = vmul.f32 %v1040_v25, %v6705_v4  ;;  %s5931_s15 = sld [smem:[#allocation2 + $0x7]]  ;;  %s7067_s21 = sld [smem:[#allocation2 + $0x10]] }
  0x1c   :  { %6583 = vset.pattern.permute.xlu1 %v6637_v18  ;;  %6584 = vset.pattern.permute.xlu0 %v6637_v18  ;;  %v1767_v37 = vmul.f32 %v1766_v35, %v6685_v0  ;;  %v1405_v38 = vmul.f32 %v1403_v30, %v6700_v3  ;;  %v1769_v39 = vmul.f32 %v1766_v35, %v6690_v1  ;;  %v2129_v40 = vstv %s6037_s27  ;;  %s7065_s20 = sld [smem:[#allocation2 + $0xf]]  ;;  %s7163_s18 = sld [smem:[#allocation2 + $0x14]] }
  0x1d   :  { %315 = vperm.xlu1 %6583, %v309_v12   ;;  %320 = vperm.xlu0 %6584, %v310_v13   ;;  %v1407_v41 = vmul.f32 %v1403_v30, %v6705_v4  ;;  %v2130_v42 = vmul.f32 %v2129_v40, %v6685_v0  ;;  %v1768_v43 = vmul.f32 %v1766_v35, %v6700_v3  ;;  %v2492_v45 = vstv %s6063_s28  ;;  %s7165_s19 = sld [smem:[#allocation2 + $0x15]]  ;;  %s5984_s26 = sld [smem:[#allocation2 + $0x12]] }
  0x1e   :  { %5920 = vmatprep.subr.msk.mxu0 %vm87_vm0, %v182_v22  ;;  %v2132_v44 = vmul.f32 %v2129_v40, %v6690_v1  ;;  %v1770_v46 = vmul.f32 %v1766_v35, %v6705_v4  ;;  %v2493_v47 = vmul.f32 %v2492_v45, %v6685_v0  ;;  %v2131_v48 = vmul.f32 %v2129_v40, %v6700_v3  ;;  %s5983_s27 = sld [smem:[#allocation2 + $0x11]]  ;;  %s7319_s22 = sld [smem:[#allocation2 + $0x1e]] }
  0x1f   :  { %v2495_v49 = vmul.f32 %v2492_v45, %v6690_v1  ;;  %v2855_v50 = vstv %s6089_s29  ;;  %v2133_v51 = vmul.f32 %v2129_v40, %v6705_v4  ;;  %v2494_v53 = vmul.f32 %v2492_v45, %v6700_v3  ;;  %s7321_s23 = sld [smem:[#allocation2 + $0x1f]]  ;;  %s7480_s28 = sld [smem:[#allocation2 + $0x28]] }
  0x20   :  { %v2856_v52 = vmul.f32 %v2855_v50, %v6685_v0  ;;  %v2858_v54 = vmul.f32 %v2855_v50, %v6690_v1  ;;  %v3218_v55 = vstv %s6115_s30  ;;  %v2496_v56 = vmul.f32 %v2492_v45, %v6705_v4  ;;  %s6987_s30 = sld [smem:[#allocation2 + $0xa]]  ;;  %s7482_s29 = sld [smem:[#allocation2 + $0x29]] }
  0x21   :  { %6585 = vset.pattern.permute.xlu1 %v6635_v5  ;;  %325 = vperm.xlu0 %6584, %v311_v20   ;;  %v3219_v57 = vmul.f32 %v3218_v55, %v6685_v0  ;;  %v2857_v58 = vmul.f32 %v2855_v50, %v6700_v3  ;;  %v3221_v59 = vmul.f32 %v3218_v55, %v6690_v1  ;;  %v3581_v60 = vstv %s6141_s8  ;;  %s6989_s8 = sld [smem:[#allocation2 + $0xb]] }
  0x22   :  { %293 = vperm.xlu1 %6585, %v6690_v1   ;;  %v2859_v61 = vmul.f32 %v2855_v50, %v6705_v4  ;;  %v3582_v62 = vmul.f32 %v3581_v60, %v6685_v0  ;;  %v3220_v63 = vmul.f32 %v3218_v55, %v6700_v3  ;;  %v3584_v2 = vmul.f32 %v3581_v60, %v6690_v1 }
  0x23   :  { %v3944_v5 = vstv %s6167_s0  ;;  %v3222_v6 = vmul.f32 %v3218_v55, %v6705_v4  ;;  %v3583_v9 = vmul.f32 %v3581_v60, %v6700_v3  ;;  %v4307_v12 = vstv %s6193_s9  ;;  %s7241_s0 = sld [smem:[#allocation2 + $0x19]]  ;;  %s7243_s9 = sld [smem:[#allocation2 + $0x1a]] }
  0x24   :  { %v3945_v8 = vmul.f32 %v3944_v5, %v6685_v0  ;;  %v3947_v11 = vmul.f32 %v3944_v5, %v6690_v1  ;;  %v3585_v13 = vmul.f32 %v3581_v60, %v6705_v4  ;;  %v4308_v14 = vmul.f32 %v4307_v12, %v6685_v0 }
  0x25   :  { %684 = vperm.xlu0 %6584, %v678_v23   ;;  %v3946_v15 = vmul.f32 %v3944_v5, %v6700_v3  ;;  %v4310_v16 = vmul.f32 %v4307_v12, %v6690_v1  ;;  %v4670_v17 = vstv %s6219_s10  ;;  %v3948_v20 = vmul.f32 %v3944_v5, %v6705_v4  ;;  %s6114_s10 = sld [smem:[#allocation2 + $0x2b]] }
  0x26   :  { %297 = vperm.xlu1 %6585, %v6705_v4   ;;  %v4671_v21 = vmul.f32 %v4670_v17, %v6685_v0  ;;  %v4309_v22 = vmul.f32 %v4307_v12, %v6700_v3  ;;  %v4673_v23 = vmul.f32 %v4670_v17, %v6690_v1  ;;  %v4311_v25 = vmul.f32 %v4307_v12, %v6705_v4  ;;  %v5935_v12 = vld [vmem:[%s8161_s3 + $0x8] sm:$0xff] }
  0x29   :  { %694 = vperm.xlu0 %6584, %v680_v24   ;;  %v5033_v24 = vstv %s6245_s11  ;;  %s6113_s11 = sld [smem:[#allocation2 + $0x2a]] }
  0x2a   :  { %6586 = vset.pattern.permute.xlu1 %v6637_v18  ;;  %v5035_v35 = vmul.f32 %v5033_v24, %v6700_v3 }
  0x2b   :  { %330 = vperm.xlu1 %6586, %v312_v26   ;;  %v5034_v26 = vmul.f32 %v5033_v24, %v6685_v0 }
  0x2d   :  { %1047 = vperm.xlu0 %6584, %v1041_v27  }
  0x2f   :  { %689 = vperm.xlu1 %6586, %v679_v28   ;;  %v4672_v28 = vmul.f32 %v4670_v17, %v6700_v3 }
  0x31   :  { %1057 = vperm.xlu0 %6584, %v1043_v29   ;;  %v5036_v29 = vmul.f32 %v5033_v24, %v6690_v1 }
  0x33   :  { %699 = vperm.xlu1 %6586, %v681_v31  }
  0x35   :  { %1410 = vperm.xlu0 %6584, %v1404_v32   ;;  %v5396_v32 = vstv %s6271_s12  ;;  %s5958_s12 = sld [smem:[#allocation2 + $0xd]] }
  0x37   :  { %1052 = vperm.xlu1 %6586, %v1042_v33   ;;  %v4674_v33 = vmul.f32 %v4670_v17, %v6705_v4 }
  0x39   :  { %1420 = vperm.xlu0 %6584, %v1406_v34   ;;  %v5397_v34 = vmul.f32 %v5396_v32, %v6685_v0 }
  0x3b   :  { %1062 = vperm.xlu1 %6586, %v1044_v36  }
  0x3d   :  { %1773 = vperm.xlu0 %6584, %v1767_v37   ;;  %v5399_v37 = vmul.f32 %v5396_v32, %v6690_v1 }
  0x3f   :  { %1415 = vperm.xlu1 %6586, %v1405_v38   ;;  %v5759_v38 = vstv %s6297_s13  ;;  %s5957_s13 = sld [smem:[#allocation2 + $0xc]] }
  0x40   :  { %v5760_v40 = vmul.f32 %v5759_v38, %v6685_v0  ;;  %v5763_v45 = vmul.f32 %v5759_v38, %v6705_v4 }
  0x41   :  { %1783 = vperm.xlu0 %6584, %v1769_v39   ;;  %v5037_v39 = vmul.f32 %v5033_v24, %v6705_v4 }
  0x43   :  { %1425 = vperm.xlu1 %6586, %v1407_v41   ;;  %v5398_v41 = vmul.f32 %v5396_v32, %v6700_v3 }
  0x45   :  { %2136 = vperm.xlu0 %6584, %v2130_v42   ;;  %v5762_v42 = vmul.f32 %v5759_v38, %v6690_v1 }
  0x47   :  { %1778 = vperm.xlu1 %6586, %v1768_v43   ;;  %v5400_v43 = vmul.f32 %v5396_v32, %v6705_v4 }
  0x49   :  { %2146 = vperm.xlu0 %6584, %v2132_v44   ;;  %v5761_v44 = vmul.f32 %v5759_v38, %v6700_v3 }
  0x4b   :  { %1788 = vperm.xlu1 %6586, %v1770_v46   ;;  %v6835_v46 = vld [vmem:[%s8163_s5] sm:$0xf] }
  0x4d   :  { %2499 = vperm.xlu0 %6584, %v2493_v47   ;;  %v6638_v47 = vmov 32  }
  0x4f   :  { %2141 = vperm.xlu1 %6586, %v2131_v48  }
  0x51   :  { %2509 = vperm.xlu0 %6584, %v2495_v49  }
  0x53   :  { %2151 = vperm.xlu1 %6586, %v2133_v51  }
  0x55   :  { %2862 = vperm.xlu0 %6584, %v2856_v52  }
  0x57   :  { %2504 = vperm.xlu1 %6586, %v2494_v53  }
  0x59   :  { %2872 = vperm.xlu0 %6584, %v2858_v54  }
  0x5b   :  { %2514 = vperm.xlu1 %6586, %v2496_v56  }
  0x5d   :  { %3225 = vperm.xlu0 %6584, %v3219_v57  }
  0x5f   :  { %2867 = vperm.xlu1 %6586, %v2857_v58  }
  0x61   :  { %3235 = vperm.xlu0 %6584, %v3221_v59  }
  0x63   :  { %2877 = vperm.xlu1 %6586, %v2859_v61  }
  0x65   :  { %3588 = vperm.xlu0 %6584, %v3582_v62  }
  0x67   :  { %3230 = vperm.xlu1 %6586, %v3220_v63  }
  0x69   :  { %3598 = vperm.xlu0 %6584, %v3584_v2  }
  0x6b   :  { %3240 = vperm.xlu1 %6586, %v3222_v6  }
  0x6d   :  { %3951 = vperm.xlu0 %6584, %v3945_v8  }
  0x6f   :  { %3593 = vperm.xlu1 %6586, %v3583_v9  }
  0x71   :  { %3961 = vperm.xlu0 %6584, %v3947_v11  }
  0x73   :  { %3603 = vperm.xlu1 %6586, %v3585_v13  }
  0x75   :  { %4314 = vperm.xlu0 %6584, %v4308_v14  }
  0x77   :  { %3956 = vperm.xlu1 %6586, %v3946_v15  }
  0x79   :  { %4324 = vperm.xlu0 %6584, %v4310_v16  }
  0x7b   :  { %3966 = vperm.xlu1 %6586, %v3948_v20  }
  0x7d   :  { %4677 = vperm.xlu0 %6584, %v4671_v21  }
  0x7f   :  { %4319 = vperm.xlu1 %6586, %v4309_v22   ;;  %v6860_v22 = vclamps-f32 %v5935_v12, 20.0 }
  0x81   :  { %4687 = vperm.xlu0 %6584, %v4673_v23  }
  0x82   :  { %v6785_v27 = vpop.permute.xlu0 %68  ;;  %v6796_v31 = vpop.permute.xlu1 %72 }
  0x83   :  { %5916 = vmatmul.mubr.msk.f32.vlgmr.msra.gmra.mrb[0].mxu0 %vm78_vm1, %v6785_v27  ;;  %4329 = vperm.xlu1 %6586, %v4311_v25  }
  0x84   :  { %162 = vmatprep.mubr.f32.mxu0 %v8166_v7  ;;  %5921 = vmatpush1.msk.msra.mxu0 %vm87_vm0, %v6728_v19 }
  0x85   :  { %5040 = vperm.xlu0 %6584, %v5034_v26   ;;  %v5934_v26 = vld [vmem:[%s8159_s1 + $0x8] sm:$0xff] }
  0x86   :  { %v6794_v30 = vpop.permute.xlu0 %70  ;;  %v6806_v36 = vpop.permute.xlu1 %74 }
  0x87   :  { %5917 = vmatmul.mubr.msk.f32.gmra.mrb[2].mxu0 %vm78_vm1, %v6794_v30  ;;  %4682 = vperm.xlu1 %6586, %v4672_v28   ;;  %v474_v28 = vstv %s6848_s16  ;;  %s6010_s16 = sld [smem:[#allocation2 + $0x17]] }
  0x88   :  { %168 = vmatprep.mubr.f32.mxu0 %v8166_v7  ;;  %v475_v38 = vmul.f32 %v5934_v26, %v474_v28 }
  0x89   :  { %5050 = vperm.xlu0 %6584, %v5036_v29   ;;  %v476_v29 = vstv %s6850_s17  ;;  %s6009_s17 = sld [smem:[#allocation2 + $0x16]] }
  0x8b   :  { %5918 = vmatmul.mubr.msk.f32.gmra.mrb[4].mxu0 %vm78_vm1, %v6796_v31  ;;  %4692 = vperm.xlu1 %6586, %v4674_v33  }
  0x8c   :  { %174 = vmatprep.mubr.f32.mxu0 %v8166_v7 }
  0x8d   :  { %5403 = vperm.xlu0 %6584, %v5397_v34  }
  0x8f   :  { %5919 = vmatmul.mubr.msk.f32.gmra.mrb[6].mxu0 %vm78_vm1, %v6806_v36  ;;  %5045 = vperm.xlu1 %6586, %v5035_v35  }
  0x90   :  { %259 = vmatprep.mubr.f32.mxu0 %v8166_v7 }
  0x91   :  { %5413 = vperm.xlu0 %6584, %v5399_v37  }
  0x93   :  { %5922 = vmatmul.mubr.msk.f32.vlgmr.msra.gmra.mrb[0].mxu0 %vm78_vm1, %v6685_v0  ;;  %5055 = vperm.xlu1 %6586, %v5037_v39   ;;  %v477_v39 = vmul.f32 %v6860_v22, %v476_v29 }
  0x94   :  { %265 = vmatprep.mubr.f32.mxu0 %v8166_v7 }
  0x95   :  { %5766 = vperm.xlu0 %6584, %v5760_v40  }
  0x97   :  { %5923 = vmatmul.mubr.msk.f32.gmra.mrb[2].mxu0 %vm78_vm1, %v6700_v3  ;;  %5408 = vperm.xlu1 %6586, %v5398_v41   ;;  %v6839_v48 = vpop.permute.xlu1 %289  ;;  %v6841_v50 = vpop.permute.xlu0 %285 }
  0x98   :  { %271 = vmatprep.mubr.f32.mxu0 %v8166_v7 }
  0x99   :  { %5776 = vperm.xlu0 %6584, %v5762_v42   ;;  %v5937_v42 = vld [vmem:[%s8160_s2 + $0x8] sm:$0xff] }
  0x9b   :  { %5924 = vmatmul.mubr.msk.f32.gmra.mrb[4].mxu0 %vm78_vm1, %v6690_v1  ;;  %5418 = vperm.xlu1 %6586, %v5400_v43  }
  0x9c   :  { %277 = vmatprep.mubr.f32.mxu0 %v8166_v7  ;;  %v316_v49 = vpop.permute.xlu1 %315 }
  0x9d   :  { %6587 = vset.pattern.permute.xlu0 %v6638_v47 }
  0x9e   :  { %351 = vperm.xlu0 %6587, %v6835_v46  }
  0x9f   :  { %5925 = vmatmul.mubr.msk.f32.gmra.mrb[6].mxu0 %vm78_vm1, %v6705_v4  ;;  %5771 = vperm.xlu1 %6586, %v5761_v44  }
  0xa0   :  { %782 = vmatprep.mubr.f32.mxu0 %v8166_v7 }
  0xa1   :  { %v6844_v54 = vpop.permute.xlu1 %293 }
  0xa2   :  { %6588 = vset.pattern.permute.xlu0 %v6637_v18  ;;  %v321_v18 = vpop.permute.xlu0 %320 }
  0xa3   :  { %5781 = vperm.xlu1 %6586, %v5763_v45  }
  0xa5   :  { %v6853_v63 = vpop.permute.xlu1 %297 }
  0xa6   :  { %v326_v17 = vpop.permute.xlu0 %325 }
  0xaa   :  { %v331_v32 = vpop.permute.xlu1 %330 }
 0x166   :  { %v261_v51 = vpop.f32.mrb[0].mxu0 }
 0x167   :  { %v300_v52 = vadd.f32 %v6841_v50, %v261_v51  ;;  %v263_v53 = vpop.f32.mrb[1].mxu0  ;;  %v6873_v51 = vadd.f32 %v477_v39, %v475_v38  ;;  %v434_v38 = vstv %s5911_s24  ;;  %s6140_s24 = sld [smem:[#allocation2 + $0x30]] }
 0x168   :  { %v301_v55 = vadd.f32 %v6841_v50, %v263_v53  ;;  %v6906_v53 = vpop.permute.xlu0 %684 }
 0x169   :  { %v333_v57 = vadd.f32 %v316_v49, %v300_v52  ;;  %v575_v52 = vcombine.high %v6873_v51, %v6873_v51 }
 0x16a   :  { %v267_v56 = vpop.f32.mrb[2].mxu0  ;;  %v334_v61 = vadd.f32 %v316_v49, %v301_v55  ;;  %v480_v49 = vcombine.high %v5937_v42, %v5937_v42 }
 0x16b   :  { %v302_v58 = vadd.f32 %v6839_v48, %v267_v56  ;;  %v269_v59 = vpop.f32.mrb[3].mxu0  ;;  %v341_v6 = vmax.f32 %v333_v57, 0.0 }
 0x16c   :  { %v303_v60 = vadd.f32 %v6839_v48, %v269_v59  ;;  %v342_v14 = vmax.f32 %v334_v61, 0.0  ;;  %v6911_v55 = vpop.permute.xlu0 %694 }
 0x16d   :  { %v335_v62 = vadd.f32 %v321_v18, %v302_v58 }
 0x16e   :  { %v273_v2 = vpop.f32.mrb[4].mxu0  ;;  %v336_v5 = vadd.f32 %v321_v18, %v303_v60 }
 0x16f   :  { %v343_v8 = vmax.f32 %v335_v62, 0.0  ;;  %v304_v9 = vadd.f32 %v6844_v54, %v273_v2  ;;  %v275_v11 = vpop.f32.mrb[5].mxu0 }
 0x170   :  { %v305_v13 = vadd.f32 %v6844_v54, %v275_v11  ;;  %v344_v15 = vmax.f32 %v336_v5, 0.0  ;;  %v6913_v56 = vpop.permute.xlu0 %1047 }
 0x171   :  { %v6321_v16 = vpack.c.bf16 %v343_v8, %v341_v6  ;;  %v337_v23 = vadd.f32 %v326_v17, %v304_v9 }
 0x172   :  { %v279_v20 = vpop.f32.mrb[6].mxu0  ;;  %v6319_v21 = vpack.c.bf16 %v344_v15, %v342_v14  ;;  %v338_v33 = vadd.f32 %v326_v17, %v305_v13 }
 0x173   :  { %v306_v24 = vadd.f32 %v6853_v63, %v279_v20  ;;  %v281_v25 = vpop.f32.mrb[7].mxu0  ;;  %v345_v40 = vmax.f32 %v337_v23, 0.0 }
 0x174   :  { %v307_v34 = vadd.f32 %v6853_v63, %v281_v25  ;;  %6320 = vmatprep.subr.bf16.mxu1 %v6319_v21  ;;  %v346_v43 = vmax.f32 %v338_v33, 0.0  ;;  %v6915_v57 = vpop.permute.xlu0 %1057 }
 0x175   :  { %v339_v35 = vadd.f32 %v331_v32, %v306_v24  ;;  %6322 = vmatpush1.bf16.msra.mxu1 %v6321_v16 }
 0x176   :  { %v340_v37 = vadd.f32 %v331_v32, %v307_v34  ;;  %v444_v34 = vcombine.high %v6716_v10, %v6716_v10 }
 0x177   :  { %v347_v41 = vmax.f32 %v339_v35, 0.0 }
 0x178   :  { %v348_v44 = vmax.f32 %v340_v37, 0.0  ;;  %v6917_v58 = vpop.permute.xlu0 %1410 }
 0x179   :  { %v6325_v45 = vpack.c.bf16 %v347_v41, %v345_v40 }
 0x17a   :  { %v6323_v47 = vpack.c.bf16 %v348_v44, %v346_v43 }
 0x17c   :  { %6324 = vmatprep.subr.bf16.mxu1 %v6323_v47  ;;  %v6919_v59 = vpop.permute.xlu0 %1420 }
 0x17d   :  { %6326 = vmatpush1.bf16.msra.mxu1 %v6325_v45 }
 0x17e   :  { %5938 = vmatprep.subr.msk.mxu1 %vm87_vm0, %v480_v49 }
 0x180   :  { %5926 = vmatmul.mubr.msk.f32.vlgmr.msra.gmra.mrb[0].mxu1 %vm354_vm2, %v6835_v46  ;;  %v6921_v18 = vpop.permute.xlu0 %1773 }
 0x181   :  { %5939 = vmatpush1.msk.msra.mxu1 %vm87_vm0, %v5937_v42  ;;  %549 = vmatprep.mubr.f32.mxu1 %v8166_v7  ;;  %v432_v42 = vstv %s5910_s25  ;;  %s6139_s25 = sld [smem:[#allocation2 + $0x2f]] }
 0x182   :  { %5944 = vmatprep.subr.msk.mxu1 %vm87_vm0, %v575_v52  ;;  %v433_v49 = vmul.f32 %v432_v42, %v6728_v19 }
 0x184   :  { %5940 = vmatmul.mubr.msk.f32.vlgmr.msra.gmra.mrb[2].mxu1 %vm78_vm1, %v6785_v27  ;;  %v6923_v60 = vpop.permute.xlu0 %1783 }
 0x185   :  { %555 = vmatprep.mubr.f32.mxu1 %v8166_v7  ;;  %5945 = vmatpush1.msk.msra.mxu1 %vm87_vm0, %v6873_v51 }
 0x188   :  { %5941 = vmatmul.mubr.msk.f32.gmra.mrb[4].mxu1 %vm78_vm1, %v6794_v30  ;;  %v6925_v61 = vpop.permute.xlu0 %2136 }
 0x189   :  { %561 = vmatprep.mubr.f32.mxu1 %v8166_v7 }
 0x18c   :  { %5942 = vmatmul.mubr.msk.f32.gmra.mrb[6].mxu1 %vm78_vm1, %v6796_v31  ;;  %v6927_v62 = vpop.permute.xlu0 %2146 }
 0x18d   :  { %567 = vmatprep.mubr.f32.mxu1 %v8166_v7 }
 0x190   :  { %5943 = vmatmul.mubr.msk.f32.gmra.mrb[8].mxu1 %vm78_vm1, %v6806_v36  ;;  %v6929_v2 = vpop.permute.xlu0 %2499 }
 0x191   :  { %644 = vmatprep.mubr.f32.mxu1 %v8166_v7 }
 0x194   :  { %5946 = vmatmul.mubr.msk.f32.vlgmr.msra.gmra.mrb[2].mxu1 %vm78_vm1, %v6685_v0  ;;  %v6931_v5 = vpop.permute.xlu0 %2509 }
 0x195   :  { %650 = vmatprep.mubr.f32.mxu1 %v8166_v7 }
 0x198   :  { %5947 = vmatmul.mubr.msk.f32.gmra.mrb[4].mxu1 %vm78_vm1, %v6700_v3  ;;  %v6933_v6 = vpop.permute.xlu0 %2862 }
 0x199   :  { %656 = vmatprep.mubr.f32.mxu1 %v8166_v7 }
 0x19c   :  { %5948 = vmatmul.mubr.msk.f32.gmra.mrb[6].mxu1 %vm78_vm1, %v6690_v1  ;;  %v6935_v8 = vpop.permute.xlu0 %2872 }
 0x19d   :  { %662 = vmatprep.mubr.f32.mxu1 %v8166_v7 }
 0x1a0   :  { %5949 = vmatmul.mubr.msk.f32.gmra.mrb[8].mxu1 %vm78_vm1, %v6705_v4  ;;  %v6937_v9 = vpop.permute.xlu0 %3225 }
 0x1a1   :  { %1145 = vmatprep.mubr.f32.mxu1 %v8166_v7 }
 0x1a4   :  { %v6939_v11 = vpop.permute.xlu0 %3235 }
 0x1a8   :  { %v6941_v12 = vpop.permute.xlu0 %3588 }
 0x1ac   :  { %v6943_v13 = vpop.permute.xlu0 %3598 }
 0x1b0   :  { %v6945_v14 = vpop.permute.xlu0 %3951 }
 0x1b4   :  { %v6947_v15 = vpop.permute.xlu0 %3961 }
 0x1b8   :  { %v6949_v16 = vpop.permute.xlu0 %4314 }
 0x1bc   :  { %v6951_v17 = vpop.permute.xlu0 %4324 }
 0x1c0   :  { %v6953_v20 = vpop.permute.xlu0 %4677 }
 0x1c4   :  { %v6955_v21 = vpop.permute.xlu0 %4687 }
 0x1c8   :  { %v6957_v23 = vpop.permute.xlu0 %5040 }
 0x1cc   :  { %v6959_v24 = vpop.permute.xlu0 %5050 }
 0x1cd   :  { %8173 = vst [vmem:[#allocation5_spill] sm:$0xff] %v6959_v24 }
 0x1d0   :  { %v6961_v25 = vpop.permute.xlu0 %5403 }
 0x1d1   :  { %8174 = vst [vmem:[#allocation6_spill] sm:$0xff] %v6961_v25 }
 0x1d4   :  { %v6963_v26 = vpop.permute.xlu0 %5413 }
 0x1d5   :  { %8175 = vst [vmem:[#allocation7_spill] sm:$0xff] %v6963_v26 }
 0x1d8   :  { %v6965_v28 = vpop.permute.xlu0 %5766 }
 0x1d9   :  { %8176 = vst [vmem:[#allocation8_spill] sm:$0xff] %v6965_v28 }
 0x1dc   :  { %v6967_v29 = vpop.permute.xlu0 %5776 }
 0x1dd   :  { %8177 = vst [vmem:[#allocation9_spill] sm:$0xff] %v6967_v29 }
 0x1e0   :  { %v6969_v32 = vpop.permute.xlu0 %351 }
 0x253   :  { %v423_v33 = vpop.f32.mrb[0].mxu1 }
 0x254   :  { %v424_v35 = vadd.f32 %v423_v33, %v6969_v32  ;;  %v425_v37 = vpop.f32.mrb[1].mxu1 }
 0x255   :  { %v426_v39 = vadd.f32 %v425_v37, %v6969_v32 }
 0x256   :  { %v5927_v40 = vclamps-f32 %v424_v35, 20.0  ;;  %v446_v41 = vsub.f32 %v424_v35, %v6716_v10 }
 0x257   :  { %v5928_v43 = vclamps-f32 %v426_v39, 20.0  ;;  %v447_v44 = vsub.f32 %v426_v39, %v444_v34 }
 0x258   :  { %v435_v45 = vmul.f32 %v5927_v40, %v434_v38  ;;  %v448_v47 = vmul.f32 %v446_v41, %v446_v41 }
 0x259   :  { %v436_v52 = vmul.f32 %v5928_v43, %v434_v38  ;;  %v449_v7 = vmul.f32 %v447_v44, %v447_v44 }
 0x25b   :  { %v439_v29 = vcombine.low %v435_v45, %v436_v52  ;;  %v452_v28 = vcombine.low %v448_v47, %v449_v7  ;;  %v5961_v47 = vld [vmem:[%s8161_s3 + $0x10] sm:$0xff] }
 0x25d   :  { %v441_v26 = vsub.f32 %v433_v49, %v439_v29  ;;  %454 = vst [vmem:[%s8165_s7] sm:$0xff] %v452_v28  ;;  %v690_v28 = vpop.permute.xlu1 %689 }
 0x25f   :  { %442 = vst [vmem:[%s8164_s6] sm:$0xff] %v441_v26 }
 0x267   :  { %v646_v10 = vpop.f32.mrb[2].mxu1 }
 0x268   :  { %v669_v33 = vadd.f32 %v646_v10, %v6841_v50  ;;  %v648_v34 = vpop.f32.mrb[3].mxu1 }
 0x269   :  { %v670_v35 = vadd.f32 %v648_v34, %v6841_v50 }
 0x26a   :  { %v702_v37 = vadd.f32 %v6906_v53, %v669_v33 }
 0x26b   :  { %v652_v19 = vpop.f32.mrb[4].mxu1  ;;  %v703_v38 = vadd.f32 %v6906_v53, %v670_v35  ;;  %v6998_v35 = vclamps-f32 %v5961_v47, 20.0 }
 0x26c   :  { %v671_v7 = vadd.f32 %v652_v19, %v6839_v48  ;;  %v654_v29 = vpop.f32.mrb[5].mxu1  ;;  %v710_v42 = vmax.f32 %v702_v37, 0.0 }
 0x26d   :  { %v672_v26 = vadd.f32 %v654_v29, %v6839_v48  ;;  %v711_v49 = vmax.f32 %v703_v38, 0.0  ;;  %v5960_v29 = vld [vmem:[%s8159_s1 + $0x10] sm:$0xff]  ;;  %v700_v38 = vpop.permute.xlu1 %699 }
 0x26e   :  { %v704_v39 = vadd.f32 %v690_v28, %v671_v7 }
 0x26f   :  { %v705_v40 = vadd.f32 %v690_v28, %v672_v26  ;;  %v658_v41 = vpop.f32.mrb[6].mxu1  ;;  %v837_v28 = vstv %s6987_s30  ;;  %v839_v26 = vstv %s6989_s8  ;;  %s7734_s30 = sld [smem:[#allocation2 + $0x37]]  ;;  %s7736_s8 = sld [smem:[#allocation2 + $0x38]] }
 0x270   :  { %v712_v43 = vmax.f32 %v704_v39, 0.0  ;;  %v673_v44 = vadd.f32 %v658_v41, %v6844_v54  ;;  %v660_v45 = vpop.f32.mrb[7].mxu1 }
 0x271   :  { %v713_v52 = vmax.f32 %v705_v40, 0.0  ;;  %v674_v53 = vadd.f32 %v660_v45, %v6844_v54 }
 0x272   :  { %v6329_v10 = vpack.c.bf16 %v712_v43, %v710_v42  ;;  %v706_v19 = vadd.f32 %v6911_v55, %v673_v44  ;;  %v838_v43 = vmul.f32 %v5960_v29, %v837_v28  ;;  %v840_v44 = vmul.f32 %v6998_v35, %v839_v26 }
 0x273   :  { %v664_v33 = vpop.f32.mrb[8].mxu1  ;;  %v6327_v34 = vpack.c.bf16 %v713_v52, %v711_v49  ;;  %v707_v39 = vadd.f32 %v6911_v55, %v674_v53  ;;  %v5963_v49 = vld [vmem:[%s8160_s2 + $0x10] sm:$0xff]  ;;  %v793_v29 = vstv %s5931_s15  ;;  %s7404_s15 = sld [smem:[#allocation2 + $0x24]] }
 0x274   :  { %v675_v37 = vadd.f32 %v664_v33, %v6853_v63  ;;  %v666_v7 = vpop.f32.mrb[9].mxu1  ;;  %v714_v45 = vmax.f32 %v706_v19, 0.0  ;;  %v843_v55 = vcombine.high %v5963_v49, %v5963_v49  ;;  %v7013_v53 = vadd.f32 %v840_v44, %v838_v43 }
 0x275   :  { %v676_v40 = vadd.f32 %v666_v7, %v6853_v63  ;;  %6328 = vmatprep.subr.bf16.mxu0 %v6327_v34  ;;  %v715_v52 = vmax.f32 %v707_v39, 0.0  ;;  %v8178_v34 = vmov 0.0   ;;  %v795_v19 = vstv %s5932_s14  ;;  %s7402_s14 = sld [smem:[#allocation2 + $0x23]] }
 0x276   :  { %v708_v41 = vadd.f32 %v700_v38, %v675_v37  ;;  %6330 = vmatpush1.bf16.msra.mxu0 %v6329_v10  ;;  %v938_v10 = vcombine.high %v7013_v53, %v7013_v53  ;;  %v794_v39 = vmul.f32 %v793_v29, %v6873_v51 }
 0x277   :  { %v709_v42 = vadd.f32 %v700_v38, %v676_v40 }
 0x278   :  { %v716_v47 = vmax.f32 %v708_v41, 0.0 }
 0x279   :  { %v717_v33 = vmax.f32 %v709_v42, 0.0 }
 0x27a   :  { %v6333_v25 = vpack.c.bf16 %v716_v47, %v714_v45 }
 0x27b   :  { %v6331_v24 = vpack.c.bf16 %v717_v33, %v715_v52 }
 0x27d   :  { %6332 = vmatprep.subr.bf16.mxu0 %v6331_v24  ;;  %v806_v24 = vcombine.high %v6860_v22, %v6860_v22 }
 0x27e   :  { %6334 = vmatpush1.bf16.msra.mxu0 %v6333_v25 }
 0x27f   :  { %5964 = vmatprep.subr.msk.mxu0 %vm87_vm0, %v843_v55 }
 0x281   :  { %5950 = vmatmul.mubr.msk.f32.vlgmr.msra.gmra.mrb[8].mxu0 %vm354_vm2, %v6835_v46 }
 0x282   :  { %5965 = vmatpush1.msk.msra.mxu0 %vm87_vm0, %v5963_v49  ;;  %912 = vmatprep.mubr.f32.mxu0 %v8178_v34 }
 0x283   :  { %5970 = vmatprep.subr.msk.mxu0 %vm87_vm0, %v938_v10  ;;  %v1053_v10 = vpop.permute.xlu1 %1052 }
 0x285   :  { %5966 = vmatmul.mubr.msk.f32.vlgmr.msra.gmra.mrb[10].mxu0 %vm78_vm1, %v6785_v27 }
 0x286   :  { %918 = vmatprep.mubr.f32.mxu0 %v8178_v34  ;;  %5971 = vmatpush1.msk.msra.mxu0 %vm87_vm0, %v7013_v53 }
 0x289   :  { %5967 = vmatmul.mubr.msk.f32.gmra.mrb[12].mxu0 %vm78_vm1, %v6794_v30 }
 0x28a   :  { %924 = vmatprep.mubr.f32.mxu0 %v8178_v34 }
 0x28d   :  { %5968 = vmatmul.mubr.msk.f32.gmra.mrb[14].mxu0 %vm78_vm1, %v6796_v31 }
 0x28e   :  { %930 = vmatprep.mubr.f32.mxu0 %v8178_v34 }
 0x291   :  { %5969 = vmatmul.mubr.msk.f32.gmra.mrb[16].mxu0 %vm78_vm1, %v6806_v36 }
 0x292   :  { %1007 = vmatprep.mubr.f32.mxu0 %v8178_v34 }
 0x295   :  { %5972 = vmatmul.mubr.msk.f32.vlgmr.msra.gmra.mrb[10].mxu0 %vm78_vm1, %v6685_v0 }
 0x296   :  { %1013 = vmatprep.mubr.f32.mxu0 %v8178_v34 }
 0x299   :  { %5973 = vmatmul.mubr.msk.f32.gmra.mrb[12].mxu0 %vm78_vm1, %v6700_v3 }
 0x29a   :  { %1019 = vmatprep.mubr.f32.mxu0 %v8178_v34 }
 0x29d   :  { %5974 = vmatmul.mubr.msk.f32.gmra.mrb[14].mxu0 %vm78_vm1, %v6690_v1 }
 0x29e   :  { %1025 = vmatprep.mubr.f32.mxu0 %v8178_v34 }
 0x2a1   :  { %5975 = vmatmul.mubr.msk.f32.gmra.mrb[16].mxu0 %vm78_vm1, %v6705_v4 }
 0x2a2   :  { %1508 = vmatprep.mubr.f32.mxu0 %v8178_v34 }
 0x354   :  { %v784_v0 = vpop.f32.mrb[8].mxu0 }
 0x355   :  { %v785_v3 = vadd.f32 %v784_v0, %v6969_v32  ;;  %v786_v25 = vpop.f32.mrb[9].mxu0 }
 0x356   :  { %v787_v37 = vadd.f32 %v786_v25, %v6969_v32 }
 0x357   :  { %v5951_v1 = vclamps-f32 %v785_v3, 20.0  ;;  %v808_v7 = vsub.f32 %v785_v3, %v6860_v22 }
 0x358   :  { %v5952_v28 = vclamps-f32 %v787_v37, 20.0  ;;  %v809_v4 = vsub.f32 %v787_v37, %v806_v24 }
 0x359   :  { %v796_v26 = vmul.f32 %v5951_v1, %v795_v19  ;;  %v810_v38 = vmul.f32 %v808_v7, %v808_v7 }
 0x35a   :  { %v797_v40 = vmul.f32 %v5952_v28, %v795_v19  ;;  %v811_v41 = vmul.f32 %v809_v4, %v809_v4  ;;  %v5987_v28 = vld [vmem:[%s8161_s3 + $0x18] sm:$0xff] }
 0x35c   :  { %v800_v42 = vcombine.low %v796_v26, %v797_v40  ;;  %v814_v43 = vcombine.low %v810_v38, %v811_v41  ;;  %v7076_v41 = vclamps-f32 %v5987_v28, 20.0 }
 0x35e   :  { %v802_v44 = vsub.f32 %v794_v39, %v800_v42  ;;  %5954 = vst [vmem:[%s8165_s7 + $0x8] sm:$0xff] %v814_v43 }
 0x360   :  { %5953 = vst [vmem:[%s8164_s6 + $0x8] sm:$0xff] %v802_v44 }
 0x368   :  { %v1009_v22 = vpop.f32.mrb[10].mxu0 }
 0x369   :  { %v1032_v45 = vadd.f32 %v1009_v22, %v6841_v50  ;;  %v1011_v47 = vpop.f32.mrb[11].mxu0  ;;  %v5986_v22 = vld [vmem:[%s8159_s1 + $0x18] sm:$0xff] }
 0x36a   :  { %v1033_v49 = vadd.f32 %v1011_v47, %v6841_v50  ;;  %v1202_v47 = vstv %s7067_s21  ;;  %s7814_s21 = sld [smem:[#allocation2 + $0x3d]] }
 0x36b   :  { %v1065_v52 = vadd.f32 %v6913_v56, %v1032_v45  ;;  %v1200_v45 = vstv %s7065_s20  ;;  %s7812_s20 = sld [smem:[#allocation2 + $0x3c]] }
 0x36c   :  { %v1015_v51 = vpop.f32.mrb[12].mxu0  ;;  %v1066_v0 = vadd.f32 %v6913_v56, %v1033_v49  ;;  %v1063_v49 = vpop.permute.xlu1 %1062 }
 0x36d   :  { %v1034_v33 = vadd.f32 %v1015_v51, %v6839_v48  ;;  %v1017_v55 = vpop.f32.mrb[13].mxu0  ;;  %v1073_v37 = vmax.f32 %v1065_v52, 0.0 }
 0x36e   :  { %v1035_v24 = vadd.f32 %v1017_v55, %v6839_v48  ;;  %v1074_v4 = vmax.f32 %v1066_v0, 0.0  ;;  %v1203_v0 = vmul.f32 %v7076_v41, %v1202_v47 }
 0x36f   :  { %v1067_v3 = vadd.f32 %v1053_v10, %v1034_v33 }
 0x370   :  { %v1068_v25 = vadd.f32 %v1053_v10, %v1035_v24  ;;  %v1021_v19 = vpop.f32.mrb[14].mxu0  ;;  %v1201_v10 = vmul.f32 %v5986_v22, %v1200_v45 }
 0x371   :  { %v1075_v1 = vmax.f32 %v1067_v3, 0.0  ;;  %v1036_v7 = vadd.f32 %v1021_v19, %v6844_v54  ;;  %v1023_v29 = vpop.f32.mrb[15].mxu0 }
 0x372   :  { %v1076_v26 = vmax.f32 %v1068_v25, 0.0  ;;  %v1037_v56 = vadd.f32 %v1023_v29, %v6844_v54  ;;  %v5989_v25 = vld [vmem:[%s8160_s2 + $0x18] sm:$0xff]  ;;  %v7091_v29 = vadd.f32 %v1203_v0, %v1201_v10 }
 0x373   :  { %v6337_v38 = vpack.c.bf16 %v1075_v1, %v1073_v37  ;;  %v1069_v42 = vadd.f32 %v6915_v57, %v1036_v7 }
 0x374   :  { %v1027_v39 = vpop.f32.mrb[16].mxu0  ;;  %v6335_v40 = vpack.c.bf16 %v1076_v26, %v1074_v4  ;;  %v1070_v51 = vadd.f32 %v6915_v57, %v1037_v56  ;;  %v1206_v57 = vcombine.high %v5989_v25, %v5989_v25  ;;  %v1301_v28 = vcombine.high %v7091_v29, %v7091_v29  ;;  %v7118_v4 = vld [vmem:[%s8162_s4] sm:$0xff]  ;;  %v7126_v26 = vld [vmem:[%s8162_s4 + $0x8] sm:$0xff]  ;;  %v7134_v56 = vld [vmem:[%s8162_s4 + $0x10] sm:$0xff] }
 0x375   :  { %v1038_v43 = vadd.f32 %v1027_v39, %v6853_v63  ;;  %v1029_v44 = vpop.f32.mrb[17].mxu0  ;;  %v1077_v24 = vmax.f32 %v1069_v42, 0.0 }
 0x376   :  { %v1039_v52 = vadd.f32 %v1029_v44, %v6853_v63  ;;  %6336 = vmatprep.subr.bf16.mxu1 %v6335_v40  ;;  %v1078_v19 = vmax.f32 %v1070_v51, 0.0  ;;  %v1169_v40 = vcombine.high %v6998_v35, %v6998_v35  ;;  %v1158_v44 = vstv %s5958_s12  ;;  %s6088_s12 = sld [smem:[#allocation2 + $0x26]] }
 0x377   :  { %v1071_v33 = vadd.f32 %v1063_v49, %v1038_v43  ;;  %6338 = vmatpush1.bf16.msra.mxu1 %v6337_v38  ;;  %v7142_v38 = vld [vmem:[%s8162_s4 + $0x18] sm:$0xff] }
 0x378   :  { %v1072_v55 = vadd.f32 %v1063_v49, %v1039_v52  ;;  %v1156_v49 = vstv %s5957_s13  ;;  %s6087_s13 = sld [smem:[#allocation2 + $0x25]] }
 0x379   :  { %v1079_v3 = vmax.f32 %v1071_v33, 0.0  ;;  %v1157_v10 = vmul.f32 %v1156_v49, %v7013_v53 }
 0x37a   :  { %v1080_v37 = vmax.f32 %v1072_v55, 0.0 }
 0x37b   :  { %v6341_v1 = vpack.c.bf16 %v1079_v3, %v1077_v24 }
 0x37c   :  { %v6339_v7 = vpack.c.bf16 %v1080_v37, %v1078_v19 }
 0x37e   :  { %6340 = vmatprep.subr.bf16.mxu1 %v6339_v7 }
 0x37f   :  { %6342 = vmatpush1.bf16.msra.mxu1 %v6341_v1 }
 0x380   :  { %5990 = vmatprep.subr.msk.mxu1 %vm87_vm0, %v1206_v57 }
 0x382   :  { %5976 = vmatmul.mubr.msk.f32.vlgmr.msra.gmra.mrb[10].mxu1 %vm354_vm2, %v6835_v46 }
 0x383   :  { %5991 = vmatpush1.msk.msra.mxu1 %vm87_vm0, %v5989_v25  ;;  %1275 = vmatprep.mubr.f32.mxu1 %v8178_v34 }
 0x384   :  { %5996 = vmatprep.subr.msk.mxu1 %vm87_vm0, %v1301_v28 }
 0x386   :  { %5992 = vmatmul.mubr.msk.f32.vlgmr.msra.gmra.mrb[12].mxu1 %vm78_vm1, %v6785_v27 }
 0x387   :  { %1281 = vmatprep.mubr.f32.mxu1 %v8178_v34  ;;  %5997 = vmatpush1.msk.msra.mxu1 %vm87_vm0, %v7091_v29 }
 0x38a   :  { %5993 = vmatmul.mubr.msk.f32.gmra.mrb[14].mxu1 %vm78_vm1, %v6794_v30 }
 0x38b   :  { %1287 = vmatprep.mubr.f32.mxu1 %v8178_v34 }
 0x38e   :  { %5994 = vmatmul.mubr.msk.f32.gmra.mrb[16].mxu1 %vm78_vm1, %v6796_v31 }
 0x38f   :  { %1293 = vmatprep.mubr.f32.mxu1 %v8178_v34 }
 0x392   :  { %5995 = vmatmul.mubr.msk.f32.gmra.mrb[18].mxu1 %vm78_vm1, %v6806_v36 }
 0x393   :  { %1370 = vmatprep.mubr.f32.mxu1 %v8178_v34 }
 0x396   :  { %5998 = vmatmul.mubr.msk.f32.vlgmr.msra.gmra.mrb[12].mxu1 %vm78_vm1, %v7118_v4 }
 0x397   :  { %1376 = vmatprep.mubr.f32.mxu1 %v8178_v34 }
 0x39a   :  { %5999 = vmatmul.mubr.msk.f32.gmra.mrb[14].mxu1 %vm78_vm1, %v7126_v26 }
 0x39b   :  { %1382 = vmatprep.mubr.f32.mxu1 %v8178_v34 }
 0x39e   :  { %6000 = vmatmul.mubr.msk.f32.gmra.mrb[16].mxu1 %vm78_vm1, %v7134_v56 }
 0x39f   :  { %1388 = vmatprep.mubr.f32.mxu1 %v8178_v34 }
 0x3a2   :  { %6001 = vmatmul.mubr.msk.f32.gmra.mrb[18].mxu1 %vm78_vm1, %v7142_v38 }
 0x3a3   :  { %1871 = vmatprep.mubr.f32.mxu1 %v8178_v34 }
 0x455   :  { %v1147_v39 = vpop.f32.mrb[10].mxu1 }
 0x456   :  { %v1148_v42 = vadd.f32 %v1147_v39, %v6969_v32  ;;  %v1149_v43 = vpop.f32.mrb[11].mxu1 }
 0x457   :  { %v1150_v22 = vadd.f32 %v1149_v43, %v6969_v32 }
 0x458   :  { %v5977_v45 = vclamps-f32 %v1148_v42, 20.0  ;;  %v1171_v47 = vsub.f32 %v1148_v42, %v6998_v35 }
 0x459   :  { %v5978_v51 = vclamps-f32 %v1150_v22, 20.0  ;;  %v1172_v52 = vsub.f32 %v1150_v22, %v1169_v40  ;;  %v1416_v40 = vpop.permute.xlu1 %1415 }
 0x45a   :  { %v1159_v33 = vmul.f32 %v5977_v45, %v1158_v44  ;;  %v1173_v55 = vmul.f32 %v1171_v47, %v1171_v47 }
 0x45b   :  { %v1160_v0 = vmul.f32 %v5978_v51, %v1158_v44  ;;  %v1174_v24 = vmul.f32 %v1172_v52, %v1172_v52 }
 0x45d   :  { %v1163_v3 = vcombine.low %v1159_v33, %v1160_v0  ;;  %v1177_v25 = vcombine.low %v1173_v55, %v1174_v24  ;;  %v6013_v33 = vld [vmem:[%s8161_s3 + $0x20] sm:$0xff] }
 0x45f   :  { %v1165_v19 = vsub.f32 %v1157_v10, %v1163_v3  ;;  %5980 = vst [vmem:[%s8165_s7 + $0x10] sm:$0xff] %v1177_v25  ;;  %v7174_v25 = vclamps-f32 %v6013_v33, 20.0 }
 0x461   :  { %5979 = vst [vmem:[%s8164_s6 + $0x10] sm:$0xff] %v1165_v19 }
 0x469   :  { %v1372_v35 = vpop.f32.mrb[12].mxu1 }
 0x46a   :  { %v1395_v37 = vadd.f32 %v1372_v35, %v6841_v50  ;;  %v1374_v1 = vpop.f32.mrb[13].mxu1 }
 0x46b   :  { %v1396_v7 = vadd.f32 %v1374_v1, %v6841_v50  ;;  %v6012_v1 = vld [vmem:[%s8159_s1 + $0x20] sm:$0xff] }
 0x46c   :  { %v1428_v57 = vadd.f32 %v6917_v58, %v1395_v37 }
 0x46d   :  { %v1378_v53 = vpop.f32.mrb[14].mxu1  ;;  %v1429_v42 = vadd.f32 %v6917_v58, %v1396_v7  ;;  %v1563_v7 = vstv %s7163_s18  ;;  %s7558_s18 = sld [smem:[#allocation2 + $0x2d]] }
 0x46e   :  { %v1397_v28 = vadd.f32 %v1378_v53, %v6839_v48  ;;  %v1380_v39 = vpop.f32.mrb[15].mxu1  ;;  %v1436_v47 = vmax.f32 %v1428_v57, 0.0  ;;  %v1565_v53 = vstv %s7165_s19  ;;  %v1426_v57 = vpop.permute.xlu1 %1425  ;;  %s7560_s19 = sld [smem:[#allocation2 + $0x2e]] }
 0x46f   :  { %v1398_v43 = vadd.f32 %v1380_v39, %v6839_v48  ;;  %v1437_v55 = vmax.f32 %v1429_v42, 0.0 }
 0x470   :  { %v1430_v44 = vadd.f32 %v1416_v40, %v1397_v28 }
 0x471   :  { %v1431_v22 = vadd.f32 %v1416_v40, %v1398_v43  ;;  %v1384_v45 = vpop.f32.mrb[16].mxu1  ;;  %v1564_v43 = vmul.f32 %v6012_v1, %v1563_v7  ;;  %v1519_v7 = vstv %s5983_s27  ;;  %s6270_s27 = sld [smem:[#allocation2 + $0x49]] }
 0x472   :  { %v1438_v49 = vmax.f32 %v1430_v44, 0.0  ;;  %v1399_v51 = vadd.f32 %v1384_v45, %v6844_v54  ;;  %v1386_v52 = vpop.f32.mrb[17].mxu1  ;;  %v1566_v44 = vmul.f32 %v7174_v25, %v1565_v53 }
 0x473   :  { %v1439_v10 = vmax.f32 %v1431_v22, 0.0  ;;  %v1400_v58 = vadd.f32 %v1386_v52, %v6844_v54 }
 0x474   :  { %v6345_v0 = vpack.c.bf16 %v1438_v49, %v1436_v47  ;;  %v1432_v19 = vadd.f32 %v6919_v59, %v1399_v51  ;;  %v6015_v47 = vld [vmem:[%s8160_s2 + $0x20] sm:$0xff] }
 0x475   :  { %v1390_v24 = vpop.f32.mrb[18].mxu1  ;;  %v6343_v3 = vpack.c.bf16 %v1439_v10, %v1437_v55  ;;  %v1433_v28 = vadd.f32 %v6919_v59, %v1400_v58  ;;  %v1569_v59 = vcombine.high %v6015_v47, %v6015_v47  ;;  %v7189_v55 = vadd.f32 %v1566_v44, %v1564_v43 }
 0x476   :  { %v1401_v35 = vadd.f32 %v1390_v24, %v6853_v63  ;;  %v1392_v37 = vpop.f32.mrb[19].mxu1  ;;  %v1440_v22 = vmax.f32 %v1432_v19, 0.0  ;;  %v1521_v19 = vstv %s5984_s26  ;;  %s7975_s26 = sld [smem:[#allocation2 + $0x47]] }
 0x477   :  { %v1402_v39 = vadd.f32 %v1392_v37, %v6853_v63  ;;  %6344 = vmatprep.subr.bf16.mxu0 %v6343_v3  ;;  %v1441_v49 = vmax.f32 %v1433_v28, 0.0  ;;  %v1664_v10 = vcombine.high %v7189_v55, %v7189_v55 }
 0x478   :  { %v1434_v40 = vadd.f32 %v1426_v57, %v1401_v35  ;;  %6346 = vmatpush1.bf16.msra.mxu0 %v6345_v0  ;;  %v1532_v0 = vcombine.high %v7076_v41, %v7076_v41 }
 0x479   :  { %v1435_v42 = vadd.f32 %v1426_v57, %v1402_v39 }
 0x47a   :  { %v1442_v45 = vmax.f32 %v1434_v40, 0.0  ;;  %v1520_v40 = vmul.f32 %v1519_v7, %v7091_v29 }
 0x47b   :  { %v1443_v51 = vmax.f32 %v1435_v42, 0.0 }
 0x47c   :  { %v6349_v52 = vpack.c.bf16 %v1442_v45, %v1440_v22 }
 0x47d   :  { %v6347_v33 = vpack.c.bf16 %v1443_v51, %v1441_v49 }
 0x47f   :  { %6348 = vmatprep.subr.bf16.mxu0 %v6347_v33 }
 0x480   :  { %6350 = vmatpush1.bf16.msra.mxu0 %v6349_v52 }
 0x481   :  { %6016 = vmatprep.subr.msk.mxu0 %vm87_vm0, %v1569_v59 }
 0x483   :  { %6002 = vmatmul.mubr.msk.f32.vlgmr.msra.gmra.mrb[18].mxu0 %vm354_vm2, %v6835_v46 }
 0x484   :  { %6017 = vmatpush1.msk.msra.mxu0 %vm87_vm0, %v6015_v47  ;;  %1638 = vmatprep.mubr.f32.mxu0 %v8178_v34 }
 0x485   :  { %6022 = vmatprep.subr.msk.mxu0 %vm87_vm0, %v1664_v10  ;;  %v1779_v10 = vpop.permute.xlu1 %1778 }
 0x487   :  { %6018 = vmatmul.mubr.msk.f32.vlgmr.msra.gmra.mrb[20].mxu0 %vm78_vm1, %v6785_v27 }
 0x488   :  { %1644 = vmatprep.mubr.f32.mxu0 %v8178_v34  ;;  %6023 = vmatpush1.msk.msra.mxu0 %vm87_vm0, %v7189_v55 }
 0x48b   :  { %6019 = vmatmul.mubr.msk.f32.gmra.mrb[22].mxu0 %vm78_vm1, %v6794_v30 }
 0x48c   :  { %1650 = vmatprep.mubr.f32.mxu0 %v8178_v34 }
 0x48f   :  { %6020 = vmatmul.mubr.msk.f32.gmra.mrb[24].mxu0 %vm78_vm1, %v6796_v31 }
 0x490   :  { %1656 = vmatprep.mubr.f32.mxu0 %v8178_v34 }
 0x493   :  { %6021 = vmatmul.mubr.msk.f32.gmra.mrb[26].mxu0 %vm78_vm1, %v6806_v36 }
 0x494   :  { %1733 = vmatprep.mubr.f32.mxu0 %v8178_v34 }
 0x497   :  { %6024 = vmatmul.mubr.msk.f32.vlgmr.msra.gmra.mrb[20].mxu0 %vm78_vm1, %v7118_v4 }
 0x498   :  { %1739 = vmatprep.mubr.f32.mxu0 %v8178_v34 }
 0x49b   :  { %6025 = vmatmul.mubr.msk.f32.gmra.mrb[22].mxu0 %vm78_vm1, %v7126_v26 }
 0x49c   :  { %1745 = vmatprep.mubr.f32.mxu0 %v8178_v34 }
 0x49f   :  { %6026 = vmatmul.mubr.msk.f32.gmra.mrb[24].mxu0 %vm78_vm1, %v7134_v56 }
 0x4a0   :  { %1751 = vmatprep.mubr.f32.mxu0 %v8178_v34 }
 0x4a3   :  { %6027 = vmatmul.mubr.msk.f32.gmra.mrb[26].mxu0 %vm78_vm1, %v7142_v38 }
 0x4a4   :  { %2234 = vmatprep.mubr.f32.mxu0 %v8178_v34 }
 0x556   :  { %v1510_v58 = vpop.f32.mrb[18].mxu0 }
 0x557   :  { %v1511_v24 = vadd.f32 %v1510_v58, %v6969_v32  ;;  %v1512_v3 = vpop.f32.mrb[19].mxu0 }
 0x558   :  { %v1513_v35 = vadd.f32 %v1512_v3, %v6969_v32 }
 0x559   :  { %v6003_v37 = vclamps-f32 %v1511_v24, 20.0  ;;  %v1534_v1 = vsub.f32 %v1511_v24, %v7076_v41 }
 0x55a   :  { %v6004_v53 = vclamps-f32 %v1513_v35, 20.0  ;;  %v1535_v57 = vsub.f32 %v1513_v35, %v1532_v0 }
 0x55b   :  { %v1522_v28 = vmul.f32 %v6003_v37, %v1521_v19  ;;  %v1536_v39 = vmul.f32 %v1534_v1, %v1534_v1 }
 0x55c   :  { %v1523_v42 = vmul.f32 %v6004_v53, %v1521_v19  ;;  %v1537_v43 = vmul.f32 %v1535_v57, %v1535_v57  ;;  %v6039_v53 = vld [vmem:[%s8161_s3 + $0x28] sm:$0xff] }
 0x55e   :  { %v1526_v44 = vcombine.low %v1522_v28, %v1523_v42  ;;  %v1540_v22 = vcombine.low %v1536_v39, %v1537_v43  ;;  %v7252_v43 = vclamps-f32 %v6039_v53, 20.0 }
 0x560   :  { %v1528_v45 = vsub.f32 %v1520_v40, %v1526_v44  ;;  %6006 = vst [vmem:[%s8165_s7 + $0x18] sm:$0xff] %v1540_v22 }
 0x562   :  { %6005 = vst [vmem:[%s8164_s6 + $0x18] sm:$0xff] %v1528_v45 }
 0x56a   :  { %v1735_v41 = vpop.f32.mrb[20].mxu0 }
 0x56b   :  { %v1758_v47 = vadd.f32 %v1735_v41, %v6841_v50  ;;  %v1737_v49 = vpop.f32.mrb[21].mxu0  ;;  %v6038_v41 = vld [vmem:[%s8159_s1 + $0x28] sm:$0xff] }
 0x56c   :  { %v1759_v51 = vadd.f32 %v1737_v49, %v6841_v50  ;;  %v1928_v49 = vstv %s7243_s9  ;;  %s6035_s9 = sld [smem:[#allocation2 + $0x1b]] }
 0x56d   :  { %v1791_v52 = vadd.f32 %v6921_v18, %v1758_v47  ;;  %v1926_v47 = vstv %s7241_s0  ;;  %s6036_s0 = sld [smem:[#allocation2 + $0x1c]] }
 0x56e   :  { %v1741_v29 = vpop.f32.mrb[22].mxu0  ;;  %v1792_v58 = vadd.f32 %v6921_v18, %v1759_v51  ;;  %v1789_v51 = vpop.permute.xlu1 %1788 }
 0x56f   :  { %v1760_v33 = vadd.f32 %v1741_v29, %v6839_v48  ;;  %v1743_v59 = vpop.f32.mrb[23].mxu0  ;;  %v1799_v35 = vmax.f32 %v1791_v52, 0.0 }
 0x570   :  { %v1761_v0 = vadd.f32 %v1743_v59, %v6839_v48  ;;  %v1800_v57 = vmax.f32 %v1792_v58, 0.0  ;;  %v1929_v58 = vmul.f32 %v7252_v43, %v1928_v49 }
 0x571   :  { %v1793_v24 = vadd.f32 %v1779_v10, %v1760_v33 }
 0x572   :  { %v1794_v3 = vadd.f32 %v1779_v10, %v1761_v0  ;;  %v1747_v19 = vpop.f32.mrb[24].mxu0  ;;  %v1927_v10 = vmul.f32 %v6038_v41, %v1926_v47 }
 0x573   :  { %v1801_v37 = vmax.f32 %v1793_v24, 0.0  ;;  %v1762_v1 = vadd.f32 %v1747_v19, %v6844_v54  ;;  %v1749_v7 = vpop.f32.mrb[25].mxu0 }
 0x574   :  { %v1802_v28 = vmax.f32 %v1794_v3, 0.0  ;;  %v1763_v18 = vadd.f32 %v1749_v7, %v6844_v54  ;;  %v6041_v3 = vld [vmem:[%s8160_s2 + $0x28] sm:$0xff]  ;;  %v7267_v7 = vadd.f32 %v1929_v58, %v1927_v10 }
 0x575   :  { %v6353_v39 = vpack.c.bf16 %v1801_v37, %v1799_v35  ;;  %v1795_v44 = vadd.f32 %v6923_v60, %v1762_v1 }
 0x576   :  { %v1753_v40 = vpop.f32.mrb[26].mxu0  ;;  %v6351_v42 = vpack.c.bf16 %v1802_v28, %v1800_v57  ;;  %v1796_v29 = vadd.f32 %v6923_v60, %v1763_v18  ;;  %v1932_v60 = vcombine.high %v6041_v3, %v6041_v3  ;;  %v2027_v53 = vcombine.high %v7267_v7, %v7267_v7 }
 0x577   :  { %v1764_v22 = vadd.f32 %v1753_v40, %v6853_v63  ;;  %v1755_v45 = vpop.f32.mrb[27].mxu0  ;;  %v1803_v0 = vmax.f32 %v1795_v44, 0.0  ;;  %v1895_v57 = vcombine.high %v7174_v25, %v7174_v25 }
 0x578   :  { %v1765_v52 = vadd.f32 %v1755_v45, %v6853_v63  ;;  %6352 = vmatprep.subr.bf16.mxu1 %v6351_v42  ;;  %v1804_v19 = vmax.f32 %v1796_v29, 0.0 }
 0x579   :  { %v1797_v33 = vadd.f32 %v1789_v51, %v1764_v22  ;;  %6354 = vmatpush1.bf16.msra.mxu1 %v6353_v39  ;;  %v1884_v39 = vstv %s6010_s16  ;;  %v1882_v22 = vstv %s6009_s17  ;;  %s7656_s16 = sld [smem:[#allocation2 + $0x32]]  ;;  %s7658_s17 = sld [smem:[#allocation2 + $0x33]] }
 0x57a   :  { %v1798_v59 = vadd.f32 %v1789_v51, %v1765_v52  ;;  %v1883_v51 = vmul.f32 %v1882_v22, %v7189_v55 }
 0x57b   :  { %v1805_v24 = vmax.f32 %v1797_v33, 0.0 }
 0x57c   :  { %v1806_v35 = vmax.f32 %v1798_v59, 0.0 }
 0x57d   :  { %v6357_v37 = vpack.c.bf16 %v1805_v24, %v1803_v0 }
 0x57e   :  { %v6355_v1 = vpack.c.bf16 %v1806_v35, %v1804_v19 }
 0x580   :  { %6356 = vmatprep.subr.bf16.mxu1 %v6355_v1 }
 0x581   :  { %6358 = vmatpush1.bf16.msra.mxu1 %v6357_v37  ;;  %v2142_v37 = vpop.permute.xlu1 %2141 }
 0x582   :  { %6042 = vmatprep.subr.msk.mxu1 %vm87_vm0, %v1932_v60 }
 0x584   :  { %6028 = vmatmul.mubr.msk.f32.vlgmr.msra.gmra.mrb[20].mxu1 %vm354_vm2, %v6835_v46 }
 0x585   :  { %6043 = vmatpush1.msk.msra.mxu1 %vm87_vm0, %v6041_v3  ;;  %2001 = vmatprep.mubr.f32.mxu1 %v8178_v34 }
 0x586   :  { %6048 = vmatprep.subr.msk.mxu1 %vm87_vm0, %v2027_v53 }
 0x588   :  { %6044 = vmatmul.mubr.msk.f32.vlgmr.msra.gmra.mrb[22].mxu1 %vm78_vm1, %v6785_v27 }
 0x589   :  { %2007 = vmatprep.mubr.f32.mxu1 %v8178_v34  ;;  %6049 = vmatpush1.msk.msra.mxu1 %vm87_vm0, %v7267_v7 }
 0x58c   :  { %6045 = vmatmul.mubr.msk.f32.gmra.mrb[24].mxu1 %vm78_vm1, %v6794_v30 }
 0x58d   :  { %2013 = vmatprep.mubr.f32.mxu1 %v8178_v34 }
 0x590   :  { %6046 = vmatmul.mubr.msk.f32.gmra.mrb[26].mxu1 %vm78_vm1, %v6796_v31 }
 0x591   :  { %2019 = vmatprep.mubr.f32.mxu1 %v8178_v34 }
 0x594   :  { %6047 = vmatmul.mubr.msk.f32.gmra.mrb[28].mxu1 %vm78_vm1, %v6806_v36 }
 0x595   :  { %2096 = vmatprep.mubr.f32.mxu1 %v8178_v34 }
 0x598   :  { %6050 = vmatmul.mubr.msk.f32.vlgmr.msra.gmra.mrb[22].mxu1 %vm78_vm1, %v7118_v4 }
 0x599   :  { %2102 = vmatprep.mubr.f32.mxu1 %v8178_v34 }
 0x59c   :  { %6051 = vmatmul.mubr.msk.f32.gmra.mrb[24].mxu1 %vm78_vm1, %v7126_v26 }
 0x59d   :  { %2108 = vmatprep.mubr.f32.mxu1 %v8178_v34 }
 0x5a0   :  { %6052 = vmatmul.mubr.msk.f32.gmra.mrb[26].mxu1 %vm78_vm1, %v7134_v56 }
 0x5a1   :  { %2114 = vmatprep.mubr.f32.mxu1 %v8178_v34 }
 0x5a4   :  { %6053 = vmatmul.mubr.msk.f32.gmra.mrb[28].mxu1 %vm78_vm1, %v7142_v38 }
 0x5a5   :  { %2597 = vmatprep.mubr.f32.mxu1 %v8178_v34 }
 0x657   :  { %v1873_v46 = vpop.f32.mrb[20].mxu1 }
 0x658   :  { %v1874_v28 = vadd.f32 %v1873_v46, %v6969_v32  ;;  %v1875_v18 = vpop.f32.mrb[21].mxu1 }
 0x659   :  { %v1876_v40 = vadd.f32 %v1875_v18, %v6969_v32 }
 0x65a   :  { %v6029_v42 = vclamps-f32 %v1874_v28, 20.0  ;;  %v1897_v44 = vsub.f32 %v1874_v28, %v7174_v25 }
 0x65b   :  { %v6030_v45 = vclamps-f32 %v1876_v40, 20.0  ;;  %v1898_v41 = vsub.f32 %v1876_v40, %v1895_v57 }
 0x65c   :  { %v1885_v47 = vmul.f32 %v6029_v42, %v1884_v39  ;;  %v1899_v49 = vmul.f32 %v1897_v44, %v1897_v44  ;;  %v6065_v42 = vld [vmem:[%s8161_s3 + $0x30] sm:$0xff] }
 0x65d   :  { %v1886_v29 = vmul.f32 %v6030_v45, %v1884_v39  ;;  %v1900_v52 = vmul.f32 %v1898_v41, %v1898_v41 }
 0x65f   :  { %v1889_v33 = vcombine.low %v1885_v47, %v1886_v29  ;;  %v1903_v59 = vcombine.low %v1899_v49, %v1900_v52  ;;  %v7330_v49 = vclamps-f32 %v6065_v42, 20.0  ;;  %v2258_v42 = vcombine.high %v7252_v43, %v7252_v43 }
 0x661   :  { %v1891_v10 = vsub.f32 %v1883_v51, %v1889_v33  ;;  %6032 = vst [vmem:[%s8165_s7 + $0x20] sm:$0xff] %v1903_v59  ;;  %v6064_v33 = vld [vmem:[%s8159_s1 + $0x30] sm:$0xff]  ;;  %v2289_v59 = vstv %s7319_s22  ;;  %s6062_s22 = sld [smem:[#allocation2 + $0x21]] }
 0x663   :  { %6031 = vst [vmem:[%s8164_s6 + $0x20] sm:$0xff] %v1891_v10  ;;  %v2291_v10 = vstv %s7321_s23  ;;  %s6061_s23 = sld [smem:[#allocation2 + $0x20]] }
 0x66b   :  { %v2098_v25 = vpop.f32.mrb[22].mxu1 }
 0x66c   :  { %v2121_v58 = vadd.f32 %v2098_v25, %v6841_v50  ;;  %v2100_v0 = vpop.f32.mrb[23].mxu1  ;;  %v2152_v25 = vpop.permute.xlu1 %2151 }
 0x66d   :  { %v2122_v24 = vadd.f32 %v2100_v0, %v6841_v50 }
 0x66e   :  { %v2154_v3 = vadd.f32 %v6925_v61, %v2121_v58 }
 0x66f   :  { %v2104_v55 = vpop.f32.mrb[24].mxu1  ;;  %v2155_v1 = vadd.f32 %v6925_v61, %v2122_v24 }
 0x670   :  { %v2123_v19 = vadd.f32 %v2104_v55, %v6839_v48  ;;  %v2106_v35 = vpop.f32.mrb[25].mxu1  ;;  %v2162_v28 = vmax.f32 %v2154_v3, 0.0  ;;  %v2290_v3 = vmul.f32 %v6064_v33, %v2289_v59 }
 0x671   :  { %v2124_v60 = vadd.f32 %v2106_v35, %v6839_v48  ;;  %v2163_v44 = vmax.f32 %v2155_v1, 0.0  ;;  %v6067_v1 = vld [vmem:[%s8160_s2 + $0x30] sm:$0xff] }
 0x672   :  { %v2156_v53 = vadd.f32 %v2142_v37, %v2123_v19  ;;  %v2292_v19 = vmul.f32 %v7330_v49, %v2291_v10 }
 0x673   :  { %v2157_v46 = vadd.f32 %v2142_v37, %v2124_v60  ;;  %v2110_v57 = vpop.f32.mrb[26].mxu1 }
 0x674   :  { %v2164_v18 = vmax.f32 %v2156_v53, 0.0  ;;  %v2125_v39 = vadd.f32 %v2110_v57, %v6844_v54  ;;  %v2112_v40 = vpop.f32.mrb[27].mxu1 }
 0x675   :  { %v2165_v22 = vmax.f32 %v2157_v46, 0.0  ;;  %v2126_v61 = vadd.f32 %v2112_v40, %v6844_v54 }
 0x676   :  { %v6361_v45 = vpack.c.bf16 %v2164_v18, %v2162_v28  ;;  %v2158_v51 = vadd.f32 %v6927_v62, %v2125_v39  ;;  %v7345_v28 = vadd.f32 %v2292_v19, %v2290_v3  ;;  %v7353_v39 = vld [vmem:[%s8163_s5] sm:$0xf] }
 0x677   :  { %v2116_v41 = vpop.f32.mrb[28].mxu1  ;;  %v6359_v47 = vpack.c.bf16 %v2165_v22, %v2163_v44  ;;  %v2159_v58 = vadd.f32 %v6927_v62, %v2126_v61  ;;  %v2295_v62 = vcombine.high %v6067_v1, %v6067_v1  ;;  %v2247_v61 = vstv %s6036_s0  ;;  %s6244_s0 = sld [smem:[#allocation2 + $0x44]] }
 0x678   :  { %v2127_v29 = vadd.f32 %v2116_v41, %v6853_v63  ;;  %v2118_v52 = vpop.f32.mrb[29].mxu1  ;;  %v2166_v35 = vmax.f32 %v2158_v51, 0.0  ;;  %v2390_v18 = vcombine.high %v7345_v28, %v7345_v28  ;;  %v2245_v51 = vstv %s6035_s9  ;;  %s6243_s9 = sld [smem:[#allocation2 + $0x43]] }
 0x679   :  { %v2128_v0 = vadd.f32 %v2118_v52, %v6853_v63  ;;  %6360 = vmatprep.subr.bf16.mxu0 %v6359_v47  ;;  %v2167_v60 = vmax.f32 %v2159_v58, 0.0  ;;  %v2246_v10 = vmul.f32 %v2245_v51, %v7267_v7 }
 0x67a   :  { %v2160_v24 = vadd.f32 %v2152_v25, %v2127_v29  ;;  %6362 = vmatpush1.bf16.msra.mxu0 %v6361_v45 }
 0x67b   :  { %v2161_v55 = vadd.f32 %v2152_v25, %v2128_v0 }
 0x67c   :  { %v2168_v37 = vmax.f32 %v2160_v24, 0.0 }
 0x67d   :  { %v2169_v53 = vmax.f32 %v2161_v55, 0.0 }
 0x67e   :  { %v6365_v46 = vpack.c.bf16 %v2168_v37, %v2166_v35 }
 0x67f   :  { %v6363_v57 = vpack.c.bf16 %v2169_v53, %v2167_v60  ;;  %v2505_v53 = vpop.permute.xlu1 %2504 }
 0x681   :  { %6364 = vmatprep.subr.bf16.mxu0 %v6363_v57 }
 0x682   :  { %6366 = vmatpush1.bf16.msra.mxu0 %v6365_v46 }
 0x683   :  { %6068 = vmatprep.subr.msk.mxu0 %vm87_vm0, %v2295_v62 }
 0x685   :  { %6054 = vmatmul.mubr.msk.f32.vlgmr.msra.gmra.mrb[28].mxu0 %vm354_vm2, %v7353_v39 }
 0x686   :  { %6069 = vmatpush1.msk.msra.mxu0 %vm87_vm0, %v6067_v1  ;;  %2364 = vmatprep.mubr.f32.mxu0 %v8178_v34 }
 0x687   :  { %6074 = vmatprep.subr.msk.mxu0 %vm87_vm0, %v2390_v18 }
 0x689   :  { %6070 = vmatmul.mubr.msk.f32.vlgmr.msra.gmra.mrb[30].mxu0 %vm78_vm1, %v6785_v27 }
 0x68a   :  { %2370 = vmatprep.mubr.f32.mxu0 %v8178_v34  ;;  %6075 = vmatpush1.msk.msra.mxu0 %vm87_vm0, %v7345_v28 }
 0x68d   :  { %6071 = vmatmul.mubr.msk.f32.gmra.mrb[32].mxu0 %vm78_vm1, %v6794_v30 }
 0x68e   :  { %2376 = vmatprep.mubr.f32.mxu0 %v8178_v34 }
 0x691   :  { %6072 = vmatmul.mubr.msk.f32.gmra.mrb[34].mxu0 %vm78_vm1, %v6796_v31 }
 0x692   :  { %2382 = vmatprep.mubr.f32.mxu0 %v8178_v34 }
 0x695   :  { %6073 = vmatmul.mubr.msk.f32.gmra.mrb[36].mxu0 %vm78_vm1, %v6806_v36 }
 0x696   :  { %2459 = vmatprep.mubr.f32.mxu0 %v8178_v34 }
 0x699   :  { %6076 = vmatmul.mubr.msk.f32.vlgmr.msra.gmra.mrb[30].mxu0 %vm78_vm1, %v7118_v4 }
 0x69a   :  { %2465 = vmatprep.mubr.f32.mxu0 %v8178_v34 }
 0x69d   :  { %6077 = vmatmul.mubr.msk.f32.gmra.mrb[32].mxu0 %vm78_vm1, %v7126_v26 }
 0x69e   :  { %2471 = vmatprep.mubr.f32.mxu0 %v8178_v34 }
 0x6a1   :  { %6078 = vmatmul.mubr.msk.f32.gmra.mrb[34].mxu0 %vm78_vm1, %v7134_v56 }
 0x6a2   :  { %2477 = vmatprep.mubr.f32.mxu0 %v8178_v34 }
 0x6a5   :  { %6079 = vmatmul.mubr.msk.f32.gmra.mrb[36].mxu0 %vm78_vm1, %v7142_v38 }
 0x6a6   :  { %2960 = vmatprep.mubr.f32.mxu0 %v8178_v34 }
 0x758   :  { %v2236_v40 = vpop.f32.mrb[28].mxu0 }
 0x759   :  { %v2237_v44 = vadd.f32 %v2236_v40, %v6969_v32  ;;  %v2238_v22 = vpop.f32.mrb[29].mxu0 }
 0x75a   :  { %v2239_v45 = vadd.f32 %v2238_v22, %v6969_v32 }
 0x75b   :  { %v6055_v41 = vclamps-f32 %v2237_v44, 20.0  ;;  %v2260_v47 = vsub.f32 %v2237_v44, %v7252_v43 }
 0x75c   :  { %v6056_v29 = vclamps-f32 %v2239_v45, 20.0  ;;  %v2261_v52 = vsub.f32 %v2239_v45, %v2258_v42  ;;  %v6091_v45 = vld [vmem:[%s8161_s3 + $0x38] sm:$0xff] }
 0x75d   :  { %v2248_v33 = vmul.f32 %v6055_v41, %v2247_v61  ;;  %v2262_v59 = vmul.f32 %v2260_v47, %v2260_v47 }
 0x75e   :  { %v2249_v25 = vmul.f32 %v6056_v29, %v2247_v61  ;;  %v2263_v58 = vmul.f32 %v2261_v52, %v2261_v52 }
 0x760   :  { %v2252_v0 = vcombine.low %v2248_v33, %v2249_v25  ;;  %v2266_v24 = vcombine.low %v2262_v59, %v2263_v58  ;;  %v7413_v33 = vclamps-f32 %v6091_v45, 20.0  ;;  %v6090_v58 = vld [vmem:[%s8159_s1 + $0x38] sm:$0xff] }
 0x762   :  { %v2254_v55 = vsub.f32 %v2246_v10, %v2252_v0  ;;  %6058 = vst [vmem:[%s8165_s7 + $0x28] sm:$0xff] %v2266_v24  ;;  %v2652_v0 = vstv %s7402_s14  ;;  %v2654_v24 = vstv %s7404_s15  ;;  %s6166_s14 = sld [smem:[#allocation2 + $0x35]]  ;;  %s6165_s15 = sld [smem:[#allocation2 + $0x34]] }
 0x764   :  { %6057 = vst [vmem:[%s8164_s6 + $0x28] sm:$0xff] %v2254_v55  ;;  %v2515_v55 = vpop.permute.xlu1 %2514 }
 0x76c   :  { %v2461_v43 = vpop.f32.mrb[30].mxu0 }
 0x76d   :  { %v2484_v3 = vadd.f32 %v2461_v43, %v6841_v50  ;;  %v2463_v19 = vpop.f32.mrb[31].mxu0 }
 0x76e   :  { %v2485_v35 = vadd.f32 %v2463_v19, %v6841_v50 }
 0x76f   :  { %v2517_v37 = vadd.f32 %v6929_v2, %v2484_v3 }
 0x770   :  { %v2467_v7 = vpop.f32.mrb[32].mxu0  ;;  %v2518_v46 = vadd.f32 %v6929_v2, %v2485_v35 }
 0x771   :  { %v2486_v1 = vadd.f32 %v2467_v7, %v6839_v48  ;;  %v2469_v60 = vpop.f32.mrb[33].mxu0  ;;  %v2525_v42 = vmax.f32 %v2517_v37, 0.0  ;;  %v2653_v7 = vmul.f32 %v6090_v58, %v2652_v0  ;;  %v2655_v37 = vmul.f32 %v7413_v33, %v2654_v24 }
 0x772   :  { %v2487_v57 = vadd.f32 %v2469_v60, %v6839_v48  ;;  %v2526_v41 = vmax.f32 %v2518_v46, 0.0 }
 0x773   :  { %v2519_v62 = vadd.f32 %v2505_v53, %v2486_v1 }
 0x774   :  { %v2520_v18 = vadd.f32 %v2505_v53, %v2487_v57  ;;  %v2473_v40 = vpop.f32.mrb[34].mxu0  ;;  %v6093_v53 = vld [vmem:[%s8160_s2 + $0x38] sm:$0xff] }
 0x775   :  { %v2527_v44 = vmax.f32 %v2519_v62, 0.0  ;;  %v2488_v22 = vadd.f32 %v2473_v40, %v6844_v54  ;;  %v2475_v61 = vpop.f32.mrb[35].mxu0  ;;  %v7428_v40 = vadd.f32 %v2655_v37, %v2653_v7 }
 0x776   :  { %v2528_v47 = vmax.f32 %v2520_v18, 0.0  ;;  %v2489_v2 = vadd.f32 %v2475_v61, %v6844_v54 }
 0x777   :  { %v6369_v51 = vpack.c.bf16 %v2527_v44, %v2525_v42  ;;  %v2521_v59 = vadd.f32 %v6931_v5, %v2488_v22  ;;  %v2753_v42 = vcombine.high %v7428_v40, %v7428_v40  ;;  %v2621_v22 = vcombine.high %v7330_v49, %v7330_v49 }
 0x778   :  { %v2479_v29 = vpop.f32.mrb[36].mxu0  ;;  %v6367_v52 = vpack.c.bf16 %v2528_v47, %v2526_v41  ;;  %v2522_v43 = vadd.f32 %v6931_v5, %v2489_v2  ;;  %v2658_v5 = vcombine.high %v6093_v53, %v6093_v53  ;;  %v2610_v41 = vstv %s6062_s22 }
 0x779   :  { %v2490_v10 = vadd.f32 %v2479_v29, %v6853_v63  ;;  %v2481_v25 = vpop.f32.mrb[37].mxu0  ;;  %v2529_v1 = vmax.f32 %v2521_v59, 0.0  ;;  %v2608_v29 = vstv %s6061_s23 }
 0x77a   :  { %v2491_v3 = vadd.f32 %v2481_v25, %v6853_v63  ;;  %6368 = vmatprep.subr.bf16.mxu1 %v6367_v52  ;;  %v2530_v46 = vmax.f32 %v2522_v43, 0.0  ;;  %v2609_v58 = vmul.f32 %v2608_v29, %v7345_v28 }
 0x77b   :  { %v2523_v19 = vadd.f32 %v2515_v55, %v2490_v10  ;;  %6370 = vmatpush1.bf16.msra.mxu1 %v6369_v51 }
 0x77c   :  { %v2524_v35 = vadd.f32 %v2515_v55, %v2491_v3 }
 0x77d   :  { %v2531_v60 = vmax.f32 %v2523_v19, 0.0 }
 0x77e   :  { %v2532_v57 = vmax.f32 %v2524_v35, 0.0 }
 0x77f   :  { %v6373_v62 = vpack.c.bf16 %v2531_v60, %v2529_v1 }
 0x780   :  { %v6371_v18 = vpack.c.bf16 %v2532_v57, %v2530_v46 }
 0x782   :  { %6372 = vmatprep.subr.bf16.mxu1 %v6371_v18 }
 0x783   :  { %6374 = vmatpush1.bf16.msra.mxu1 %v6373_v62 }
 0x784   :  { %6094 = vmatprep.subr.msk.mxu1 %vm87_vm0, %v2658_v5 }
 0x786   :  { %6080 = vmatmul.mubr.msk.f32.vlgmr.msra.gmra.mrb[30].mxu1 %vm354_vm2, %v7353_v39 }
 0x787   :  { %6095 = vmatpush1.msk.msra.mxu1 %vm87_vm0, %v6093_v53  ;;  %2727 = vmatprep.mubr.f32.mxu1 %v8178_v34  ;;  %v2868_v53 = vpop.permute.xlu1 %2867 }
 0x788   :  { %6100 = vmatprep.subr.msk.mxu1 %vm87_vm0, %v2753_v42 }
 0x78a   :  { %6096 = vmatmul.mubr.msk.f32.vlgmr.msra.gmra.mrb[32].mxu1 %vm78_vm1, %v6785_v27 }
 0x78b   :  { %2733 = vmatprep.mubr.f32.mxu1 %v8178_v34  ;;  %6101 = vmatpush1.msk.msra.mxu1 %vm87_vm0, %v7428_v40 }
 0x78e   :  { %6097 = vmatmul.mubr.msk.f32.gmra.mrb[34].mxu1 %vm78_vm1, %v6794_v30 }
 0x78f   :  { %2739 = vmatprep.mubr.f32.mxu1 %v8178_v34 }
 0x792   :  { %6098 = vmatmul.mubr.msk.f32.gmra.mrb[36].mxu1 %vm78_vm1, %v6796_v31 }
 0x793   :  { %2745 = vmatprep.mubr.f32.mxu1 %v8178_v34 }
 0x796   :  { %6099 = vmatmul.mubr.msk.f32.gmra.mrb[38].mxu1 %vm78_vm1, %v6806_v36 }
 0x797   :  { %2822 = vmatprep.mubr.f32.mxu1 %v8178_v34 }
 0x79a   :  { %6102 = vmatmul.mubr.msk.f32.vlgmr.msra.gmra.mrb[32].mxu1 %vm78_vm1, %v7118_v4 }
 0x79b   :  { %2828 = vmatprep.mubr.f32.mxu1 %v8178_v34 }
 0x79e   :  { %6103 = vmatmul.mubr.msk.f32.gmra.mrb[34].mxu1 %vm78_vm1, %v7126_v26 }
 0x79f   :  { %2834 = vmatprep.mubr.f32.mxu1 %v8178_v34 }
 0x7a2   :  { %6104 = vmatmul.mubr.msk.f32.gmra.mrb[36].mxu1 %vm78_vm1, %v7134_v56 }
 0x7a3   :  { %2840 = vmatprep.mubr.f32.mxu1 %v8178_v34 }
 0x7a6   :  { %6105 = vmatmul.mubr.msk.f32.gmra.mrb[38].mxu1 %vm78_vm1, %v7142_v38 }
 0x7a7   :  { %3323 = vmatprep.mubr.f32.mxu1 %v8178_v34 }
 0x859   :  { %v2599_v44 = vpop.f32.mrb[30].mxu1 }
 0x85a   :  { %v2600_v61 = vadd.f32 %v2599_v44, %v6969_v32  ;;  %v2601_v45 = vpop.f32.mrb[31].mxu1 }
 0x85b   :  { %v2602_v47 = vadd.f32 %v2601_v45, %v6969_v32  ;;  %v6117_v45 = vld [vmem:[%s8161_s3 + $0x40] sm:$0xff] }
 0x85c   :  { %v6081_v2 = vclamps-f32 %v2600_v61, 20.0  ;;  %v2623_v51 = vsub.f32 %v2600_v61, %v7330_v49 }
 0x85d   :  { %v6082_v52 = vclamps-f32 %v2602_v47, 20.0  ;;  %v2624_v59 = vsub.f32 %v2602_v47, %v2621_v22 }
 0x85e   :  { %v2611_v10 = vmul.f32 %v6081_v2, %v2610_v41  ;;  %v2625_v25 = vmul.f32 %v2623_v51, %v2623_v51 }
 0x85f   :  { %v2612_v0 = vmul.f32 %v6082_v52, %v2610_v41  ;;  %v2626_v24 = vmul.f32 %v2624_v59, %v2624_v59  ;;  %v7491_v52 = vclamps-f32 %v6117_v45, 20.0  ;;  %v2971_v45 = vstv %s6087_s13 }
 0x861   :  { %v2615_v55 = vcombine.low %v2611_v10, %v2612_v0  ;;  %v2629_v43 = vcombine.low %v2625_v25, %v2626_v24  ;;  %v3015_v0 = vstv %s7480_s28  ;;  %v3017_v24 = vstv %s7482_s29  ;;  %s6269_s28 = sld [smem:[#allocation2 + $0x48]] }
 0x863   :  { %v2617_v3 = vsub.f32 %v2609_v58, %v2615_v55  ;;  %6084 = vst [vmem:[%s8165_s7 + $0x30] sm:$0xff] %v2629_v43  ;;  %v6116_v58 = vld [vmem:[%s8159_s1 + $0x40] sm:$0xff]  ;;  %v2878_v55 = vpop.permute.xlu1 %2877 }
 0x865   :  { %6083 = vst [vmem:[%s8164_s6 + $0x30] sm:$0xff] %v2617_v3 }
 0x86d   :  { %v2824_v49 = vpop.f32.mrb[32].mxu1 }
 0x86e   :  { %v2847_v19 = vadd.f32 %v2824_v49, %v6841_v50  ;;  %v2826_v35 = vpop.f32.mrb[33].mxu1 }
 0x86f   :  { %v2848_v7 = vadd.f32 %v2826_v35, %v6841_v50  ;;  %v3016_v35 = vmul.f32 %v6116_v58, %v3015_v0 }
 0x870   :  { %v2880_v37 = vadd.f32 %v6933_v6, %v2847_v19 }
 0x871   :  { %v2830_v28 = vpop.f32.mrb[34].mxu1  ;;  %v2881_v46 = vadd.f32 %v6933_v6, %v2848_v7  ;;  %v3018_v7 = vmul.f32 %v7491_v52, %v3017_v24 }
 0x872   :  { %v2849_v1 = vadd.f32 %v2830_v28, %v6839_v48  ;;  %v2832_v60 = vpop.f32.mrb[35].mxu1  ;;  %v2888_v42 = vmax.f32 %v2880_v37, 0.0 }
 0x873   :  { %v2850_v57 = vadd.f32 %v2832_v60, %v6839_v48  ;;  %v2889_v41 = vmax.f32 %v2881_v46, 0.0 }
 0x874   :  { %v2882_v62 = vadd.f32 %v2868_v53, %v2849_v1  ;;  %v6119_v1 = vld [vmem:[%s8160_s2 + $0x40] sm:$0xff] }
 0x875   :  { %v2883_v18 = vadd.f32 %v2868_v53, %v2850_v57  ;;  %v2836_v5 = vpop.f32.mrb[36].mxu1 }
 0x876   :  { %v2890_v44 = vmax.f32 %v2882_v62, 0.0  ;;  %v2851_v22 = vadd.f32 %v2836_v5, %v6844_v54  ;;  %v2838_v61 = vpop.f32.mrb[37].mxu1  ;;  %v7506_v62 = vadd.f32 %v3018_v7, %v3016_v35  ;;  %v2984_v5 = vcombine.high %v7413_v33, %v7413_v33 }
 0x877   :  { %v2891_v47 = vmax.f32 %v2883_v18, 0.0  ;;  %v2852_v6 = vadd.f32 %v2838_v61, %v6844_v54 }
 0x878   :  { %v6377_v2 = vpack.c.bf16 %v2890_v44, %v2888_v42  ;;  %v2884_v59 = vadd.f32 %v6935_v8, %v2851_v22  ;;  %v3116_v18 = vcombine.high %v7506_v62, %v7506_v62  ;;  %v2973_v44 = vstv %s6088_s12  ;;  %s7897_s12 = sld [smem:[#allocation2 + $0x42]] }
 0x879   :  { %v2842_v51 = vpop.f32.mrb[38].mxu1  ;;  %v6375_v29 = vpack.c.bf16 %v2891_v47, %v2889_v41  ;;  %v2885_v43 = vadd.f32 %v6935_v8, %v2852_v6  ;;  %v3021_v8 = vcombine.high %v6119_v1, %v6119_v1 }
 0x87a   :  { %v2853_v10 = vadd.f32 %v2842_v51, %v6853_v63  ;;  %v2844_v25 = vpop.f32.mrb[39].mxu1  ;;  %v2892_v28 = vmax.f32 %v2884_v59, 0.0 }
 0x87b   :  { %v2854_v3 = vadd.f32 %v2844_v25, %v6853_v63  ;;  %6376 = vmatprep.subr.bf16.mxu0 %v6375_v29  ;;  %v2893_v60 = vmax.f32 %v2885_v43, 0.0 }
 0x87c   :  { %v2886_v49 = vadd.f32 %v2878_v55, %v2853_v10  ;;  %6378 = vmatpush1.bf16.msra.mxu0 %v6377_v2  ;;  %v2972_v2 = vmul.f32 %v2971_v45, %v7428_v40  ;;  %v3378_v45 = vstv %s7558_s18 }
 0x87d   :  { %v2887_v19 = vadd.f32 %v2878_v55, %v2854_v3 }
 0x87e   :  { %v2894_v37 = vmax.f32 %v2886_v49, 0.0  ;;  %v3231_v49 = vpop.permute.xlu1 %3230 }
 0x87f   :  { %v2895_v53 = vmax.f32 %v2887_v19, 0.0 }
 0x880   :  { %v6381_v46 = vpack.c.bf16 %v2894_v37, %v2892_v28 }
 0x881   :  { %v6379_v57 = vpack.c.bf16 %v2895_v53, %v2893_v60 }
 0x883   :  { %6380 = vmatprep.subr.bf16.mxu0 %v6379_v57  ;;  %v6143_v57 = vld [vmem:[%s8161_s3 + $0x48] sm:$0xff] }
 0x884   :  { %6382 = vmatpush1.bf16.msra.mxu0 %v6381_v46 }
 0x885   :  { %6120 = vmatprep.subr.msk.mxu0 %vm87_vm0, %v3021_v8 }
 0x887   :  { %6106 = vmatmul.mubr.msk.f32.vlgmr.msra.gmra.mrb[38].mxu0 %vm354_vm2, %v7353_v39 }
 0x888   :  { %6121 = vmatpush1.msk.msra.mxu0 %vm87_vm0, %v6119_v1  ;;  %3090 = vmatprep.mubr.f32.mxu0 %v8178_v34 }
 0x889   :  { %6126 = vmatprep.subr.msk.mxu0 %vm87_vm0, %v3116_v18 }
 0x88b   :  { %6122 = vmatmul.mubr.msk.f32.vlgmr.msra.gmra.mrb[40].mxu0 %vm78_vm1, %v6785_v27 }
 0x88c   :  { %3096 = vmatprep.mubr.f32.mxu0 %v8178_v34  ;;  %6127 = vmatpush1.msk.msra.mxu0 %vm87_vm0, %v7506_v62 }
 0x88f   :  { %6123 = vmatmul.mubr.msk.f32.gmra.mrb[42].mxu0 %vm78_vm1, %v6794_v30 }
 0x890   :  { %3102 = vmatprep.mubr.f32.mxu0 %v8178_v34 }
 0x893   :  { %6124 = vmatmul.mubr.msk.f32.gmra.mrb[44].mxu0 %vm78_vm1, %v6796_v31 }
 0x894   :  { %3108 = vmatprep.mubr.f32.mxu0 %v8178_v34 }
 0x897   :  { %6125 = vmatmul.mubr.msk.f32.gmra.mrb[46].mxu0 %vm78_vm1, %v6806_v36 }
 0x898   :  { %3185 = vmatprep.mubr.f32.mxu0 %v8178_v34 }
 0x89b   :  { %6128 = vmatmul.mubr.msk.f32.vlgmr.msra.gmra.mrb[40].mxu0 %vm78_vm1, %v7118_v4 }
 0x89c   :  { %3191 = vmatprep.mubr.f32.mxu0 %v8178_v34 }
 0x89f   :  { %6129 = vmatmul.mubr.msk.f32.gmra.mrb[42].mxu0 %vm78_vm1, %v7126_v26 }
 0x8a0   :  { %3197 = vmatprep.mubr.f32.mxu0 %v8178_v34 }
 0x8a3   :  { %6130 = vmatmul.mubr.msk.f32.gmra.mrb[44].mxu0 %vm78_vm1, %v7134_v56 }
 0x8a4   :  { %3203 = vmatprep.mubr.f32.mxu0 %v8178_v34 }
 0x8a7   :  { %6131 = vmatmul.mubr.msk.f32.gmra.mrb[46].mxu0 %vm78_vm1, %v7142_v38 }
 0x8a8   :  { %3686 = vmatprep.mubr.f32.mxu0 %v8178_v34 }
 0x95a   :  { %v2962_v4 = vpop.f32.mrb[38].mxu0 }
 0x95b   :  { %v2963_v26 = vadd.f32 %v2962_v4, %v6969_v32  ;;  %v2964_v42 = vpop.f32.mrb[39].mxu0 }
 0x95c   :  { %v2965_v22 = vadd.f32 %v2964_v42, %v6969_v32  ;;  %v7569_v42 = vclamps-f32 %v6143_v57, 20.0 }
 0x95d   :  { %v6107_v56 = vclamps-f32 %v2963_v26, 20.0  ;;  %v2986_v61 = vsub.f32 %v2963_v26, %v7413_v33 }
 0x95e   :  { %v6108_v41 = vclamps-f32 %v2965_v22, 20.0  ;;  %v2987_v38 = vsub.f32 %v2965_v22, %v2984_v5 }
 0x95f   :  { %v2974_v47 = vmul.f32 %v6107_v56, %v2973_v44  ;;  %v2988_v6 = vmul.f32 %v2986_v61, %v2986_v61  ;;  %v6142_v61 = vld [vmem:[%s8159_s1 + $0x48] sm:$0xff] }
 0x960   :  { %v2975_v51 = vmul.f32 %v6108_v41, %v2973_v44  ;;  %v2989_v29 = vmul.f32 %v2987_v38, %v2987_v38  ;;  %v3380_v41 = vstv %s7560_s19  ;;  %v3241_v38 = vpop.permute.xlu1 %3240  ;;  %s6218_s19 = sld [smem:[#allocation2 + $0x3f]] }
 0x962   :  { %v2978_v59 = vcombine.low %v2974_v47, %v2975_v51  ;;  %v2992_v10 = vcombine.low %v2988_v6, %v2989_v29  ;;  %v3379_v29 = vmul.f32 %v6142_v61, %v3378_v45 }
 0x964   :  { %v2980_v25 = vsub.f32 %v2972_v2, %v2978_v59  ;;  %6110 = vst [vmem:[%s8165_s7 + $0x38] sm:$0xff] %v2992_v10  ;;  %v3381_v59 = vmul.f32 %v7569_v42, %v3380_v41 }
 0x966   :  { %6109 = vst [vmem:[%s8164_s6 + $0x38] sm:$0xff] %v2980_v25 }
 0x96e   :  { %v3187_v33 = vpop.f32.mrb[40].mxu0 }
 0x96f   :  { %v3210_v58 = vadd.f32 %v3187_v33, %v6841_v50  ;;  %v3189_v0 = vpop.f32.mrb[41].mxu0  ;;  %v6145_v33 = vld [vmem:[%s8160_s2 + $0x48] sm:$0xff] }
 0x970   :  { %v3211_v24 = vadd.f32 %v3189_v0, %v6841_v50 }
 0x971   :  { %v3243_v55 = vadd.f32 %v6937_v9, %v3210_v58 }
 0x972   :  { %v3193_v40 = vpop.f32.mrb[42].mxu0  ;;  %v3244_v19 = vadd.f32 %v6937_v9, %v3211_v24 }
 0x973   :  { %v3212_v43 = vadd.f32 %v3193_v40, %v6839_v48  ;;  %v3195_v3 = vpop.f32.mrb[43].mxu0  ;;  %v3251_v1 = vmax.f32 %v3243_v55, 0.0  ;;  %v7584_v55 = vadd.f32 %v3381_v59, %v3379_v29  ;;  %v3594_v29 = vpop.permute.xlu1 %3593 }
 0x974   :  { %v3213_v35 = vadd.f32 %v3195_v3, %v6839_v48  ;;  %v3252_v8 = vmax.f32 %v3244_v19, 0.0  ;;  %v7611_v3 = vld [vmem:[%s8162_s4] sm:$0xff]  ;;  %v7627_v19 = vld [vmem:[%s8162_s4 + $0x10] sm:$0xff] }
 0x975   :  { %v3245_v7 = vadd.f32 %v3231_v49, %v3212_v43  ;;  %v3479_v43 = vcombine.high %v7584_v55, %v7584_v55 }
 0x976   :  { %v3246_v28 = vadd.f32 %v3231_v49, %v3213_v35  ;;  %v3199_v37 = vpop.f32.mrb[44].mxu0  ;;  %v7619_v49 = vld [vmem:[%s8162_s4 + $0x8] sm:$0xff]  ;;  %v7635_v35 = vld [vmem:[%s8162_s4 + $0x18] sm:$0xff] }
 0x977   :  { %v3253_v60 = vmax.f32 %v3245_v7, 0.0  ;;  %v3214_v53 = vadd.f32 %v3199_v37, %v6844_v54  ;;  %v3201_v46 = vpop.f32.mrb[45].mxu0 }
 0x978   :  { %v3254_v18 = vmax.f32 %v3246_v28, 0.0  ;;  %v3215_v9 = vadd.f32 %v3201_v46, %v6844_v54  ;;  %v3347_v28 = vcombine.high %v7491_v52, %v7491_v52 }
 0x979   :  { %v6385_v4 = vpack.c.bf16 %v3253_v60, %v3251_v1  ;;  %v3247_v44 = vadd.f32 %v6939_v11, %v3214_v53  ;;  %v3336_v60 = vstv %s6114_s10 }
 0x97a   :  { %v3205_v5 = vpop.f32.mrb[46].mxu0  ;;  %v6383_v26 = vpack.c.bf16 %v3254_v18, %v3252_v8  ;;  %v3248_v47 = vadd.f32 %v6939_v11, %v3215_v9  ;;  %v3384_v11 = vcombine.high %v6145_v33, %v6145_v33  ;;  %v3334_v8 = vstv %s6113_s11  ;;  %s7895_s11 = sld [smem:[#allocation2 + $0x41]] }
 0x97b   :  { %v3216_v22 = vadd.f32 %v3205_v5, %v6853_v63  ;;  %v3207_v56 = vpop.f32.mrb[47].mxu0  ;;  %v3255_v10 = vmax.f32 %v3247_v44, 0.0 }
 0x97c   :  { %v3217_v6 = vadd.f32 %v3207_v56, %v6853_v63  ;;  %6384 = vmatprep.subr.bf16.mxu1 %v6383_v26  ;;  %v3256_v58 = vmax.f32 %v3248_v47, 0.0  ;;  %v3335_v26 = vmul.f32 %v3334_v8, %v7506_v62 }
 0x97d   :  { %v3249_v2 = vadd.f32 %v3241_v38, %v3216_v22  ;;  %6386 = vmatpush1.bf16.msra.mxu1 %v6385_v4 }
 0x97e   :  { %v3250_v51 = vadd.f32 %v3241_v38, %v3217_v6 }
 0x97f   :  { %v3257_v25 = vmax.f32 %v3249_v2, 0.0 }
 0x980   :  { %v3258_v0 = vmax.f32 %v3250_v51, 0.0 }
 0x981   :  { %v6389_v24 = vpack.c.bf16 %v3257_v25, %v3255_v10 }
 0x982   :  { %v6387_v40 = vpack.c.bf16 %v3258_v0, %v3256_v58 }
 0x984   :  { %6388 = vmatprep.subr.bf16.mxu1 %v6387_v40 }
 0x985   :  { %6390 = vmatpush1.bf16.msra.mxu1 %v6389_v24 }
 0x986   :  { %6146 = vmatprep.subr.msk.mxu1 %vm87_vm0, %v3384_v11 }
 0x988   :  { %6132 = vmatmul.mubr.msk.f32.vlgmr.msra.gmra.mrb[40].mxu1 %vm354_vm2, %v7353_v39 }
 0x989   :  { %6147 = vmatpush1.msk.msra.mxu1 %vm87_vm0, %v6145_v33  ;;  %3453 = vmatprep.mubr.f32.mxu1 %v8178_v34 }
 0x98a   :  { %6152 = vmatprep.subr.msk.mxu1 %vm87_vm0, %v3479_v43  ;;  %v6169_v43 = vld [vmem:[%s8161_s3 + $0x50] sm:$0xff] }
 0x98c   :  { %6148 = vmatmul.mubr.msk.f32.vlgmr.msra.gmra.mrb[42].mxu1 %vm78_vm1, %v6785_v27 }
 0x98d   :  { %3459 = vmatprep.mubr.f32.mxu1 %v8178_v34  ;;  %6153 = vmatpush1.msk.msra.mxu1 %vm87_vm0, %v7584_v55 }
 0x990   :  { %6149 = vmatmul.mubr.msk.f32.gmra.mrb[44].mxu1 %vm78_vm1, %v6794_v30 }
 0x991   :  { %3465 = vmatprep.mubr.f32.mxu1 %v8178_v34 }
 0x994   :  { %6150 = vmatmul.mubr.msk.f32.gmra.mrb[46].mxu1 %vm78_vm1, %v6796_v31 }
 0x995   :  { %3471 = vmatprep.mubr.f32.mxu1 %v8178_v34 }
 0x998   :  { %6151 = vmatmul.mubr.msk.f32.gmra.mrb[48].mxu1 %vm78_vm1, %v6806_v36 }
 0x999   :  { %3548 = vmatprep.mubr.f32.mxu1 %v8178_v34 }
 0x99c   :  { %6154 = vmatmul.mubr.msk.f32.vlgmr.msra.gmra.mrb[42].mxu1 %vm78_vm1, %v7611_v3 }
 0x99d   :  { %3554 = vmatprep.mubr.f32.mxu1 %v8178_v34 }
 0x9a0   :  { %6155 = vmatmul.mubr.msk.f32.gmra.mrb[44].mxu1 %vm78_vm1, %v7619_v49 }
 0x9a1   :  { %3560 = vmatprep.mubr.f32.mxu1 %v8178_v34 }
 0x9a4   :  { %6156 = vmatmul.mubr.msk.f32.gmra.mrb[46].mxu1 %vm78_vm1, %v7627_v19 }
 0x9a5   :  { %3566 = vmatprep.mubr.f32.mxu1 %v8178_v34 }
 0x9a8   :  { %6157 = vmatmul.mubr.msk.f32.gmra.mrb[48].mxu1 %vm78_vm1, %v7635_v35 }
 0x9a9   :  { %4049 = vmatprep.mubr.f32.mxu1 %v8178_v34 }
 0xa5b   :  { %v3325_v7 = vpop.f32.mrb[40].mxu1 }
 0xa5c   :  { %v3326_v37 = vadd.f32 %v3325_v7, %v6969_v32  ;;  %v3327_v1 = vpop.f32.mrb[41].mxu1 }
 0xa5d   :  { %v3328_v53 = vadd.f32 %v3327_v1, %v6969_v32 }
 0xa5e   :  { %v6133_v46 = vclamps-f32 %v3326_v37, 20.0  ;;  %v3349_v57 = vsub.f32 %v3326_v37, %v7491_v52 }
 0xa5f   :  { %v6134_v18 = vclamps-f32 %v3328_v53, 20.0  ;;  %v3350_v9 = vsub.f32 %v3328_v53, %v3347_v28  ;;  %v7667_v53 = vclamps-f32 %v6169_v43, 20.0 }
 0xa60   :  { %v3337_v4 = vmul.f32 %v6133_v46, %v3336_v60  ;;  %v3351_v5 = vmul.f32 %v3349_v57, %v3349_v57 }
 0xa61   :  { %v3338_v44 = vmul.f32 %v6134_v18, %v3336_v60  ;;  %v3352_v22 = vmul.f32 %v3350_v9, %v3350_v9  ;;  %v6168_v18 = vld [vmem:[%s8159_s1 + $0x50] sm:$0xff]  ;;  %v3741_v9 = vstv %s7656_s16 }
 0xa63   :  { %v3341_v56 = vcombine.low %v3337_v4, %v3338_v44  ;;  %v3355_v61 = vcombine.low %v3351_v5, %v3352_v22  ;;  %v3743_v4 = vstv %s7658_s17  ;;  %v3604_v5 = vpop.permute.xlu1 %3603 }
 0xa65   :  { %v3343_v45 = vsub.f32 %v3335_v26, %v3341_v56  ;;  %6136 = vst [vmem:[%s8165_s7 + $0x40] sm:$0xff] %v3355_v61  ;;  %v3742_v61 = vmul.f32 %v6168_v18, %v3741_v9 }
 0xa67   :  { %6135 = vst [vmem:[%s8164_s6 + $0x40] sm:$0xff] %v3343_v45  ;;  %v3744_v45 = vmul.f32 %v7667_v53, %v3743_v4 }
 0xa6f   :  { %v3550_v52 = vpop.f32.mrb[42].mxu1 }
 0xa70   :  { %v3573_v41 = vadd.f32 %v3550_v52, %v6841_v50  ;;  %v3552_v38 = vpop.f32.mrb[43].mxu1 }
 0xa71   :  { %v3574_v47 = vadd.f32 %v3552_v38, %v6841_v50  ;;  %v6171_v38 = vld [vmem:[%s8160_s2 + $0x50] sm:$0xff] }
 0xa72   :  { %v3606_v6 = vadd.f32 %v6941_v12, %v3573_v41 }
 0xa73   :  { %v3556_v62 = vpop.f32.mrb[44].mxu1  ;;  %v3607_v59 = vadd.f32 %v6941_v12, %v3574_v47 }
 0xa74   :  { %v3575_v2 = vadd.f32 %v3556_v62, %v6839_v48  ;;  %v3558_v51 = vpop.f32.mrb[45].mxu1  ;;  %v3614_v0 = vmax.f32 %v3606_v6, 0.0 }
 0xa75   :  { %v3576_v10 = vadd.f32 %v3558_v51, %v6839_v48  ;;  %v3615_v7 = vmax.f32 %v3607_v59, 0.0  ;;  %v7682_v51 = vadd.f32 %v3744_v45, %v3742_v61 }
 0xa76   :  { %v3608_v25 = vadd.f32 %v3594_v29, %v3575_v2 }
 0xa77   :  { %v3609_v33 = vadd.f32 %v3594_v29, %v3576_v10  ;;  %v3562_v58 = vpop.f32.mrb[46].mxu1  ;;  %v3842_v29 = vcombine.high %v7682_v51, %v7682_v51  ;;  %v3710_v10 = vcombine.high %v7569_v42, %v7569_v42 }
 0xa78   :  { %v3616_v24 = vmax.f32 %v3608_v25, 0.0  ;;  %v3577_v40 = vadd.f32 %v3562_v58, %v6844_v54  ;;  %v3564_v11 = vpop.f32.mrb[47].mxu1  ;;  %v3699_v58 = vstv %s6140_s24 }
 0xa79   :  { %v3617_v28 = vmax.f32 %v3609_v33, 0.0  ;;  %v3578_v12 = vadd.f32 %v3564_v11, %v6844_v54  ;;  %v3697_v11 = vstv %s6139_s25  ;;  %s7973_s25 = sld [smem:[#allocation2 + $0x46]] }
 0xa7a   :  { %v6393_v37 = vpack.c.bf16 %v3616_v24, %v3614_v0  ;;  %v3610_v46 = vadd.f32 %v6943_v13, %v3577_v40 }
 0xa7b   :  { %v3568_v1 = vpop.f32.mrb[48].mxu1  ;;  %v6391_v60 = vpack.c.bf16 %v3617_v28, %v3615_v7  ;;  %v3611_v26 = vadd.f32 %v6943_v13, %v3578_v12  ;;  %v3747_v13 = vcombine.high %v6171_v38, %v6171_v38 }
 0xa7c   :  { %v3579_v57 = vadd.f32 %v3568_v1, %v6853_v63  ;;  %v3570_v8 = vpop.f32.mrb[49].mxu1  ;;  %v3618_v52 = vmax.f32 %v3610_v46, 0.0 }
 0xa7d   :  { %v3580_v44 = vadd.f32 %v3570_v8, %v6853_v63  ;;  %6392 = vmatprep.subr.bf16.mxu0 %v6391_v60  ;;  %v3619_v47 = vmax.f32 %v3611_v26, 0.0 }
 0xa7e   :  { %v3612_v22 = vadd.f32 %v3604_v5, %v3579_v57  ;;  %6394 = vmatpush1.bf16.msra.mxu0 %v6393_v37  ;;  %v3698_v37 = vmul.f32 %v3697_v11, %v7584_v55  ;;  %v4104_v11 = vstv %s7734_s30  ;;  %s6191_s30 = sld [smem:[#allocation2 + $0x39]] }
 0xa7f   :  { %v3613_v56 = vadd.f32 %v3604_v5, %v3580_v44 }
 0xa80   :  { %v3620_v41 = vmax.f32 %v3612_v22, 0.0  ;;  %v3957_v22 = vpop.permute.xlu1 %3956 }
 0xa81   :  { %v3621_v62 = vmax.f32 %v3613_v56, 0.0 }
 0xa82   :  { %v6397_v6 = vpack.c.bf16 %v3620_v41, %v3618_v52 }
 0xa83   :  { %v6395_v2 = vpack.c.bf16 %v3621_v62, %v3619_v47 }
 0xa85   :  { %6396 = vmatprep.subr.bf16.mxu0 %v6395_v2  ;;  %v6195_v2 = vld [vmem:[%s8161_s3 + $0x58] sm:$0xff] }
 0xa86   :  { %6398 = vmatpush1.bf16.msra.mxu0 %v6397_v6 }
 0xa87   :  { %6172 = vmatprep.subr.msk.mxu0 %vm87_vm0, %v3747_v13 }
 0xa89   :  { %6158 = vmatmul.mubr.msk.f32.vlgmr.msra.gmra.mrb[48].mxu0 %vm354_vm2, %v7353_v39 }
 0xa8a   :  { %6173 = vmatpush1.msk.msra.mxu0 %vm87_vm0, %v6171_v38  ;;  %3816 = vmatprep.mubr.f32.mxu0 %v8178_v34 }
 0xa8b   :  { %6178 = vmatprep.subr.msk.mxu0 %vm87_vm0, %v3842_v29 }
 0xa8d   :  { %6174 = vmatmul.mubr.msk.f32.vlgmr.msra.gmra.mrb[50].mxu0 %vm78_vm1, %v6785_v27 }
 0xa8e   :  { %3822 = vmatprep.mubr.f32.mxu0 %v8178_v34  ;;  %6179 = vmatpush1.msk.msra.mxu0 %vm87_vm0, %v7682_v51 }
 0xa91   :  { %6175 = vmatmul.mubr.msk.f32.gmra.mrb[52].mxu0 %vm78_vm1, %v6794_v30 }
 0xa92   :  { %3828 = vmatprep.mubr.f32.mxu0 %v8178_v34 }
 0xa95   :  { %6176 = vmatmul.mubr.msk.f32.gmra.mrb[54].mxu0 %vm78_vm1, %v6796_v31 }
 0xa96   :  { %3834 = vmatprep.mubr.f32.mxu0 %v8178_v34 }
 0xa99   :  { %6177 = vmatmul.mubr.msk.f32.gmra.mrb[56].mxu0 %vm78_vm1, %v6806_v36 }
 0xa9a   :  { %3911 = vmatprep.mubr.f32.mxu0 %v8178_v34 }
 0xa9d   :  { %6180 = vmatmul.mubr.msk.f32.vlgmr.msra.gmra.mrb[50].mxu0 %vm78_vm1, %v7611_v3 }
 0xa9e   :  { %3917 = vmatprep.mubr.f32.mxu0 %v8178_v34 }
 0xaa1   :  { %6181 = vmatmul.mubr.msk.f32.gmra.mrb[52].mxu0 %vm78_vm1, %v7619_v49 }
 0xaa2   :  { %3923 = vmatprep.mubr.f32.mxu0 %v8178_v34 }
 0xaa5   :  { %6182 = vmatmul.mubr.msk.f32.gmra.mrb[54].mxu0 %vm78_vm1, %v7627_v19 }
 0xaa6   :  { %3929 = vmatprep.mubr.f32.mxu0 %v8178_v34 }
 0xaa9   :  { %6183 = vmatmul.mubr.msk.f32.gmra.mrb[56].mxu0 %vm78_vm1, %v7635_v35 }
 0xaaa   :  { %4412 = vmatprep.mubr.f32.mxu0 %v8178_v34 }
 0xb5c   :  { %v3688_v59 = vpop.f32.mrb[48].mxu0 }
 0xb5d   :  { %v3689_v25 = vadd.f32 %v3688_v59, %v6969_v32  ;;  %v3690_v33 = vpop.f32.mrb[49].mxu0 }
 0xb5e   :  { %v3691_v0 = vadd.f32 %v3690_v33, %v6969_v32  ;;  %v7745_v33 = vclamps-f32 %v6195_v2, 20.0 }
 0xb5f   :  { %v6159_v24 = vclamps-f32 %v3689_v25, 20.0  ;;  %v3712_v40 = vsub.f32 %v3689_v25, %v7569_v42 }
 0xb60   :  { %v6160_v43 = vclamps-f32 %v3691_v0, 20.0  ;;  %v3713_v7 = vsub.f32 %v3691_v0, %v3710_v10 }
 0xb61   :  { %v3700_v28 = vmul.f32 %v6159_v24, %v3699_v58  ;;  %v3714_v12 = vmul.f32 %v3712_v40, %v3712_v40  ;;  %v6194_v40 = vld [vmem:[%s8159_s1 + $0x58] sm:$0xff] }
 0xb62   :  { %v3701_v1 = vmul.f32 %v6160_v43, %v3699_v58  ;;  %v3715_v60 = vmul.f32 %v3713_v7, %v3713_v7  ;;  %v4106_v43 = vstv %s7736_s8  ;;  %v3967_v7 = vpop.permute.xlu1 %3966  ;;  %s6296_s8 = sld [smem:[#allocation2 + $0x4e]] }
 0xb64   :  { %v3704_v46 = vcombine.low %v3700_v28, %v3701_v1  ;;  %v3718_v57 = vcombine.low %v3714_v12, %v3715_v60  ;;  %v4105_v60 = vmul.f32 %v6194_v40, %v4104_v11 }
 0xb66   :  { %v3706_v8 = vsub.f32 %v3698_v37, %v3704_v46  ;;  %6162 = vst [vmem:[%s8165_s7 + $0x48] sm:$0xff] %v3718_v57  ;;  %v4107_v46 = vmul.f32 %v7745_v33, %v4106_v43 }
 0xb68   :  { %6161 = vst [vmem:[%s8164_s6 + $0x48] sm:$0xff] %v3706_v8 }
 0xb70   :  { %v3913_v42 = vpop.f32.mrb[50].mxu0 }
 0xb71   :  { %v3936_v18 = vadd.f32 %v3913_v42, %v6841_v50  ;;  %v3915_v9 = vpop.f32.mrb[51].mxu0  ;;  %v6197_v42 = vld [vmem:[%s8160_s2 + $0x58] sm:$0xff] }
 0xb72   :  { %v3937_v4 = vadd.f32 %v3915_v9, %v6841_v50 }
 0xb73   :  { %v3969_v5 = vadd.f32 %v6945_v14, %v3936_v18 }
 0xb74   :  { %v3919_v55 = vpop.f32.mrb[52].mxu0  ;;  %v3970_v56 = vadd.f32 %v6945_v14, %v3937_v4 }
 0xb75   :  { %v3938_v26 = vadd.f32 %v3919_v55, %v6839_v48  ;;  %v3921_v44 = vpop.f32.mrb[53].mxu0  ;;  %v3977_v38 = vmax.f32 %v3969_v5, 0.0  ;;  %v7760_v5 = vadd.f32 %v4107_v46, %v4105_v60 }
 0xb76   :  { %v3939_v61 = vadd.f32 %v3921_v44, %v6839_v48  ;;  %v3978_v13 = vmax.f32 %v3970_v56, 0.0  ;;  %v4073_v44 = vcombine.high %v7667_v53, %v7667_v53 }
 0xb77   :  { %v3971_v45 = vadd.f32 %v3957_v22, %v3938_v26  ;;  %v4205_v26 = vcombine.high %v7760_v5, %v7760_v5 }
 0xb78   :  { %v3972_v52 = vadd.f32 %v3957_v22, %v3939_v61  ;;  %v3925_v41 = vpop.f32.mrb[54].mxu0  ;;  %v4062_v61 = vstv %s6166_s14  ;;  %s8051_s14 = sld [smem:[#allocation2 + $0x4b]] }
 0xb79   :  { %v3979_v47 = vmax.f32 %v3971_v45, 0.0  ;;  %v3940_v62 = vadd.f32 %v3925_v41, %v6844_v54  ;;  %v3927_v6 = vpop.f32.mrb[55].mxu0 }
 0xb7a   :  { %v3980_v29 = vmax.f32 %v3972_v52, 0.0  ;;  %v3941_v14 = vadd.f32 %v3927_v6, %v6844_v54 }
 0xb7b   :  { %v6401_v59 = vpack.c.bf16 %v3979_v47, %v3977_v38  ;;  %v3973_v58 = vadd.f32 %v6947_v15, %v3940_v62  ;;  %v4060_v38 = vstv %s6165_s15  ;;  %s8053_s15 = sld [smem:[#allocation2 + $0x4c]] }
 0xb7c   :  { %v3931_v10 = vpop.f32.mrb[56].mxu0  ;;  %v6399_v25 = vpack.c.bf16 %v3980_v29, %v3978_v13  ;;  %v3974_v28 = vadd.f32 %v6947_v15, %v3941_v14  ;;  %v4110_v15 = vcombine.high %v6197_v42, %v6197_v42  ;;  %v4061_v13 = vmul.f32 %v4060_v38, %v7682_v51 }
 0xb7d   :  { %v3942_v0 = vadd.f32 %v3931_v10, %v6853_v63  ;;  %v3933_v24 = vpop.f32.mrb[57].mxu0  ;;  %v3981_v57 = vmax.f32 %v3973_v58, 0.0 }
 0xb7e   :  { %v3943_v12 = vadd.f32 %v3933_v24, %v6853_v63  ;;  %6400 = vmatprep.subr.bf16.mxu1 %v6399_v25  ;;  %v3982_v18 = vmax.f32 %v3974_v28, 0.0 }
 0xb7f   :  { %v3975_v37 = vadd.f32 %v3967_v7, %v3942_v0  ;;  %6402 = vmatpush1.bf16.msra.mxu1 %v6401_v59 }
 0xb80   :  { %v3976_v1 = vadd.f32 %v3967_v7, %v3943_v12  ;;  %v4320_v7 = vpop.permute.xlu1 %4319 }
 0xb81   :  { %v3983_v8 = vmax.f32 %v3975_v37, 0.0 }
 0xb82   :  { %v3984_v9 = vmax.f32 %v3976_v1, 0.0 }
 0xb83   :  { %v6405_v4 = vpack.c.bf16 %v3983_v8, %v3981_v57 }
 0xb84   :  { %v6403_v55 = vpack.c.bf16 %v3984_v9, %v3982_v18  ;;  %v6221_v18 = vld [vmem:[%s8161_s3 + $0x60] sm:$0xff] }
 0xb86   :  { %6404 = vmatprep.subr.bf16.mxu1 %v6403_v55 }
 0xb87   :  { %6406 = vmatpush1.bf16.msra.mxu1 %v6405_v4 }
 0xb88   :  { %6198 = vmatprep.subr.msk.mxu1 %vm87_vm0, %v4110_v15 }
 0xb8a   :  { %6184 = vmatmul.mubr.msk.f32.vlgmr.msra.gmra.mrb[50].mxu1 %vm354_vm2, %v7353_v39 }
 0xb8b   :  { %6199 = vmatpush1.msk.msra.mxu1 %vm87_vm0, %v6197_v42  ;;  %4179 = vmatprep.mubr.f32.mxu1 %v8178_v34 }
 0xb8c   :  { %6204 = vmatprep.subr.msk.mxu1 %vm87_vm0, %v4205_v26 }
 0xb8e   :  { %6200 = vmatmul.mubr.msk.f32.vlgmr.msra.gmra.mrb[52].mxu1 %vm78_vm1, %v6785_v27 }
 0xb8f   :  { %4185 = vmatprep.mubr.f32.mxu1 %v8178_v34  ;;  %6205 = vmatpush1.msk.msra.mxu1 %vm87_vm0, %v7760_v5 }
 0xb92   :  { %6201 = vmatmul.mubr.msk.f32.gmra.mrb[54].mxu1 %vm78_vm1, %v6794_v30 }
 0xb93   :  { %4191 = vmatprep.mubr.f32.mxu1 %v8178_v34 }
 0xb96   :  { %6202 = vmatmul.mubr.msk.f32.gmra.mrb[56].mxu1 %vm78_vm1, %v6796_v31 }
 0xb97   :  { %4197 = vmatprep.mubr.f32.mxu1 %v8178_v34 }
 0xb9a   :  { %6203 = vmatmul.mubr.msk.f32.gmra.mrb[58].mxu1 %vm78_vm1, %v6806_v36 }
 0xb9b   :  { %4274 = vmatprep.mubr.f32.mxu1 %v8178_v34 }
 0xb9e   :  { %6206 = vmatmul.mubr.msk.f32.vlgmr.msra.gmra.mrb[52].mxu1 %vm78_vm1, %v7611_v3 }
 0xb9f   :  { %4280 = vmatprep.mubr.f32.mxu1 %v8178_v34 }
 0xba2   :  { %6207 = vmatmul.mubr.msk.f32.gmra.mrb[54].mxu1 %vm78_vm1, %v7619_v49 }
 0xba3   :  { %4286 = vmatprep.mubr.f32.mxu1 %v8178_v34 }
 0xba6   :  { %6208 = vmatmul.mubr.msk.f32.gmra.mrb[56].mxu1 %vm78_vm1, %v7627_v19 }
 0xba7   :  { %4292 = vmatprep.mubr.f32.mxu1 %v8178_v34 }
 0xbaa   :  { %6209 = vmatmul.mubr.msk.f32.gmra.mrb[58].mxu1 %vm78_vm1, %v7635_v35 }
 0xbab   :  { %4775 = vmatprep.mubr.f32.mxu1 %v8178_v34 }
 0xc5d   :  { %v4051_v39 = vpop.f32.mrb[50].mxu1 }
 0xc5e   :  { %v4052_v22 = vadd.f32 %v4051_v39, %v6969_v32  ;;  %v4053_v56 = vpop.f32.mrb[51].mxu1  ;;  %v7823_v39 = vclamps-f32 %v6221_v18, 20.0 }
 0xc5f   :  { %v4054_v45 = vadd.f32 %v4053_v56, %v6969_v32 }
 0xc60   :  { %v6185_v52 = vclamps-f32 %v4052_v22, 20.0  ;;  %v4075_v41 = vsub.f32 %v4052_v22, %v7667_v53 }
 0xc61   :  { %v6186_v47 = vclamps-f32 %v4054_v45, 20.0  ;;  %v4076_v62 = vsub.f32 %v4054_v45, %v4073_v44  ;;  %v4467_v45 = vstv %s7812_s20  ;;  %s6217_s20 = sld [smem:[#allocation2 + $0x3e]] }
 0xc62   :  { %v4063_v6 = vmul.f32 %v6185_v52, %v4062_v61  ;;  %v4077_v2 = vmul.f32 %v4075_v41, %v4075_v41  ;;  %v4469_v52 = vstv %s7814_s21  ;;  %v4330_v41 = vpop.permute.xlu1 %4329 }
 0xc63   :  { %v4064_v29 = vmul.f32 %v6186_v47, %v4062_v61  ;;  %v4078_v14 = vmul.f32 %v4076_v62, %v4076_v62  ;;  %v6220_v61 = vld [vmem:[%s8159_s1 + $0x60] sm:$0xff] }
 0xc65   :  { %v4067_v59 = vcombine.low %v4063_v6, %v4064_v29  ;;  %v4081_v10 = vcombine.low %v4077_v2, %v4078_v14  ;;  %v4468_v2 = vmul.f32 %v6220_v61, %v4467_v45 }
 0xc67   :  { %v4069_v25 = vsub.f32 %v4061_v13, %v4067_v59  ;;  %6188 = vst [vmem:[%s8165_s7 + $0x50] sm:$0xff] %v4081_v10  ;;  %v4470_v13 = vmul.f32 %v7823_v39, %v4469_v52  ;;  %v6223_v59 = vld [vmem:[%s8160_s2 + $0x60] sm:$0xff]  ;;  %v4683_v52 = vpop.permute.xlu1 %4682 }
 0xc69   :  { %6187 = vst [vmem:[%s8164_s6 + $0x50] sm:$0xff] %v4069_v25 }
 0xc71   :  { %v4276_v53 = vpop.f32.mrb[52].mxu1 }
 0xc72   :  { %v4299_v58 = vadd.f32 %v4276_v53, %v6841_v50  ;;  %v4278_v0 = vpop.f32.mrb[53].mxu1 }
 0xc73   :  { %v4300_v24 = vadd.f32 %v4278_v0, %v6841_v50  ;;  %v7838_v0 = vadd.f32 %v4470_v13, %v4468_v2 }
 0xc74   :  { %v4332_v40 = vadd.f32 %v6949_v16, %v4299_v58 }
 0xc75   :  { %v4282_v51 = vpop.f32.mrb[54].mxu1  ;;  %v4333_v28 = vadd.f32 %v6949_v16, %v4300_v24  ;;  %v4568_v24 = vcombine.high %v7838_v0, %v7838_v0 }
 0xc76   :  { %v4301_v11 = vadd.f32 %v4282_v51, %v6839_v48  ;;  %v4284_v43 = vpop.f32.mrb[55].mxu1  ;;  %v4340_v46 = vmax.f32 %v4332_v40, 0.0  ;;  %v7846_v51 = vld [vmem:[%s8163_s5] sm:$0xf]  ;;  %s6192_s5 = sld [smem:[#allocation2 + $0x3a]] }
 0xc77   :  { %v4302_v12 = vadd.f32 %v4284_v43, %v6839_v48  ;;  %v4341_v9 = vmax.f32 %v4333_v28, 0.0 }
 0xc78   :  { %v4334_v37 = vadd.f32 %v4320_v7, %v4301_v11  ;;  %v4436_v11 = vcombine.high %v7745_v33, %v7745_v33 }
 0xc79   :  { %v4335_v1 = vadd.f32 %v4320_v7, %v4302_v12  ;;  %v4288_v60 = vpop.f32.mrb[56].mxu1 }
 0xc7a   :  { %v4342_v57 = vmax.f32 %v4334_v37, 0.0  ;;  %v4303_v8 = vadd.f32 %v4288_v60, %v6844_v54  ;;  %v4290_v42 = vpop.f32.mrb[57].mxu1  ;;  %v4423_v60 = vstv %s6191_s30 }
 0xc7b   :  { %v4343_v4 = vmax.f32 %v4335_v1, 0.0  ;;  %v4304_v16 = vadd.f32 %v4290_v42, %v6844_v54  ;;  %v4424_v18 = vmul.f32 %v4423_v60, %v7760_v5 }
 0xc7c   :  { %v6409_v55 = vpack.c.bf16 %v4342_v57, %v4340_v46  ;;  %v4336_v44 = vadd.f32 %v6951_v17, %v4303_v8  ;;  %v4425_v28 = vstv %s6192_s5 }
 0xc7d   :  { %v4294_v15 = vpop.f32.mrb[58].mxu1  ;;  %v6407_v26 = vpack.c.bf16 %v4343_v4, %v4341_v9  ;;  %v4337_v38 = vadd.f32 %v6951_v17, %v4304_v16  ;;  %v4473_v17 = vcombine.high %v6223_v59, %v6223_v59 }
 0xc7e   :  { %v4305_v22 = vadd.f32 %v4294_v15, %v6853_v63  ;;  %v4296_v56 = vpop.f32.mrb[59].mxu1  ;;  %v4344_v29 = vmax.f32 %v4336_v44, 0.0 }
 0xc7f   :  { %v4306_v47 = vadd.f32 %v4296_v56, %v6853_v63  ;;  %6408 = vmatprep.subr.bf16.mxu0 %v6407_v26  ;;  %v4345_v10 = vmax.f32 %v4337_v38, 0.0 }
 0xc80   :  { %v4338_v62 = vadd.f32 %v4330_v41, %v4305_v22  ;;  %6410 = vmatpush1.bf16.msra.mxu0 %v6409_v55 }
 0xc81   :  { %v4339_v6 = vadd.f32 %v4330_v41, %v4306_v47 }
 0xc82   :  { %v4346_v14 = vmax.f32 %v4338_v62, 0.0 }
 0xc83   :  { %v4347_v25 = vmax.f32 %v4339_v6, 0.0 }
 0xc84   :  { %v6413_v53 = vpack.c.bf16 %v4346_v14, %v4344_v29 }
 0xc85   :  { %v6411_v58 = vpack.c.bf16 %v4347_v25, %v4345_v10 }
 0xc87   :  { %6412 = vmatprep.subr.bf16.mxu0 %v6411_v58 }
 0xc88   :  { %6414 = vmatpush1.bf16.msra.mxu0 %v6413_v53 }
 0xc89   :  { %6224 = vmatprep.subr.msk.mxu0 %vm87_vm0, %v4473_v17 }
 0xc8b   :  { %6210 = vmatmul.mubr.msk.f32.vlgmr.msra.gmra.mrb[58].mxu0 %vm354_vm2, %v7846_v51 }
 0xc8c   :  { %6225 = vmatpush1.msk.msra.mxu0 %vm87_vm0, %v6223_v59  ;;  %4542 = vmatprep.mubr.f32.mxu0 %v8178_v34  ;;  %v6247_v59 = vld [vmem:[%s8161_s3 + $0x68] sm:$0xff] }
 0xc8d   :  { %6230 = vmatprep.subr.msk.mxu0 %vm87_vm0, %v4568_v24  ;;  %v7906_v24 = vclamps-f32 %v6247_v59, 20.0 }
 0xc8f   :  { %6226 = vmatmul.mubr.msk.f32.vlgmr.msra.gmra.mrb[60].mxu0 %vm78_vm1, %v6785_v27 }
 0xc90   :  { %4548 = vmatprep.mubr.f32.mxu0 %v8178_v34  ;;  %6231 = vmatpush1.msk.msra.mxu0 %vm87_vm0, %v7838_v0 }
 0xc93   :  { %6227 = vmatmul.mubr.msk.f32.gmra.mrb[62].mxu0 %vm78_vm1, %v6794_v30 }
 0xc94   :  { %4554 = vmatprep.mubr.f32.mxu0 %v8178_v34 }
 0xc97   :  { %6228 = vmatmul.mubr.msk.f32.gmra.mrb[64].mxu0 %vm78_vm1, %v6796_v31 }
 0xc98   :  { %4560 = vmatprep.mubr.f32.mxu0 %v8178_v34 }
 0xc9b   :  { %6229 = vmatmul.mubr.msk.f32.gmra.mrb[66].mxu0 %vm78_vm1, %v6806_v36 }
 0xc9c   :  { %4637 = vmatprep.mubr.f32.mxu0 %v8178_v34 }
 0xc9f   :  { %6232 = vmatmul.mubr.msk.f32.vlgmr.msra.gmra.mrb[60].mxu0 %vm78_vm1, %v7611_v3 }
 0xca0   :  { %4643 = vmatprep.mubr.f32.mxu0 %v8178_v34 }
 0xca3   :  { %6233 = vmatmul.mubr.msk.f32.gmra.mrb[62].mxu0 %vm78_vm1, %v7619_v49 }
 0xca4   :  { %4649 = vmatprep.mubr.f32.mxu0 %v8178_v34 }
 0xca7   :  { %6234 = vmatmul.mubr.msk.f32.gmra.mrb[64].mxu0 %vm78_vm1, %v7627_v19 }
 0xca8   :  { %4655 = vmatprep.mubr.f32.mxu0 %v8178_v34 }
 0xcab   :  { %6235 = vmatmul.mubr.msk.f32.gmra.mrb[66].mxu0 %vm78_vm1, %v7635_v35 }
 0xcac   :  { %5138 = vmatprep.mubr.f32.mxu0 %v8178_v34 }
 0xd5e   :  { %v4414_v40 = vpop.f32.mrb[58].mxu0 }
 0xd5f   :  { %v4415_v43 = vadd.f32 %v4414_v40, %v6969_v32  ;;  %v4416_v7 = vpop.f32.mrb[59].mxu0 }
 0xd60   :  { %v4417_v12 = vadd.f32 %v4416_v7, %v6969_v32  ;;  %v6246_v7 = vld [vmem:[%s8159_s1 + $0x68] sm:$0xff] }
 0xd61   :  { %v6211_v37 = vclamps-f32 %v4415_v43, 20.0  ;;  %v4438_v1 = vsub.f32 %v4415_v43, %v7745_v33 }
 0xd62   :  { %v6212_v46 = vclamps-f32 %v4417_v12, 20.0  ;;  %v4439_v57 = vsub.f32 %v4417_v12, %v4436_v11  ;;  %v4832_v12 = vstv %s7897_s12 }
 0xd63   :  { %v4426_v8 = vmul.f32 %v6211_v37, %v4425_v28  ;;  %v4440_v42 = vmul.f32 %v4438_v1, %v4438_v1  ;;  %v4693_v37 = vpop.permute.xlu1 %4692 }
 0xd64   :  { %v4427_v9 = vmul.f32 %v6212_v46, %v4425_v28  ;;  %v4441_v4 = vmul.f32 %v4439_v57, %v4439_v57  ;;  %v4830_v28 = vstv %s7895_s11 }
 0xd66   :  { %v4430_v16 = vcombine.low %v4426_v8, %v4427_v9  ;;  %v4444_v55 = vcombine.low %v4440_v42, %v4441_v4  ;;  %v4831_v8 = vmul.f32 %v6246_v7, %v4830_v28  ;;  %v4833_v42 = vmul.f32 %v7906_v24, %v4832_v12  ;;  %v6249_v4 = vld [vmem:[%s8160_s2 + $0x68] sm:$0xff] }
 0xd67   :  { %v5046_v7 = vpop.permute.xlu1 %5045 }
 0xd68   :  { %v4432_v15 = vsub.f32 %v4424_v18, %v4430_v16  ;;  %6214 = vst [vmem:[%s8165_s7 + $0x58] sm:$0xff] %v4444_v55 }
 0xd6a   :  { %6213 = vst [vmem:[%s8164_s6 + $0x58] sm:$0xff] %v4432_v15 }
 0xd72   :  { %v4639_v33 = vpop.f32.mrb[60].mxu0 }
 0xd73   :  { %v4662_v26 = vadd.f32 %v4639_v33, %v6841_v50  ;;  %v4641_v44 = vpop.f32.mrb[61].mxu0 }
 0xd74   :  { %v4663_v22 = vadd.f32 %v4641_v44, %v6841_v50 }
 0xd75   :  { %v4695_v56 = vadd.f32 %v6953_v20, %v4662_v26  ;;  %v7921_v26 = vadd.f32 %v4833_v42, %v4831_v8 }
 0xd76   :  { %v4645_v5 = vpop.f32.mrb[62].mxu0  ;;  %v4696_v41 = vadd.f32 %v6953_v20, %v4663_v22 }
 0xd77   :  { %v4664_v61 = vadd.f32 %v4645_v5, %v6839_v48  ;;  %v4647_v45 = vpop.f32.mrb[63].mxu0  ;;  %v4703_v2 = vmax.f32 %v4695_v56, 0.0  ;;  %v4931_v44 = vcombine.high %v7921_v26, %v7921_v26  ;;  %v4799_v5 = vcombine.high %v7823_v39, %v7823_v39 }
 0xd78   :  { %v4665_v38 = vadd.f32 %v4647_v45, %v6839_v48  ;;  %v4704_v10 = vmax.f32 %v4696_v41, 0.0  ;;  %v4788_v45 = vstv %s6218_s19 }
 0xd79   :  { %v4697_v47 = vadd.f32 %v4683_v52, %v4664_v61 }
 0xd7a   :  { %v4698_v62 = vadd.f32 %v4683_v52, %v4665_v38  ;;  %v4651_v6 = vpop.f32.mrb[64].mxu0 }
 0xd7b   :  { %v4705_v13 = vmax.f32 %v4697_v47, 0.0  ;;  %v4666_v29 = vadd.f32 %v4651_v6, %v6844_v54  ;;  %v4653_v14 = vpop.f32.mrb[65].mxu0  ;;  %v4786_v47 = vstv %s6217_s20 }
 0xd7c   :  { %v4706_v25 = vmax.f32 %v4698_v62, 0.0  ;;  %v4667_v20 = vadd.f32 %v4653_v14, %v6844_v54 }
 0xd7d   :  { %v6417_v53 = vpack.c.bf16 %v4705_v13, %v4703_v2  ;;  %v4699_v40 = vadd.f32 %v6955_v21, %v4666_v29  ;;  %v4787_v29 = vmul.f32 %v4786_v47, %v7838_v0 }
 0xd7e   :  { %v4657_v58 = vpop.f32.mrb[66].mxu0  ;;  %v6415_v17 = vpack.c.bf16 %v4706_v25, %v4704_v10  ;;  %v4700_v1 = vadd.f32 %v6955_v21, %v4667_v20  ;;  %v4836_v21 = vcombine.high %v6249_v4, %v6249_v4 }
 0xd7f   :  { %v4668_v11 = vadd.f32 %v4657_v58, %v6853_v63  ;;  %v4659_v43 = vpop.f32.mrb[67].mxu0  ;;  %v4707_v18 = vmax.f32 %v4699_v40, 0.0 }
 0xd80   :  { %v4669_v60 = vadd.f32 %v4659_v43, %v6853_v63  ;;  %6416 = vmatprep.subr.bf16.mxu1 %v6415_v17  ;;  %v4708_v16 = vmax.f32 %v4700_v1, 0.0 }
 0xd81   :  { %v4701_v46 = vadd.f32 %v4693_v37, %v4668_v11  ;;  %6418 = vmatpush1.bf16.msra.mxu1 %v6417_v53 }
 0xd82   :  { %v4702_v57 = vadd.f32 %v4693_v37, %v4669_v60 }
 0xd83   :  { %v4709_v9 = vmax.f32 %v4701_v46, 0.0 }
 0xd84   :  { %v4710_v55 = vmax.f32 %v4702_v57, 0.0 }
 0xd85   :  { %v6421_v15 = vpack.c.bf16 %v4709_v9, %v4707_v18  ;;  %v6273_v18 = vld [vmem:[%s8161_s3 + $0x70] sm:$0xff] }
 0xd86   :  { %v6419_v33 = vpack.c.bf16 %v4710_v55, %v4708_v16 }
 0xd88   :  { %6420 = vmatprep.subr.bf16.mxu1 %v6419_v33  ;;  %v7984_v33 = vclamps-f32 %v6273_v18, 20.0 }
 0xd89   :  { %6422 = vmatpush1.bf16.msra.mxu1 %v6421_v15 }
 0xd8a   :  { %6250 = vmatprep.subr.msk.mxu1 %vm87_vm0, %v4836_v21  ;;  %v8179_v21 = vld [vmem:[#allocation5_spill] sm:$0xff] }
 0xd8c   :  { %6236 = vmatmul.mubr.msk.f32.vlgmr.msra.gmra.mrb[60].mxu1 %vm354_vm2, %v7846_v51 }
 0xd8d   :  { %6251 = vmatpush1.msk.msra.mxu1 %vm87_vm0, %v6249_v4  ;;  %4905 = vmatprep.mubr.f32.mxu1 %v8178_v34 }
 0xd8e   :  { %6256 = vmatprep.subr.msk.mxu1 %vm87_vm0, %v4931_v44 }
 0xd90   :  { %6252 = vmatmul.mubr.msk.f32.vlgmr.msra.gmra.mrb[62].mxu1 %vm78_vm1, %v6785_v27 }
 0xd91   :  { %4911 = vmatprep.mubr.f32.mxu1 %v8178_v34  ;;  %6257 = vmatpush1.msk.msra.mxu1 %vm87_vm0, %v7921_v26 }
 0xd94   :  { %6253 = vmatmul.mubr.msk.f32.gmra.mrb[64].mxu1 %vm78_vm1, %v6794_v30 }
 0xd95   :  { %4917 = vmatprep.mubr.f32.mxu1 %v8178_v34 }
 0xd98   :  { %6254 = vmatmul.mubr.msk.f32.gmra.mrb[66].mxu1 %vm78_vm1, %v6796_v31 }
 0xd99   :  { %4923 = vmatprep.mubr.f32.mxu1 %v8178_v34 }
 0xd9c   :  { %6255 = vmatmul.mubr.msk.f32.gmra.mrb[68].mxu1 %vm78_vm1, %v6806_v36 }
 0xd9d   :  { %5000 = vmatprep.mubr.f32.mxu1 %v8178_v34 }
 0xda0   :  { %6258 = vmatmul.mubr.msk.f32.vlgmr.msra.gmra.mrb[62].mxu1 %vm78_vm1, %v7611_v3 }
 0xda1   :  { %5006 = vmatprep.mubr.f32.mxu1 %v8178_v34 }
 0xda4   :  { %6259 = vmatmul.mubr.msk.f32.gmra.mrb[64].mxu1 %vm78_vm1, %v7619_v49 }
 0xda5   :  { %5012 = vmatprep.mubr.f32.mxu1 %v8178_v34 }
 0xda8   :  { %6260 = vmatmul.mubr.msk.f32.gmra.mrb[66].mxu1 %vm78_vm1, %v7627_v19 }
 0xda9   :  { %5018 = vmatprep.mubr.f32.mxu1 %v8178_v34 }
 0xdac   :  { %6261 = vmatmul.mubr.msk.f32.gmra.mrb[68].mxu1 %vm78_vm1, %v7635_v35 }
 0xdad   :  { %5501 = vmatprep.mubr.f32.mxu1 %v8178_v34 }
 0xe5f   :  { %v4777_v22 = vpop.f32.mrb[60].mxu1 }
 0xe60   :  { %v4778_v56 = vadd.f32 %v4777_v22, %v6969_v32  ;;  %v4779_v61 = vpop.f32.mrb[61].mxu1 }
 0xe61   :  { %v4780_v52 = vadd.f32 %v4779_v61, %v6969_v32  ;;  %v5193_v61 = vstv %s7973_s25 }
 0xe62   :  { %v6237_v41 = vclamps-f32 %v4778_v56, 20.0  ;;  %v4801_v38 = vsub.f32 %v4778_v56, %v7823_v39  ;;  %v6272_v56 = vld [vmem:[%s8159_s1 + $0x70] sm:$0xff] }
 0xe63   :  { %v6238_v62 = vclamps-f32 %v4780_v52, 20.0  ;;  %v4802_v6 = vsub.f32 %v4780_v52, %v4799_v5  ;;  %v5056_v52 = vpop.permute.xlu1 %5055 }
 0xe64   :  { %v4789_v2 = vmul.f32 %v6237_v41, %v4788_v45  ;;  %v4803_v13 = vmul.f32 %v4801_v38, %v4801_v38 }
 0xe65   :  { %v4790_v14 = vmul.f32 %v6238_v62, %v4788_v45  ;;  %v4804_v59 = vmul.f32 %v4802_v6, %v4802_v6  ;;  %v5195_v45 = vstv %s7975_s26  ;;  %v5194_v6 = vmul.f32 %v6272_v56, %v5193_v61 }
 0xe67   :  { %v4793_v10 = vcombine.low %v4789_v2, %v4790_v14  ;;  %v4807_v25 = vcombine.low %v4803_v13, %v4804_v59  ;;  %v5196_v2 = vmul.f32 %v7984_v33, %v5195_v45  ;;  %v6275_v14 = vld [vmem:[%s8160_s2 + $0x70] sm:$0xff] }
 0xe69   :  { %v4795_v20 = vsub.f32 %v4787_v29, %v4793_v10  ;;  %6240 = vst [vmem:[%s8165_s7 + $0x60] sm:$0xff] %v4807_v25 }
 0xe6b   :  { %6239 = vst [vmem:[%s8164_s6 + $0x60] sm:$0xff] %v4795_v20 }
 0xe73   :  { %v5002_v39 = vpop.f32.mrb[62].mxu1 }
 0xe74   :  { %v5025_v53 = vadd.f32 %v5002_v39, %v6841_v50  ;;  %v5004_v58 = vpop.f32.mrb[63].mxu1  ;;  %v5199_v39 = vcombine.high %v6275_v14, %v6275_v14 }
 0xe75   :  { %v5026_v17 = vadd.f32 %v5004_v58, %v6841_v50 }
 0xe76   :  { %v5058_v40 = vadd.f32 %v6957_v23, %v5025_v53  ;;  %v7999_v53 = vadd.f32 %v5196_v2, %v5194_v6 }
 0xe77   :  { %v5008_v0 = vpop.f32.mrb[64].mxu1  ;;  %v5059_v28 = vadd.f32 %v6957_v23, %v5026_v17  ;;  %v5162_v17 = vcombine.high %v7906_v24, %v7906_v24 }
 0xe78   :  { %v5027_v11 = vadd.f32 %v5008_v0, %v6839_v48  ;;  %v5010_v43 = vpop.f32.mrb[65].mxu1  ;;  %v5066_v46 = vmax.f32 %v5058_v40, 0.0  ;;  %v5294_v58 = vcombine.high %v7999_v53, %v7999_v53  ;;  %v5151_v40 = vstv %s6244_s0  ;;  %s6295_s0 = sld [smem:[#allocation2 + $0x4d]] }
 0xe79   :  { %v5028_v12 = vadd.f32 %v5010_v43, %v6839_v48  ;;  %v5067_v9 = vmax.f32 %v5059_v28, 0.0 }
 0xe7a   :  { %v5060_v37 = vadd.f32 %v5046_v7, %v5027_v11 }
 0xe7b   :  { %v5061_v1 = vadd.f32 %v5046_v7, %v5028_v12  ;;  %v5014_v60 = vpop.f32.mrb[66].mxu1  ;;  %v5149_v7 = vstv %s6243_s9 }
 0xe7c   :  { %v5068_v57 = vmax.f32 %v5060_v37, 0.0  ;;  %v5029_v8 = vadd.f32 %v5014_v60, %v6844_v54  ;;  %v5016_v42 = vpop.f32.mrb[67].mxu1 }
 0xe7d   :  { %v5069_v4 = vmax.f32 %v5061_v1, 0.0  ;;  %v5030_v23 = vadd.f32 %v5016_v42, %v6844_v54  ;;  %v5150_v1 = vmul.f32 %v5149_v7, %v7921_v26 }
 0xe7e   :  { %v6425_v16 = vpack.c.bf16 %v5068_v57, %v5066_v46  ;;  %v5062_v44 = vadd.f32 %v8179_v21, %v5029_v8 }
 0xe7f   :  { %v5020_v55 = vpop.f32.mrb[68].mxu1  ;;  %v6423_v15 = vpack.c.bf16 %v5069_v4, %v5067_v9  ;;  %v5063_v41 = vadd.f32 %v8179_v21, %v5030_v23  ;;  %v8180_v23 = vld [vmem:[#allocation6_spill] sm:$0xff]  ;;  %v5409_v21 = vpop.permute.xlu1 %5408 }
 0xe80   :  { %v5031_v22 = vadd.f32 %v5020_v55, %v6853_v63  ;;  %v5022_v5 = vpop.f32.mrb[69].mxu1  ;;  %v5070_v13 = vmax.f32 %v5062_v44, 0.0 }
 0xe81   :  { %v5032_v38 = vadd.f32 %v5022_v5, %v6853_v63  ;;  %6424 = vmatprep.subr.bf16.mxu0 %v6423_v15  ;;  %v5071_v59 = vmax.f32 %v5063_v41, 0.0 }
 0xe82   :  { %v5064_v47 = vadd.f32 %v5056_v52, %v5031_v22  ;;  %6426 = vmatpush1.bf16.msra.mxu0 %v6425_v16 }
 0xe83   :  { %v5065_v62 = vadd.f32 %v5056_v52, %v5032_v38 }
 0xe84   :  { %v5072_v29 = vmax.f32 %v5064_v47, 0.0  ;;  %v6299_v47 = vld [vmem:[%s8161_s3 + $0x78] sm:$0xff] }
 0xe85   :  { %v5073_v10 = vmax.f32 %v5065_v62, 0.0 }
 0xe86   :  { %v6429_v25 = vpack.c.bf16 %v5072_v29, %v5070_v13 }
 0xe87   :  { %v6427_v20 = vpack.c.bf16 %v5073_v10, %v5071_v59  ;;  %v8062_v59 = vclamps-f32 %v6299_v47, 20.0  ;;  %v8181_v10 = vld [vmem:[#allocation7_spill] sm:$0xff] }
 0xe89   :  { %6428 = vmatprep.subr.bf16.mxu0 %v6427_v20 }
 0xe8a   :  { %6430 = vmatpush1.bf16.msra.mxu0 %v6429_v25 }
 0xe8b   :  { %6276 = vmatprep.subr.msk.mxu0 %vm87_vm0, %v5199_v39 }
 0xe8d   :  { %6262 = vmatmul.mubr.msk.f32.vlgmr.msra.gmra.mrb[68].mxu0 %vm354_vm2, %v7846_v51 }
 0xe8e   :  { %6277 = vmatpush1.msk.msra.mxu0 %vm87_vm0, %v6275_v14  ;;  %5268 = vmatprep.mubr.f32.mxu0 %v8178_v34 }
 0xe8f   :  { %6282 = vmatprep.subr.msk.mxu0 %vm87_vm0, %v5294_v58  ;;  %v6298_v58 = vld [vmem:[%s8159_s1 + $0x78] sm:$0xff] }
 0xe91   :  { %6278 = vmatmul.mubr.msk.f32.vlgmr.msra.gmra.mrb[70].mxu0 %vm78_vm1, %v6785_v27 }
 0xe92   :  { %5274 = vmatprep.mubr.f32.mxu0 %v8178_v34  ;;  %6283 = vmatpush1.msk.msra.mxu0 %vm87_vm0, %v7999_v53 }
 0xe95   :  { %6279 = vmatmul.mubr.msk.f32.gmra.mrb[72].mxu0 %vm78_vm1, %v6794_v30 }
 0xe96   :  { %5280 = vmatprep.mubr.f32.mxu0 %v8178_v34 }
 0xe99   :  { %6280 = vmatmul.mubr.msk.f32.gmra.mrb[74].mxu0 %vm78_vm1, %v6796_v31 }
 0xe9a   :  { %5286 = vmatprep.mubr.f32.mxu0 %v8178_v34 }
 0xe9d   :  { %6281 = vmatmul.mubr.msk.f32.gmra.mrb[76].mxu0 %vm78_vm1, %v6806_v36 }
 0xe9e   :  { %5363 = vmatprep.mubr.f32.mxu0 %v8178_v34 }
 0xea1   :  { %6284 = vmatmul.mubr.msk.f32.vlgmr.msra.gmra.mrb[70].mxu0 %vm78_vm1, %v7611_v3 }
 0xea2   :  { %5369 = vmatprep.mubr.f32.mxu0 %v8178_v34 }
 0xea5   :  { %6285 = vmatmul.mubr.msk.f32.gmra.mrb[72].mxu0 %vm78_vm1, %v7619_v49 }
 0xea6   :  { %5375 = vmatprep.mubr.f32.mxu0 %v8178_v34 }
 0xea9   :  { %6286 = vmatmul.mubr.msk.f32.gmra.mrb[74].mxu0 %vm78_vm1, %v7627_v19 }
 0xeaa   :  { %5381 = vmatprep.mubr.f32.mxu0 %v8178_v34 }
 0xead   :  { %6287 = vmatmul.mubr.msk.f32.gmra.mrb[76].mxu0 %vm78_vm1, %v7635_v35 }
 0xeae   :  { %5864 = vmatprep.mubr.f32.mxu0 %v8178_v34 }
 0xf60   :  { %v5140_v3 = vpop.f32.mrb[68].mxu0 }
 0xf61   :  { %v5141_v49 = vadd.f32 %v5140_v3, %v6969_v32  ;;  %v5142_v0 = vpop.f32.mrb[69].mxu0  ;;  %v5556_v3 = vstv %s8051_s14 }
 0xf62   :  { %v5143_v11 = vadd.f32 %v5142_v0, %v6969_v32 }
 0xf63   :  { %v6263_v19 = vclamps-f32 %v5141_v49, 20.0  ;;  %v5164_v43 = vsub.f32 %v5141_v49, %v7906_v24  ;;  %v5419_v49 = vpop.permute.xlu1 %5418 }
 0xf64   :  { %v6264_v28 = vclamps-f32 %v5143_v11, 20.0  ;;  %v5165_v35 = vsub.f32 %v5143_v11, %v5162_v17  ;;  %v5558_v17 = vstv %s8053_s15 }
 0xf65   :  { %v5152_v12 = vmul.f32 %v6263_v19, %v5151_v40  ;;  %v5166_v37 = vmul.f32 %v5164_v43, %v5164_v43  ;;  %v5557_v43 = vmul.f32 %v6298_v58, %v5556_v3  ;;  %v5559_v7 = vmul.f32 %v8062_v59, %v5558_v17 }
 0xf66   :  { %v5153_v60 = vmul.f32 %v6264_v28, %v5151_v40  ;;  %v5167_v46 = vmul.f32 %v5165_v35, %v5165_v35 }
 0xf68   :  { %v5156_v57 = vcombine.low %v5152_v12, %v5153_v60  ;;  %v5170_v8 = vcombine.low %v5166_v37, %v5167_v46  ;;  %v6301_v12 = vld [vmem:[%s8160_s2 + $0x78] sm:$0xff] }
 0xf6a   :  { %v5158_v42 = vsub.f32 %v5150_v1, %v5156_v57  ;;  %6266 = vst [vmem:[%s8165_s7 + $0x68] sm:$0xff] %v5170_v8  ;;  %v5562_v57 = vcombine.high %v6301_v12, %v6301_v12  ;;  %v8077_v8 = vadd.f32 %v5559_v7, %v5557_v43 }
 0xf6c   :  { %6265 = vst [vmem:[%s8164_s6 + $0x68] sm:$0xff] %v5158_v42  ;;  %v5657_v42 = vcombine.high %v8077_v8, %v8077_v8 }
 0xf74   :  { %v5365_v24 = vpop.f32.mrb[70].mxu0 }
 0xf75   :  { %v5388_v18 = vadd.f32 %v5365_v24, %v6841_v50  ;;  %v5367_v9 = vpop.f32.mrb[71].mxu0 }
 0xf76   :  { %v5389_v4 = vadd.f32 %v5367_v9, %v6841_v50 }
 0xf77   :  { %v5421_v16 = vadd.f32 %v8180_v23, %v5388_v18  ;;  %v5525_v18 = vcombine.high %v7984_v33, %v7984_v33 }
 0xf78   :  { %v5371_v26 = vpop.f32.mrb[72].mxu0  ;;  %v5422_v44 = vadd.f32 %v8180_v23, %v5389_v4 }
 0xf79   :  { %v5390_v55 = vadd.f32 %v5371_v26, %v6839_v48  ;;  %v5373_v15 = vpop.f32.mrb[73].mxu0  ;;  %v5429_v45 = vmax.f32 %v5421_v16, 0.0  ;;  %v5514_v26 = vstv %s6270_s27 }
 0xf7a   :  { %v5391_v22 = vadd.f32 %v5373_v15, %v6839_v48  ;;  %v5430_v62 = vmax.f32 %v5422_v44, 0.0 }
 0xf7b   :  { %v5423_v5 = vadd.f32 %v5409_v21, %v5390_v55  ;;  %v5512_v55 = vstv %s6269_s28 }
 0xf7c   :  { %v5424_v56 = vadd.f32 %v5409_v21, %v5391_v22  ;;  %v5377_v61 = vpop.f32.mrb[74].mxu0 }
 0xf7d   :  { %v5431_v52 = vmax.f32 %v5423_v5, 0.0  ;;  %v5392_v41 = vadd.f32 %v5377_v61, %v6844_v54  ;;  %v5379_v38 = vpop.f32.mrb[75].mxu0  ;;  %v5513_v5 = vmul.f32 %v5512_v55, %v7999_v53 }
 0xf7e   :  { %v5432_v6 = vmax.f32 %v5424_v56, 0.0  ;;  %v5393_v2 = vadd.f32 %v5379_v38, %v6844_v54 }
 0xf7f   :  { %v6433_v13 = vpack.c.bf16 %v5431_v52, %v5429_v45  ;;  %v5425_v25 = vadd.f32 %v8181_v10, %v5392_v41 }
 0xf80   :  { %v5383_v29 = vpop.f32.mrb[76].mxu0  ;;  %v6431_v14 = vpack.c.bf16 %v5432_v6, %v5430_v62  ;;  %v5426_v0 = vadd.f32 %v8181_v10, %v5393_v2  ;;  %v8182_v6 = vld [vmem:[#allocation8_spill] sm:$0xff] }
 0xf81   :  { %v5394_v20 = vadd.f32 %v5383_v29, %v6853_v63  ;;  %v5385_v39 = vpop.f32.mrb[77].mxu0  ;;  %v5433_v28 = vmax.f32 %v5425_v25, 0.0 }
 0xf82   :  { %v5395_v40 = vadd.f32 %v5385_v39, %v6853_v63  ;;  %6432 = vmatprep.subr.bf16.mxu1 %v6431_v14  ;;  %v5434_v37 = vmax.f32 %v5426_v0, 0.0  ;;  %v5772_v14 = vpop.permute.xlu1 %5771 }
 0xf83   :  { %v5427_v11 = vadd.f32 %v5419_v49, %v5394_v20  ;;  %6434 = vmatpush1.bf16.msra.mxu1 %v6433_v13 }
 0xf84   :  { %v5428_v19 = vadd.f32 %v5419_v49, %v5395_v40 }
 0xf85   :  { %v5435_v35 = vmax.f32 %v5427_v11, 0.0 }
 0xf86   :  { %v5436_v1 = vmax.f32 %v5428_v19, 0.0 }
 0xf87   :  { %v6437_v60 = vpack.c.bf16 %v5435_v35, %v5433_v28  ;;  %v8183_v28 = vld [vmem:[#allocation9_spill] sm:$0xff] }
 0xf88   :  { %v6435_v46 = vpack.c.bf16 %v5436_v1, %v5434_v37  ;;  %v5782_v37 = vpop.permute.xlu1 %5781 }
 0xf8a   :  { %6436 = vmatprep.subr.bf16.mxu1 %v6435_v46 }
 0xf8b   :  { %6438 = vmatpush1.bf16.msra.mxu1 %v6437_v60 }
 0xf8c   :  { %6302 = vmatprep.subr.msk.mxu1 %vm87_vm0, %v5562_v57 }
 0xf8e   :  { %6288 = vmatmul.mubr.msk.f32.vlgmr.msra.gmra.mrb[70].mxu1 %vm354_vm2, %v7846_v51 }
 0xf8f   :  { %6303 = vmatpush1.msk.msra.mxu1 %vm87_vm0, %v6301_v12  ;;  %5631 = vmatprep.mubr.f32.mxu1 %v8178_v34 }
 0xf90   :  { %6308 = vmatprep.subr.msk.mxu1 %vm87_vm0, %v5657_v42 }
 0xf92   :  { %6304 = vmatmul.mubr.msk.f32.vlgmr.msra.gmra.mrb[72].mxu1 %vm78_vm1, %v6785_v27  ;;  %v6615_v27 = vld [vmem:[%s8162_s4] sm:$0xff] }
 0xf93   :  { %5637 = vmatprep.mubr.f32.mxu1 %v8178_v34  ;;  %6309 = vmatpush1.msk.msra.mxu1 %vm87_vm0, %v8077_v8 }
 0xf96   :  { %6305 = vmatmul.mubr.msk.f32.gmra.mrb[74].mxu1 %vm78_vm1, %v6794_v30  ;;  %v6616_v30 = vld [vmem:[%s8162_s4 + $0x8] sm:$0xff] }
 0xf97   :  { %5643 = vmatprep.mubr.f32.mxu1 %v8178_v34 }
 0xf9a   :  { %6306 = vmatmul.mubr.msk.f32.gmra.mrb[76].mxu1 %vm78_vm1, %v6796_v31  ;;  %v6617_v31 = vld [vmem:[%s8162_s4 + $0x10] sm:$0xff] }
 0xf9b   :  { %5649 = vmatprep.mubr.f32.mxu1 %v8178_v34 }
 0xf9e   :  { %6307 = vmatmul.mubr.msk.f32.gmra.mrb[78].mxu1 %vm78_vm1, %v6806_v36  ;;  %v6618_v36 = vld [vmem:[%s8162_s4 + $0x18] sm:$0xff] }
 0xf9f   :  { %5726 = vmatprep.mubr.f32.mxu1 %v8178_v34 }
 0xfa2   :  { %6310 = vmatmul.mubr.msk.f32.vlgmr.msra.gmra.mrb[72].mxu1 %vm78_vm1, %v6615_v27 }
 0xfa3   :  { %5732 = vmatprep.mubr.f32.mxu1 %v8178_v34 }
 0xfa6   :  { %6311 = vmatmul.mubr.msk.f32.gmra.mrb[74].mxu1 %vm78_vm1, %v6616_v30 }
 0xfa7   :  { %5738 = vmatprep.mubr.f32.mxu1 %v8178_v34 }
 0xfaa   :  { %6312 = vmatmul.mubr.msk.f32.gmra.mrb[76].mxu1 %vm78_vm1, %v6617_v31 }
 0xfab   :  { %5744 = vmatprep.mubr.f32.mxu1 %v8178_v34 }
 0xfae   :  { %6313 = vmatmul.mubr.msk.f32.gmra.mrb[78].mxu1 %vm78_vm1, %v6618_v36 }
0x1061   :  { %v5503_v24 = vpop.f32.mrb[70].mxu1 }
0x1062   :  { %v5504_v9 = vadd.f32 %v5503_v24, %v6969_v32  ;;  %v5505_v4 = vpop.f32.mrb[71].mxu1 }
0x1063   :  { %v5506_v23 = vadd.f32 %v5505_v4, %v6969_v32  ;;  %v5877_v4 = vstv %s6296_s8 }
0x1064   :  { %v6289_v16 = vclamps-f32 %v5504_v9, 20.0  ;;  %v5527_v34 = vsub.f32 %v5504_v9, %v7984_v33 }
0x1065   :  { %v6290_v15 = vclamps-f32 %v5506_v23, 20.0  ;;  %v5528_v21 = vsub.f32 %v5506_v23, %v5525_v18 }
0x1066   :  { %v5515_v44 = vmul.f32 %v6289_v16, %v5514_v26  ;;  %v5529_v22 = vmul.f32 %v5527_v34, %v5527_v34  ;;  %v5875_v34 = vstv %s6295_s0 }
0x1067   :  { %v5516_v56 = vmul.f32 %v6290_v15, %v5514_v26  ;;  %v5530_v61 = vmul.f32 %v5528_v21, %v5528_v21 }
0x1069   :  { %v5519_v45 = vcombine.low %v5515_v44, %v5516_v56  ;;  %v5533_v52 = vcombine.low %v5529_v22, %v5530_v61  ;;  %v5876_v44 = vmul.f32 %v5875_v34, %v8077_v8 }
0x106b   :  { %v5521_v41 = vsub.f32 %v5513_v5, %v5519_v45  ;;  %6292 = vst [vmem:[%s8165_s7 + $0x70] sm:$0xff] %v5533_v52 }
0x106d   :  { %6291 = vst [vmem:[%s8164_s6 + $0x70] sm:$0xff] %v5521_v41 }
0x1075   :  { %v5728_v33 = vpop.f32.mrb[72].mxu1 }
0x1076   :  { %v5751_v38 = vadd.f32 %v5728_v33, %v6841_v50  ;;  %v5730_v47 = vpop.f32.mrb[73].mxu1 }
0x1077   :  { %v5752_v62 = vadd.f32 %v5730_v47, %v6841_v50 }
0x1078   :  { %v5784_v2 = vadd.f32 %v8182_v6, %v5751_v38 }
0x1079   :  { %v5734_v53 = vpop.f32.mrb[74].mxu1  ;;  %v5785_v10 = vadd.f32 %v8182_v6, %v5752_v62 }
0x107a   :  { %v5753_v13 = vadd.f32 %v5734_v53, %v6839_v48  ;;  %v5736_v29 = vpop.f32.mrb[75].mxu1  ;;  %v5792_v3 = vmax.f32 %v5784_v2, 0.0 }
0x107b   :  { %v5754_v25 = vadd.f32 %v5736_v29, %v6839_v48  ;;  %v5793_v50 = vmax.f32 %v5785_v10, 0.0 }
0x107c   :  { %v5786_v20 = vadd.f32 %v5772_v14, %v5753_v13 }
0x107d   :  { %v5787_v39 = vadd.f32 %v5772_v14, %v5754_v25  ;;  %v5740_v58 = vpop.f32.mrb[76].mxu1 }
0x107e   :  { %v5794_v17 = vmax.f32 %v5786_v20, 0.0  ;;  %v5755_v49 = vadd.f32 %v5740_v58, %v6844_v54  ;;  %v5742_v0 = vpop.f32.mrb[77].mxu1 }
0x107f   :  { %v5795_v40 = vmax.f32 %v5787_v39, 0.0  ;;  %v5756_v11 = vadd.f32 %v5742_v0, %v6844_v54 }
0x1080   :  { %v6441_v19 = vpack.c.bf16 %v5794_v17, %v5792_v3  ;;  %v5788_v35 = vadd.f32 %v8183_v28, %v5755_v49 }
0x1081   :  { %v5746_v43 = vpop.f32.mrb[78].mxu1  ;;  %v6439_v7 = vpack.c.bf16 %v5795_v40, %v5793_v50  ;;  %v5789_v1 = vadd.f32 %v8183_v28, %v5756_v11 }
0x1082   :  { %v5757_v12 = vadd.f32 %v5746_v43, %v6853_v63  ;;  %v5748_v48 = vpop.f32.mrb[79].mxu1  ;;  %v5796_v42 = vmax.f32 %v5788_v35, 0.0 }
0x1083   :  { %v5758_v60 = vadd.f32 %v5748_v48, %v6853_v63  ;;  %6440 = vmatprep.subr.bf16.mxu0 %v6439_v7  ;;  %v5797_v54 = vmax.f32 %v5789_v1, 0.0  ;;  %v5888_v63 = vcombine.high %v8062_v59, %v8062_v59 }
0x1084   :  { %v5790_v46 = vadd.f32 %v5782_v37, %v5757_v12  ;;  %6442 = vmatpush1.bf16.msra.mxu0 %v6441_v19 }
0x1085   :  { %v5791_v57 = vadd.f32 %v5782_v37, %v5758_v60 }
0x1086   :  { %v5798_v27 = vmax.f32 %v5790_v46, 0.0 }
0x1087   :  { %v5799_v30 = vmax.f32 %v5791_v57, 0.0 }
0x1088   :  { %v6445_v31 = vpack.c.bf16 %v5798_v27, %v5796_v42 }
0x1089   :  { %v6443_v36 = vpack.c.bf16 %v5799_v30, %v5797_v54 }
0x108b   :  { %6444 = vmatprep.subr.bf16.mxu0 %v6443_v36 }
0x108c   :  { %6446 = vmatpush1.bf16.msra.mxu0 %v6445_v31 }
0x108f   :  { %6314 = vmatmul.mubr.msk.f32.vlgmr.msra.gmra.mrb[78].mxu0 %vm354_vm2, %v7846_v51 }
0x1162   :  { %v5866_v24 = vpop.f32.mrb[78].mxu0 }
0x1163   :  { %v5867_v18 = vadd.f32 %v5866_v24, %v6969_v32  ;;  %v5868_v9 = vpop.f32.mrb[79].mxu0 }
0x1164   :  { %v5869_v26 = vadd.f32 %v5868_v9, %v6969_v32 }
0x1165   :  { %v6315_v23 = vclamps-f32 %v5867_v18, 20.0  ;;  %v5890_v16 = vsub.f32 %v5867_v18, %v8062_v59 }
0x1166   :  { %v6316_v55 = vclamps-f32 %v5869_v26, 20.0  ;;  %v5891_v15 = vsub.f32 %v5869_v26, %v5888_v63 }
0x1167   :  { %v5878_v21 = vmul.f32 %v6315_v23, %v5877_v4  ;;  %v5892_v51 = vmul.f32 %v5890_v16, %v5890_v16 }
0x1168   :  { %v5879_v22 = vmul.f32 %v6316_v55, %v5877_v4  ;;  %v5893_v5 = vmul.f32 %v5891_v15, %v5891_v15 }
0x116a   :  { %v5882_v56 = vcombine.low %v5878_v21, %v5879_v22  ;;  %v5896_v61 = vcombine.low %v5892_v51, %v5893_v5 }
0x116c   :  { %v5884_v45 = vsub.f32 %v5876_v44, %v5882_v56  ;;  %6318 = vst [vmem:[%s8165_s7 + $0x78] sm:$0xff] %v5896_v61 }
0x116e   :  { %6317 = vst [vmem:[%s8164_s6 + $0x78] sm:$0xff] %v5884_v45 }
0x116f   :  { %5908 = vsyncpa [#allocation3], 1 }

</bundles_post_ra>
